<compile_context>
chip_gen: v7x
topology: tpu7x:2x2x1
jax: 0.10.0
libtpu: 0.0.40
codegen_flags: <defaults>
</compile_context>

<pallas_src>
import functools
import math

import jax
import jax.numpy as jnp
from jax.experimental import pallas as pl
from jax.experimental.pallas import tpu as pltpu


def transformer_block_kernel(
    x_ref,
    wq_ref, bq_ref,
    wk_ref, bk_ref,
    wv_ref, bv_ref,
    wc_ref, bc_ref,
    w1_ref, b1_ref,
    prelu_ref,
    w2_ref, b2_ref,
    o_ref,
    *, n_head: int, d_head: int, nb: int, seq_len: int, d_model: int,
):
    f32 = jnp.float32
    bf16 = jnp.bfloat16
    M = nb * seq_len          # rows of the flat activation slab
    G = nb * n_head           # fused (batch_block * heads) einsum batch axis

    # ---- flat activation slab: (nb, T, D) -> (M, D), bf16 MXU operand -------
    xf = x_ref[...].reshape(M, d_model).astype(bf16)

    # ---- QKV projections: three flat (M, D) @ (D, D) GEMMs ------------------
    # (1/sqrt(d_head) is already folded into wq / bq by the wrapper.)
    q = jnp.dot(xf, wq_ref[...], preferred_element_type=f32) + bq_ref[...]
    k = jnp.dot(xf, wk_ref[...], preferred_element_type=f32) + bk_ref[...]
    v = jnp.dot(xf, wv_ref[...], preferred_element_type=f32) + bv_ref[...]

    # ---- split heads only for the score / PV einsums ------------------------
    def split_heads(z):       # (M, D) -> (G, T, d_head)
        z = z.reshape(nb, seq_len, n_head, d_head)
        z = z.transpose(0, 2, 1, 3)                       # one XLU transpose
        return z.reshape(G, seq_len, d_head).astype(bf16)

    qh, kh, vh = split_heads(q), split_heads(k), split_heads(v)

    # TODO(synk): for long sequences (T >= ~512) the (G, T, T) score tensor
    # must be flash-tiled over q/kv blocks with online-softmax accumulators;
    # at the demo shapes it fits trivially in vregs/VMEM and the batch-block
    # grid axis is the only tiling needed.
    score = jnp.einsum('gtd,gsd->gts', qh, kh,
                       preferred_element_type=f32)        # (G, T, T)
    score = score - jnp.max(score, axis=-1, keepdims=True)  # stabilize
    p = jnp.exp(score)
    denom = jnp.sum(p, axis=-1, keepdims=True)            # (G, T, 1)

    # Deferred normalization: PV on unnormalized weights, then scale the
    # (T, d_head)-sized result instead of the (T, T) probability matrix.
    oh = jnp.einsum('gts,gsd->gtd', p.astype(bf16), vh,
                    preferred_element_type=f32)           # (G, T, d_head)
    oh = oh * pl.reciprocal(denom, approx=True)           # EUP slot (free-ish)

    # ---- head concat back into the lane axis, flat output projection --------
    ocat = (oh.reshape(nb, n_head, seq_len, d_head)
              .transpose(0, 2, 1, 3)                      # one XLU transpose
              .reshape(M, d_model))
    attn = jnp.dot(ocat.astype(bf16), wc_ref[...],
                   preferred_element_type=f32) + bc_ref[...]     # (M, D)

    # ---- position-wise FFN on the flat rows ----------------------------------
    h1 = jnp.dot(attn.astype(bf16), w1_ref[...],
                 preferred_element_type=f32) + b1_ref[...]       # (M, H)
    a = prelu_ref[0]                                             # SMEM scalar
    h1 = jnp.where(h1 >= 0.0, h1, a * h1)                        # PReLU (f32)
    # dropout: identity in eval mode
    y = jnp.dot(h1.astype(bf16), w2_ref[...],
                preferred_element_type=f32) + b2_ref[...]        # (M, D)

    o_ref[...] = y.reshape(nb, seq_len, d_model).astype(o_ref.dtype)


def _vmem_limit_bytes():
    """Generation-aware VMEM budget: 64 MiB on v5e/v6e (128 MiB physical),
    ~48 MiB on v7x (64 MiB physical per TensorCore)."""
    default = 64 * 1024 * 1024
    try:
        cap = int(pltpu.get_tpu_info().vmem_capacity_bytes)
        return min(default, (cap * 3) // 4)
    except Exception:
        return default


def transformer_block(x, params, *, n_head: int, batch_block=None):
    B, T, D = x.shape
    assert D % n_head == 0
    d_head = D // n_head
    Hf = params["w1"].shape[0]

    # >=2 grid steps by default: batch blocks are independent ("parallel"),
    # feeding v7x's second TensorCore and enabling the x/out DMA pipeline.
    # At real scale pick batch_block so batch_block*T is a multiple of 256
    # (v6e/v7x MXU) / 128 (v5e).
    if batch_block is None:
        nb = B // 2 if (B >= 2 and B % 2 == 0) else B
    else:
        nb = batch_block
    assert B % nb == 0
    grid = (B // nb,)

    bf16 = jnp.bfloat16
    inv_sqrt_d = 1.0 / math.sqrt(d_head)

    # One-time, XLA-side weight prep (PyTorch convention W:[out,in]):
    #  - transpose to [in, out] so the kernel never transposes weights,
    #  - fold 1/sqrt(d_head) into the Q projection,
    #  - cast matmul weights to bf16 (biases stay f32).
    wq_t = (params["wq"] * inv_sqrt_d).T.astype(bf16)   # (D, D), scale folded
    bq = params["bq"] * inv_sqrt_d                      # (1, D) f32
    wk_t = params["wk"].T.astype(bf16)                  # (D, D)
    bk = params["bk"]                                   # (1, D) f32
    wv_t = params["wv"].T.astype(bf16)                  # (D, D)
    bv = params["bv"]                                   # (1, D) f32
    wc_t = params["wc"].T.astype(bf16)                  # (D, D)
    bc = params["bc"]                                   # (1, D) f32
    w1_t = params["w1"].T.astype(bf16)                  # (D, H)
    b1 = params["b1"]                                   # (1, H) f32
    w2_t = params["w2"].T.astype(bf16)                  # (H, D)
    b2 = params["b2"]                                   # (1, D) f32
    prelu = params["prelu"].reshape(1).astype(jnp.float32)   # SMEM scalar

    kernel = functools.partial(
        transformer_block_kernel,
        n_head=n_head, d_head=d_head, nb=nb, seq_len=T, d_model=D,
    )

    # Advisory cost estimate (helps XLA schedule the wrapper-side weight prep).
    M_rows = B * T
    flops = (2 * M_rows * D * D * 4                       # q, k, v, concat proj
             + 2 * B * n_head * T * T * d_head * 2        # q k^T and p v
             + 2 * M_rows * D * Hf * 2)                   # FFN linear1+linear2
    transcendentals = B * n_head * T * T                  # softmax exp
    bytes_accessed = (4 * int(x.size) + 4 * B * T * D     # x in, out (f32)
                      + 2 * (4 * D * D + 2 * D * Hf)      # bf16 weights
                      + 4 * (5 * D + Hf + 1))             # f32 biases + prelu
    cost = pl.CostEstimate(flops=flops, transcendentals=transcendentals,
                           bytes_accessed=bytes_accessed)

    def resident_spec(a, single_buffer):
        # Whole-array block, constant index across the grid.  Single-buffered
        # when supported: a second buffer for a never-changing block is waste.
        n = a.ndim
        idx = lambda *_: (0,) * n
        if single_buffer:
            return pl.BlockSpec(a.shape, idx, pipeline_mode=pl.Buffered(1))
        return pl.BlockSpec(a.shape, idx)

    def build(single_buffer_weights):
        in_specs = [
            pl.BlockSpec((nb, T, D), lambda i: (i, 0, 0)),           # x
            resident_spec(wq_t, single_buffer_weights),
            resident_spec(bq, single_buffer_weights),
            resident_spec(wk_t, single_buffer_weights),
            resident_spec(bk, single_buffer_weights),
            resident_spec(wv_t, single_buffer_weights),
            resident_spec(bv, single_buffer_weights),
            resident_spec(wc_t, single_buffer_weights),
            resident_spec(bc, single_buffer_weights),
            resident_spec(w1_t, single_buffer_weights),
            resident_spec(b1, single_buffer_weights),
            pl.BlockSpec(memory_space=pltpu.MemorySpace.SMEM),       # prelu
            resident_spec(w2_t, single_buffer_weights),
            resident_spec(b2, single_buffer_weights),
        ]
        return pl.pallas_call(
            kernel,
            out_shape=jax.ShapeDtypeStruct((B, T, D), x.dtype),
            grid_spec=pltpu.PrefetchScalarGridSpec(
                num_scalar_prefetch=0,
                grid=grid,
                in_specs=in_specs,
                out_specs=pl.BlockSpec((nb, T, D), lambda i: (i, 0, 0)),
            ),
            compiler_params=pltpu.CompilerParams(
                dimension_semantics=("parallel",),   # independent batch blocks
                vmem_limit_bytes=_vmem_limit_bytes(),
            ),
            cost_estimate=cost,
        )

    args = (x, wq_t, bq, wk_t, bk, wv_t, bv, wc_t, bc,
            w1_t, b1, prelu, w2_t, b2)
    try:
        return build(single_buffer_weights=True)(*args)
    except Exception:
        # Fallback if this jax build rejects pipeline_mode=pl.Buffered(1) on
        # TPU: identical semantics, default (double) buffering for weights.
        return build(single_buffer_weights=False)(*args)


def reference_block(x, params, *, n_head: int):
    """Pure-JAX (f32) reference for correctness checking."""
    B, T, D = x.shape
    d_head = D // n_head

    def lin(z, w, b):
        return z @ w.T + b[0]

    q = lin(x, params["wq"], params["bq"])
    k = lin(x, params["wk"], params["bk"])
    v = lin(x, params["wv"], params["bv"])

    def split(z):  # [B,T,D] -> [B,H,T,d_head]
        return z.reshape(B, T, n_head, d_head).transpose(0, 2, 1, 3)

    qh, kh, vh = split(q), split(k), split(v)
    score = jnp.einsum("bhqd,bhkd->bhqk", qh, kh) / math.sqrt(d_head)
    score = jax.nn.softmax(score, axis=-1)
    out = jnp.einsum("bhqk,bhkd->bhqd", score, vh)
    out = out.transpose(0, 2, 1, 3).reshape(B, T, D)
    out = lin(out, params["wc"], params["bc"])

    h1 = lin(out, params["w1"], params["b1"])
    a = params["prelu"][0]
    h1 = jnp.where(h1 >= 0.0, h1, a * h1)
    return lin(h1, params["w2"], params["b2"])


def init_params(key, d_total, hidden_dim):
    ks = jax.random.split(key, 12)
    s = 0.1
    return {
        "wq": s * jax.random.normal(ks[0], (d_total, d_total), jnp.float32),
        "bq": s * jax.random.normal(ks[1], (1, d_total), jnp.float32),
        "wk": s * jax.random.normal(ks[2], (d_total, d_total), jnp.float32),
        "bk": s * jax.random.normal(ks[3], (1, d_total), jnp.float32),
        "wv": s * jax.random.normal(ks[4], (d_total, d_total), jnp.float32),
        "bv": s * jax.random.normal(ks[5], (1, d_total), jnp.float32),
        "wc": s * jax.random.normal(ks[6], (d_total, d_total), jnp.float32),
        "bc": s * jax.random.normal(ks[7], (1, d_total), jnp.float32),
        "w1": s * jax.random.normal(ks[8], (hidden_dim, d_total), jnp.float32),
        "b1": s * jax.random.normal(ks[9], (1, hidden_dim), jnp.float32),
        "prelu": jnp.full((1,), 0.25, jnp.float32),  # nn.PReLU default init
        "w2": s * jax.random.normal(ks[10], (d_total, hidden_dim), jnp.float32),
        "b2": s * jax.random.normal(ks[11], (1, d_total), jnp.float32),
    }


if __name__ == "__main__":
    B, T, D = 2, 8, 32       # batch, sequence length, total feature dim
    N_HEAD = 4               # D % N_HEAD == 0 -> d_head = 8
    HIDDEN = 64              # FFN hidden dim

    key = jax.random.PRNGKey(0)
    kx, kp = jax.random.split(key)
    x = jax.random.normal(kx, (B, T, D), jnp.float32)
    params = init_params(kp, D, HIDDEN)

    out = transformer_block(x, params, n_head=N_HEAD)
    out = jax.block_until_ready(out)

    ref = reference_block(x, params, n_head=N_HEAD)
    assert out.shape == (B, T, D)
    # bf16 MXU operands (f32 accumulation) + approx softmax reciprocal vs a
    # pure-f32 reference -> tolerance looser than 1e-4.
    assert jnp.allclose(out, ref, atol=2e-2, rtol=2e-2), "mismatch vs reference"

    print("KERNEL_OK")
</pallas_src>

<mosaic_0001>
module attributes {stable_mosaic.version = 11 : i64} {
  func.func @transformer_block_kernel(%arg0: i32, %arg1: memref<1x8x32xf32, #tpu.memory_space<vmem>>, %arg2: memref<32x32xbf16, #tpu.memory_space<vmem>>, %arg3: memref<1x32xf32, #tpu.memory_space<vmem>>, %arg4: memref<32x32xbf16, #tpu.memory_space<vmem>>, %arg5: memref<1x32xf32, #tpu.memory_space<vmem>>, %arg6: memref<32x32xbf16, #tpu.memory_space<vmem>>, %arg7: memref<1x32xf32, #tpu.memory_space<vmem>>, %arg8: memref<32x32xbf16, #tpu.memory_space<vmem>>, %arg9: memref<1x32xf32, #tpu.memory_space<vmem>>, %arg10: memref<32x64xbf16, #tpu.memory_space<vmem>>, %arg11: memref<1x64xf32, #tpu.memory_space<vmem>>, %arg12: memref<1xf32, #tpu.memory_space<smem>>, %arg13: memref<64x32xbf16, #tpu.memory_space<vmem>>, %arg14: memref<1x32xf32, #tpu.memory_space<vmem>>, %arg15: memref<1x8x32xf32, #tpu.memory_space<vmem>>) attributes {dimension_semantics = [#tpu.dimension_semantics<parallel>], iteration_bounds = array<i64: 2>, scalar_prefetch = 0 : i64, scratch_operands = 0 : i64, tpu.core_type = #tpu.core_type<tc>, window_params = [{transform_indices = @transform_0, window_bounds = array<i64: 1, 8, 32>}, {pipeline_mode = #tpu.pipeline_mode<synchronous>, transform_indices = @transform_1, window_bounds = array<i64: 32, 32>}, {pipeline_mode = #tpu.pipeline_mode<synchronous>, transform_indices = @transform_2, window_bounds = array<i64: 1, 32>}, {pipeline_mode = #tpu.pipeline_mode<synchronous>, transform_indices = @transform_3, window_bounds = array<i64: 32, 32>}, {pipeline_mode = #tpu.pipeline_mode<synchronous>, transform_indices = @transform_4, window_bounds = array<i64: 1, 32>}, {pipeline_mode = #tpu.pipeline_mode<synchronous>, transform_indices = @transform_5, window_bounds = array<i64: 32, 32>}, {pipeline_mode = #tpu.pipeline_mode<synchronous>, transform_indices = @transform_6, window_bounds = array<i64: 1, 32>}, {pipeline_mode = #tpu.pipeline_mode<synchronous>, transform_indices = @transform_7, window_bounds = array<i64: 32, 32>}, {pipeline_mode = #tpu.pipeline_mode<synchronous>, transform_indices = @transform_8, window_bounds = array<i64: 1, 32>}, {pipeline_mode = #tpu.pipeline_mode<synchronous>, transform_indices = @transform_9, window_bounds = array<i64: 32, 64>}, {pipeline_mode = #tpu.pipeline_mode<synchronous>, transform_indices = @transform_10, window_bounds = array<i64: 1, 64>}, {transform_indices = @transform_11, window_bounds = array<i64: 1>}, {pipeline_mode = #tpu.pipeline_mode<synchronous>, transform_indices = @transform_12, window_bounds = array<i64: 64, 32>}, {pipeline_mode = #tpu.pipeline_mode<synchronous>, transform_indices = @transform_13, window_bounds = array<i64: 1, 32>}, {transform_indices = @transform_14, window_bounds = array<i64: 1, 8, 32>}]} {
    %c0 = arith.constant 0 : index
    %c0_0 = arith.constant 0 : index
    %c0_1 = arith.constant 0 : index
    %0 = vector.load %arg1[%c0, %c0_0, %c0_1] : memref<1x8x32xf32, #tpu.memory_space<vmem>>, vector<1x8x32xf32>
    %1 = vector.shape_cast %0 : vector<1x8x32xf32> to vector<8x32xf32>
    %2 = arith.truncf %1 : vector<8x32xf32> to vector<8x32xbf16>
    %c0_2 = arith.constant 0 : index
    %c0_3 = arith.constant 0 : index
    %3 = vector.load %arg2[%c0_2, %c0_3] : memref<32x32xbf16, #tpu.memory_space<vmem>>, vector<32x32xbf16>
    %cst = arith.constant dense<0.000000e+00> : vector<8x32xf32>
    %4 = tpu.matmul %2, %3, %cst {dimension_numbers = #tpu.dot_dimension_numbers<[1], [0], [0], [1], [0, 0, 1, 1], [], []>} : vector<8x32xbf16>, vector<32x32xbf16>, vector<8x32xf32> -> vector<8x32xf32>
    %c0_4 = arith.constant 0 : index
    %c0_5 = arith.constant 0 : index
    %5 = vector.load %arg3[%c0_4, %c0_5] : memref<1x32xf32, #tpu.memory_space<vmem>>, vector<1x32xf32>
    %6 = vector.broadcast %5 : vector<1x32xf32> to vector<8x32xf32>
    %7 = arith.addf %4, %6 : vector<8x32xf32>
    %c0_6 = arith.constant 0 : index
    %c0_7 = arith.constant 0 : index
    %8 = vector.load %arg4[%c0_6, %c0_7] : memref<32x32xbf16, #tpu.memory_space<vmem>>, vector<32x32xbf16>
    %cst_8 = arith.constant dense<0.000000e+00> : vector<8x32xf32>
    %9 = tpu.matmul %2, %8, %cst_8 {dimension_numbers = #tpu.dot_dimension_numbers<[1], [0], [0], [1], [0, 0, 1, 1], [], []>} : vector<8x32xbf16>, vector<32x32xbf16>, vector<8x32xf32> -> vector<8x32xf32>
    %c0_9 = arith.constant 0 : index
    %c0_10 = arith.constant 0 : index
    %10 = vector.load %arg5[%c0_9, %c0_10] : memref<1x32xf32, #tpu.memory_space<vmem>>, vector<1x32xf32>
    %11 = vector.broadcast %10 : vector<1x32xf32> to vector<8x32xf32>
    %12 = arith.addf %9, %11 : vector<8x32xf32>
    %c0_11 = arith.constant 0 : index
    %c0_12 = arith.constant 0 : index
    %13 = vector.load %arg6[%c0_11, %c0_12] : memref<32x32xbf16, #tpu.memory_space<vmem>>, vector<32x32xbf16>
    %cst_13 = arith.constant dense<0.000000e+00> : vector<8x32xf32>
    %14 = tpu.matmul %2, %13, %cst_13 {dimension_numbers = #tpu.dot_dimension_numbers<[1], [0], [0], [1], [0, 0, 1, 1], [], []>} : vector<8x32xbf16>, vector<32x32xbf16>, vector<8x32xf32> -> vector<8x32xf32>
    %c0_14 = arith.constant 0 : index
    %c0_15 = arith.constant 0 : index
    %15 = vector.load %arg7[%c0_14, %c0_15] : memref<1x32xf32, #tpu.memory_space<vmem>>, vector<1x32xf32>
    %16 = vector.broadcast %15 : vector<1x32xf32> to vector<8x32xf32>
    %17 = arith.addf %14, %16 : vector<8x32xf32>
    %18 = vector.shape_cast %7 : vector<8x32xf32> to vector<1x8x4x8xf32>
    %19 = tpu.transpose %18, [0, 2, 1, 3] : vector<1x8x4x8xf32> -> vector<1x4x8x8xf32>
    %20 = vector.shape_cast %19 : vector<1x4x8x8xf32> to vector<4x8x8xf32>
    %21 = arith.truncf %20 : vector<4x8x8xf32> to vector<4x8x8xbf16>
    %22 = vector.shape_cast %12 : vector<8x32xf32> to vector<1x8x4x8xf32>
    %23 = tpu.transpose %22, [0, 2, 1, 3] : vector<1x8x4x8xf32> -> vector<1x4x8x8xf32>
    %24 = vector.shape_cast %23 : vector<1x4x8x8xf32> to vector<4x8x8xf32>
    %25 = arith.truncf %24 : vector<4x8x8xf32> to vector<4x8x8xbf16>
    %26 = vector.shape_cast %17 : vector<8x32xf32> to vector<1x8x4x8xf32>
    %27 = tpu.transpose %26, [0, 2, 1, 3] : vector<1x8x4x8xf32> -> vector<1x4x8x8xf32>
    %28 = vector.shape_cast %27 : vector<1x4x8x8xf32> to vector<4x8x8xf32>
    %29 = arith.truncf %28 : vector<4x8x8xf32> to vector<4x8x8xbf16>
    "tpu.trace_start"() <{level = 10 : i32, message = "gtd,gsd->gts"}> : () -> ()
    %cst_16 = arith.constant dense<0.000000e+00> : vector<4x8x8xf32>
    %30 = tpu.matmul %21, %25, %cst_16 {dimension_numbers = #tpu.dot_dimension_numbers<[2], [2], [1], [1], [0, 0, 0, 1, 1, 1], [0], [0]>} : vector<4x8x8xbf16>, vector<4x8x8xbf16>, vector<4x8x8xf32> -> vector<4x8x8xf32>
    "tpu.trace_stop"() : () -> ()
    %cst_17 = arith.constant dense<0xFF800000> : vector<4x8xf32>
    %31 = vector.multi_reduction <maximumf>, %30, %cst_17 [2] : vector<4x8x8xf32> to vector<4x8xf32>
    %32 = vector.shape_cast %31 : vector<4x8xf32> to vector<4x8x1xf32>
    %33 = vector.broadcast %32 : vector<4x8x1xf32> to vector<4x8x8xf32>
    %34 = arith.subf %30, %33 : vector<4x8x8xf32>
    %35 = math.exp %34 : vector<4x8x8xf32>
    %cst_18 = arith.constant dense<0.000000e+00> : vector<4x8xf32>
    %36 = vector.multi_reduction <add>, %35, %cst_18 [2] : vector<4x8x8xf32> to vector<4x8xf32>
    %37 = vector.shape_cast %36 : vector<4x8xf32> to vector<4x8x1xf32>
    %38 = arith.truncf %35 : vector<4x8x8xf32> to vector<4x8x8xbf16>
    "tpu.trace_start"() <{level = 10 : i32, message = "gts,gsd->gtd"}> : () -> ()
    %cst_19 = arith.constant dense<0.000000e+00> : vector<4x8x8xf32>
    %39 = tpu.matmul %38, %29, %cst_19 {dimension_numbers = #tpu.dot_dimension_numbers<[2], [1], [1], [2], [0, 0, 0, 1, 1, 2], [0], [0]>} : vector<4x8x8xbf16>, vector<4x8x8xbf16>, vector<4x8x8xf32> -> vector<4x8x8xf32>
    "tpu.trace_stop"() : () -> ()
    %40 = tpu.reciprocal %37 {approx = true} : vector<4x8x1xf32> -> vector<4x8x1xf32>
    %41 = vector.broadcast %40 : vector<4x8x1xf32> to vector<4x8x8xf32>
    %42 = arith.mulf %39, %41 : vector<4x8x8xf32>
    %43 = vector.shape_cast %42 : vector<4x8x8xf32> to vector<1x4x8x8xf32>
    %44 = tpu.transpose %43, [0, 2, 1, 3] : vector<1x4x8x8xf32> -> vector<1x8x4x8xf32>
    %45 = vector.shape_cast %44 : vector<1x8x4x8xf32> to vector<8x32xf32>
    %46 = arith.truncf %45 : vector<8x32xf32> to vector<8x32xbf16>
    %c0_20 = arith.constant 0 : index
    %c0_21 = arith.constant 0 : index
    %47 = vector.load %arg8[%c0_20, %c0_21] : memref<32x32xbf16, #tpu.memory_space<vmem>>, vector<32x32xbf16>
    %cst_22 = arith.constant dense<0.000000e+00> : vector<8x32xf32>
    %48 = tpu.matmul %46, %47, %cst_22 {dimension_numbers = #tpu.dot_dimension_numbers<[1], [0], [0], [1], [0, 0, 1, 1], [], []>} : vector<8x32xbf16>, vector<32x32xbf16>, vector<8x32xf32> -> vector<8x32xf32>
    %c0_23 = arith.constant 0 : index
    %c0_24 = arith.constant 0 : index
    %49 = vector.load %arg9[%c0_23, %c0_24] : memref<1x32xf32, #tpu.memory_space<vmem>>, vector<1x32xf32>
    %50 = vector.broadcast %49 : vector<1x32xf32> to vector<8x32xf32>
    %51 = arith.addf %48, %50 : vector<8x32xf32>
    %52 = arith.truncf %51 : vector<8x32xf32> to vector<8x32xbf16>
    %c0_25 = arith.constant 0 : index
    %c0_26 = arith.constant 0 : index
    %53 = vector.load %arg10[%c0_25, %c0_26] : memref<32x64xbf16, #tpu.memory_space<vmem>>, vector<32x64xbf16>
    %cst_27 = arith.constant dense<0.000000e+00> : vector<8x64xf32>
    %54 = tpu.matmul %52, %53, %cst_27 {dimension_numbers = #tpu.dot_dimension_numbers<[1], [0], [0], [1], [0, 0, 1, 1], [], []>} : vector<8x32xbf16>, vector<32x64xbf16>, vector<8x64xf32> -> vector<8x64xf32>
    %c0_28 = arith.constant 0 : index
    %c0_29 = arith.constant 0 : index
    %55 = vector.load %arg11[%c0_28, %c0_29] : memref<1x64xf32, #tpu.memory_space<vmem>>, vector<1x64xf32>
    %56 = vector.broadcast %55 : vector<1x64xf32> to vector<8x64xf32>
    %57 = arith.addf %54, %56 : vector<8x64xf32>
    %c0_30 = arith.constant 0 : index
    %58 = memref.load %arg12[%c0_30] : memref<1xf32, #tpu.memory_space<smem>>
    %cst_31 = arith.constant 0.000000e+00 : f32
    %59 = vector.broadcast %cst_31 : f32 to vector<8x64xf32>
    %60 = arith.cmpf oge, %57, %59 : vector<8x64xf32>
    %61 = vector.broadcast %58 : f32 to vector<8x64xf32>
    %62 = arith.mulf %61, %57 : vector<8x64xf32>
    %63 = arith.select %60, %57, %62 : vector<8x64xi1>, vector<8x64xf32>
    %64 = arith.truncf %63 : vector<8x64xf32> to vector<8x64xbf16>
    %c0_32 = arith.constant 0 : index
    %c0_33 = arith.constant 0 : index
    %65 = vector.load %arg13[%c0_32, %c0_33] : memref<64x32xbf16, #tpu.memory_space<vmem>>, vector<64x32xbf16>
    %cst_34 = arith.constant dense<0.000000e+00> : vector<8x32xf32>
    %66 = tpu.matmul %64, %65, %cst_34 {dimension_numbers = #tpu.dot_dimension_numbers<[1], [0], [0], [1], [0, 0, 1, 1], [], []>} : vector<8x64xbf16>, vector<64x32xbf16>, vector<8x32xf32> -> vector<8x32xf32>
    %c0_35 = arith.constant 0 : index
    %c0_36 = arith.constant 0 : index
    %67 = vector.load %arg14[%c0_35, %c0_36] : memref<1x32xf32, #tpu.memory_space<vmem>>, vector<1x32xf32>
    %68 = vector.broadcast %67 : vector<1x32xf32> to vector<8x32xf32>
    %69 = arith.addf %66, %68 : vector<8x32xf32>
    %70 = vector.shape_cast %69 : vector<8x32xf32> to vector<1x8x32xf32>
    %c0_37 = arith.constant 0 : index
    %c0_38 = arith.constant 0 : index
    %c0_39 = arith.constant 0 : index
    %71 = vector.load %arg15[%c0_37, %c0_38, %c0_39] : memref<1x8x32xf32, #tpu.memory_space<vmem>>, vector<1x8x32xf32>
    tpu.vector_store %arg15[%c0_37, %c0_38, %c0_39], %70 {strides = array<i32>} : memref<1x8x32xf32, #tpu.memory_space<vmem>>, vector<1x8x32xf32>,
    return
  }
  func.func @transform_0(%arg0: i32) -> (i32, i32, i32) {
    %c0_i32 = arith.constant 0 : i32
    %c0_i32_0 = arith.constant 0 : i32
    %c0_i32_1 = arith.constant 0 : i32
    return %arg0, %c0_i32, %c0_i32_0 : i32, i32, i32
  }
  func.func @transform_1(%arg0: i32) -> (i32, i32) {
    %c0_i32 = arith.constant 0 : i32
    %c0_i32_0 = arith.constant 0 : i32
    %c0_i32_1 = arith.constant 0 : i32
    return %c0_i32, %c0_i32_0 : i32, i32
  }
  func.func @transform_2(%arg0: i32) -> (i32, i32) {
    %c0_i32 = arith.constant 0 : i32
    %c0_i32_0 = arith.constant 0 : i32
    %c0_i32_1 = arith.constant 0 : i32
    return %c0_i32, %c0_i32_0 : i32, i32
  }
  func.func @transform_3(%arg0: i32) -> (i32, i32) {
    %c0_i32 = arith.constant 0 : i32
    %c0_i32_0 = arith.constant 0 : i32
    %c0_i32_1 = arith.constant 0 : i32
    return %c0_i32, %c0_i32_0 : i32, i32
  }
  func.func @transform_4(%arg0: i32) -> (i32, i32) {
    %c0_i32 = arith.constant 0 : i32
    %c0_i32_0 = arith.constant 0 : i32
    %c0_i32_1 = arith.constant 0 : i32
    return %c0_i32, %c0_i32_0 : i32, i32
  }
  func.func @transform_5(%arg0: i32) -> (i32, i32) {
    %c0_i32 = arith.constant 0 : i32
    %c0_i32_0 = arith.constant 0 : i32
    %c0_i32_1 = arith.constant 0 : i32
    return %c0_i32, %c0_i32_0 : i32, i32
  }
  func.func @transform_6(%arg0: i32) -> (i32, i32) {
    %c0_i32 = arith.constant 0 : i32
    %c0_i32_0 = arith.constant 0 : i32
    %c0_i32_1 = arith.constant 0 : i32
    return %c0_i32, %c0_i32_0 : i32, i32
  }
  func.func @transform_7(%arg0: i32) -> (i32, i32) {
    %c0_i32 = arith.constant 0 : i32
    %c0_i32_0 = arith.constant 0 : i32
    %c0_i32_1 = arith.constant 0 : i32
    return %c0_i32, %c0_i32_0 : i32, i32
  }
  func.func @transform_8(%arg0: i32) -> (i32, i32) {
    %c0_i32 = arith.constant 0 : i32
    %c0_i32_0 = arith.constant 0 : i32
    %c0_i32_1 = arith.constant 0 : i32
    return %c0_i32, %c0_i32_0 : i32, i32
  }
  func.func @transform_9(%arg0: i32) -> (i32, i32) {
    %c0_i32 = arith.constant 0 : i32
    %c0_i32_0 = arith.constant 0 : i32
    %c0_i32_1 = arith.constant 0 : i32
    return %c0_i32, %c0_i32_0 : i32, i32
  }
  func.func @transform_10(%arg0: i32) -> (i32, i32) {
    %c0_i32 = arith.constant 0 : i32
    %c0_i32_0 = arith.constant 0 : i32
    %c0_i32_1 = arith.constant 0 : i32
    return %c0_i32, %c0_i32_0 : i32, i32
  }
  func.func @transform_11(%arg0: i32) -> i32 {
    %c0_i32 = arith.constant 0 : i32
    %c0_i32_0 = arith.constant 0 : i32
    return %c0_i32 : i32
  }
  func.func @transform_12(%arg0: i32) -> (i32, i32) {
    %c0_i32 = arith.constant 0 : i32
    %c0_i32_0 = arith.constant 0 : i32
    %c0_i32_1 = arith.constant 0 : i32
    return %c0_i32, %c0_i32_0 : i32, i32
  }
  func.func @transform_13(%arg0: i32) -> (i32, i32) {
    %c0_i32 = arith.constant 0 : i32
    %c0_i32_0 = arith.constant 0 : i32
    %c0_i32_1 = arith.constant 0 : i32
    return %c0_i32, %c0_i32_0 : i32, i32
  }
  func.func @transform_14(%arg0: i32) -> (i32, i32, i32) {
    %c0_i32 = arith.constant 0 : i32
    %c0_i32_0 = arith.constant 0 : i32
    %c0_i32_1 = arith.constant 0 : i32
    return %arg0, %c0_i32, %c0_i32_0 : i32, i32, i32
  }
}

module attributes {stable_mosaic.version = 11 : i64} {
  func.func @transformer_block_kernel(%arg0: i32, %arg1: memref<1x8x32xf32, #tpu.memory_space<vmem>>, %arg2: memref<32x32xbf16, #tpu.memory_space<vmem>>, %arg3: memref<1x32xf32, #tpu.memory_space<vmem>>, %arg4: memref<32x32xbf16, #tpu.memory_space<vmem>>, %arg5: memref<1x32xf32, #tpu.memory_space<vmem>>, %arg6: memref<32x32xbf16, #tpu.memory_space<vmem>>, %arg7: memref<1x32xf32, #tpu.memory_space<vmem>>, %arg8: memref<32x32xbf16, #tpu.memory_space<vmem>>, %arg9: memref<1x32xf32, #tpu.memory_space<vmem>>, %arg10: memref<32x64xbf16, #tpu.memory_space<vmem>>, %arg11: memref<1x64xf32, #tpu.memory_space<vmem>>, %arg12: memref<1xf32, #tpu.memory_space<smem>>, %arg13: memref<64x32xbf16, #tpu.memory_space<vmem>>, %arg14: memref<1x32xf32, #tpu.memory_space<vmem>>, %arg15: memref<1x8x32xf32, #tpu.memory_space<vmem>>) attributes {dimension_semantics = [#tpu.dimension_semantics<parallel>], iteration_bounds = array<i64: 2>, scalar_prefetch = 0 : i64, scratch_operands = 0 : i64, tpu.core_type = #tpu.core_type<tc>, window_params = [{transform_indices = @transform_0, window_bounds = array<i64: 1, 8, 32>}, {pipeline_mode = #tpu.pipeline_mode<synchronous>, transform_indices = @transform_1, window_bounds = array<i64: 32, 32>}, {pipeline_mode = #tpu.pipeline_mode<synchronous>, transform_indices = @transform_2, window_bounds = array<i64: 1, 32>}, {pipeline_mode = #tpu.pipeline_mode<synchronous>, transform_indices = @transform_3, window_bounds = array<i64: 32, 32>}, {pipeline_mode = #tpu.pipeline_mode<synchronous>, transform_indices = @transform_4, window_bounds = array<i64: 1, 32>}, {pipeline_mode = #tpu.pipeline_mode<synchronous>, transform_indices = @transform_5, window_bounds = array<i64: 32, 32>}, {pipeline_mode = #tpu.pipeline_mode<synchronous>, transform_indices = @transform_6, window_bounds = array<i64: 1, 32>}, {pipeline_mode = #tpu.pipeline_mode<synchronous>, transform_indices = @transform_7, window_bounds = array<i64: 32, 32>}, {pipeline_mode = #tpu.pipeline_mode<synchronous>, transform_indices = @transform_8, window_bounds = array<i64: 1, 32>}, {pipeline_mode = #tpu.pipeline_mode<synchronous>, transform_indices = @transform_9, window_bounds = array<i64: 32, 64>}, {pipeline_mode = #tpu.pipeline_mode<synchronous>, transform_indices = @transform_10, window_bounds = array<i64: 1, 64>}, {transform_indices = @transform_11, window_bounds = array<i64: 1>}, {pipeline_mode = #tpu.pipeline_mode<synchronous>, transform_indices = @transform_12, window_bounds = array<i64: 64, 32>}, {pipeline_mode = #tpu.pipeline_mode<synchronous>, transform_indices = @transform_13, window_bounds = array<i64: 1, 32>}, {transform_indices = @transform_14, window_bounds = array<i64: 1, 8, 32>}]} {
    %c0 = arith.constant 0 : index
    %c0_0 = arith.constant 0 : index
    %c0_1 = arith.constant 0 : index
    %0 = vector.load %arg1[%c0, %c0_0, %c0_1] : memref<1x8x32xf32, #tpu.memory_space<vmem>>, vector<1x8x32xf32>
    %1 = vector.shape_cast %0 : vector<1x8x32xf32> to vector<8x32xf32>
    %2 = arith.truncf %1 : vector<8x32xf32> to vector<8x32xbf16>
    %c0_2 = arith.constant 0 : index
    %c0_3 = arith.constant 0 : index
    %3 = vector.load %arg2[%c0_2, %c0_3] : memref<32x32xbf16, #tpu.memory_space<vmem>>, vector<32x32xbf16>
    %cst = arith.constant dense<0.000000e+00> : vector<8x32xf32>
    %4 = tpu.matmul %2, %3, %cst {dimension_numbers = #tpu.dot_dimension_numbers<[1], [0], [0], [1], [0, 0, 1, 1], [], []>} : vector<8x32xbf16>, vector<32x32xbf16>, vector<8x32xf32> -> vector<8x32xf32>
    %c0_4 = arith.constant 0 : index
    %c0_5 = arith.constant 0 : index
    %5 = vector.load %arg3[%c0_4, %c0_5] : memref<1x32xf32, #tpu.memory_space<vmem>>, vector<1x32xf32>
    %6 = vector.broadcast %5 : vector<1x32xf32> to vector<8x32xf32>
    %7 = arith.addf %4, %6 : vector<8x32xf32>
    %c0_6 = arith.constant 0 : index
    %c0_7 = arith.constant 0 : index
    %8 = vector.load %arg4[%c0_6, %c0_7] : memref<32x32xbf16, #tpu.memory_space<vmem>>, vector<32x32xbf16>
    %cst_8 = arith.constant dense<0.000000e+00> : vector<8x32xf32>
    %9 = tpu.matmul %2, %8, %cst_8 {dimension_numbers = #tpu.dot_dimension_numbers<[1], [0], [0], [1], [0, 0, 1, 1], [], []>} : vector<8x32xbf16>, vector<32x32xbf16>, vector<8x32xf32> -> vector<8x32xf32>
    %c0_9 = arith.constant 0 : index
    %c0_10 = arith.constant 0 : index
    %10 = vector.load %arg5[%c0_9, %c0_10] : memref<1x32xf32, #tpu.memory_space<vmem>>, vector<1x32xf32>
    %11 = vector.broadcast %10 : vector<1x32xf32> to vector<8x32xf32>
    %12 = arith.addf %9, %11 : vector<8x32xf32>
    %c0_11 = arith.constant 0 : index
    %c0_12 = arith.constant 0 : index
    %13 = vector.load %arg6[%c0_11, %c0_12] : memref<32x32xbf16, #tpu.memory_space<vmem>>, vector<32x32xbf16>
    %cst_13 = arith.constant dense<0.000000e+00> : vector<8x32xf32>
    %14 = tpu.matmul %2, %13, %cst_13 {dimension_numbers = #tpu.dot_dimension_numbers<[1], [0], [0], [1], [0, 0, 1, 1], [], []>} : vector<8x32xbf16>, vector<32x32xbf16>, vector<8x32xf32> -> vector<8x32xf32>
    %c0_14 = arith.constant 0 : index
    %c0_15 = arith.constant 0 : index
    %15 = vector.load %arg7[%c0_14, %c0_15] : memref<1x32xf32, #tpu.memory_space<vmem>>, vector<1x32xf32>
    %16 = vector.broadcast %15 : vector<1x32xf32> to vector<8x32xf32>
    %17 = arith.addf %14, %16 : vector<8x32xf32>
    %18 = vector.shape_cast %7 : vector<8x32xf32> to vector<1x8x4x8xf32>
    %19 = tpu.transpose %18, [0, 2, 1, 3] : vector<1x8x4x8xf32> -> vector<1x4x8x8xf32>
    %20 = vector.shape_cast %19 : vector<1x4x8x8xf32> to vector<4x8x8xf32>
    %21 = arith.truncf %20 : vector<4x8x8xf32> to vector<4x8x8xbf16>
    %22 = vector.shape_cast %12 : vector<8x32xf32> to vector<1x8x4x8xf32>
    %23 = tpu.transpose %22, [0, 2, 1, 3] : vector<1x8x4x8xf32> -> vector<1x4x8x8xf32>
    %24 = vector.shape_cast %23 : vector<1x4x8x8xf32> to vector<4x8x8xf32>
    %25 = arith.truncf %24 : vector<4x8x8xf32> to vector<4x8x8xbf16>
    %26 = vector.shape_cast %17 : vector<8x32xf32> to vector<1x8x4x8xf32>
    %27 = tpu.transpose %26, [0, 2, 1, 3] : vector<1x8x4x8xf32> -> vector<1x4x8x8xf32>
    %28 = vector.shape_cast %27 : vector<1x4x8x8xf32> to vector<4x8x8xf32>
    %29 = arith.truncf %28 : vector<4x8x8xf32> to vector<4x8x8xbf16>
    "tpu.trace_start"() <{level = 10 : i32, message = "gtd,gsd->gts"}> : () -> ()
    %cst_16 = arith.constant dense<0.000000e+00> : vector<4x8x8xf32>
    %30 = tpu.matmul %21, %25, %cst_16 {dimension_numbers = #tpu.dot_dimension_numbers<[2], [2], [1], [1], [0, 0, 0, 1, 1, 1], [0], [0]>} : vector<4x8x8xbf16>, vector<4x8x8xbf16>, vector<4x8x8xf32> -> vector<4x8x8xf32>
    "tpu.trace_stop"() : () -> ()
    %cst_17 = arith.constant dense<0xFF800000> : vector<4x8xf32>
    %31 = vector.multi_reduction <maximumf>, %30, %cst_17 [2] : vector<4x8x8xf32> to vector<4x8xf32>
    %32 = vector.shape_cast %31 : vector<4x8xf32> to vector<4x8x1xf32>
    %33 = vector.broadcast %32 : vector<4x8x1xf32> to vector<4x8x8xf32>
    %34 = arith.subf %30, %33 : vector<4x8x8xf32>
    %35 = math.exp %34 : vector<4x8x8xf32>
    %cst_18 = arith.constant dense<0.000000e+00> : vector<4x8xf32>
    %36 = vector.multi_reduction <add>, %35, %cst_18 [2] : vector<4x8x8xf32> to vector<4x8xf32>
    %37 = vector.shape_cast %36 : vector<4x8xf32> to vector<4x8x1xf32>
    %38 = arith.truncf %35 : vector<4x8x8xf32> to vector<4x8x8xbf16>
    "tpu.trace_start"() <{level = 10 : i32, message = "gts,gsd->gtd"}> : () -> ()
    %cst_19 = arith.constant dense<0.000000e+00> : vector<4x8x8xf32>
    %39 = tpu.matmul %38, %29, %cst_19 {dimension_numbers = #tpu.dot_dimension_numbers<[2], [1], [1], [2], [0, 0, 0, 1, 1, 2], [0], [0]>} : vector<4x8x8xbf16>, vector<4x8x8xbf16>, vector<4x8x8xf32> -> vector<4x8x8xf32>
    "tpu.trace_stop"() : () -> ()
    %40 = tpu.reciprocal %37 {approx = true} : vector<4x8x1xf32> -> vector<4x8x1xf32>
    %41 = vector.broadcast %40 : vector<4x8x1xf32> to vector<4x8x8xf32>
    %42 = arith.mulf %39, %41 : vector<4x8x8xf32>
    %43 = vector.shape_cast %42 : vector<4x8x8xf32> to vector<1x4x8x8xf32>
    %44 = tpu.transpose %43, [0, 2, 1, 3] : vector<1x4x8x8xf32> -> vector<1x8x4x8xf32>
    %45 = vector.shape_cast %44 : vector<1x8x4x8xf32> to vector<8x32xf32>
    %46 = arith.truncf %45 : vector<8x32xf32> to vector<8x32xbf16>
    %c0_20 = arith.constant 0 : index
    %c0_21 = arith.constant 0 : index
    %47 = vector.load %arg8[%c0_20, %c0_21] : memref<32x32xbf16, #tpu.memory_space<vmem>>, vector<32x32xbf16>
    %cst_22 = arith.constant dense<0.000000e+00> : vector<8x32xf32>
    %48 = tpu.matmul %46, %47, %cst_22 {dimension_numbers = #tpu.dot_dimension_numbers<[1], [0], [0], [1], [0, 0, 1, 1], [], []>} : vector<8x32xbf16>, vector<32x32xbf16>, vector<8x32xf32> -> vector<8x32xf32>
    %c0_23 = arith.constant 0 : index
    %c0_24 = arith.constant 0 : index
    %49 = vector.load %arg9[%c0_23, %c0_24] : memref<1x32xf32, #tpu.memory_space<vmem>>, vector<1x32xf32>
    %50 = vector.broadcast %49 : vector<1x32xf32> to vector<8x32xf32>
    %51 = arith.addf %48, %50 : vector<8x32xf32>
    %52 = arith.truncf %51 : vector<8x32xf32> to vector<8x32xbf16>
    %c0_25 = arith.constant 0 : index
    %c0_26 = arith.constant 0 : index
    %53 = vector.load %arg10[%c0_25, %c0_26] : memref<32x64xbf16, #tpu.memory_space<vmem>>, vector<32x64xbf16>
    %cst_27 = arith.constant dense<0.000000e+00> : vector<8x64xf32>
    %54 = tpu.matmul %52, %53, %cst_27 {dimension_numbers = #tpu.dot_dimension_numbers<[1], [0], [0], [1], [0, 0, 1, 1], [], []>} : vector<8x32xbf16>, vector<32x64xbf16>, vector<8x64xf32> -> vector<8x64xf32>
    %c0_28 = arith.constant 0 : index
    %c0_29 = arith.constant 0 : index
    %55 = vector.load %arg11[%c0_28, %c0_29] : memref<1x64xf32, #tpu.memory_space<vmem>>, vector<1x64xf32>
    %56 = vector.broadcast %55 : vector<1x64xf32> to vector<8x64xf32>
    %57 = arith.addf %54, %56 : vector<8x64xf32>
    %c0_30 = arith.constant 0 : index
    %58 = memref.load %arg12[%c0_30] : memref<1xf32, #tpu.memory_space<smem>>
    %cst_31 = arith.constant 0.000000e+00 : f32
    %59 = vector.broadcast %cst_31 : f32 to vector<8x64xf32>
    %60 = arith.cmpf oge, %57, %59 : vector<8x64xf32>
    %61 = vector.broadcast %58 : f32 to vector<8x64xf32>
    %62 = arith.mulf %61, %57 : vector<8x64xf32>
    %63 = arith.select %60, %57, %62 : vector<8x64xi1>, vector<8x64xf32>
    %64 = arith.truncf %63 : vector<8x64xf32> to vector<8x64xbf16>
    %c0_32 = arith.constant 0 : index
    %c0_33 = arith.constant 0 : index
    %65 = vector.load %arg13[%c0_32, %c0_33] : memref<64x32xbf16, #tpu.memory_space<vmem>>, vector<64x32xbf16>
    %cst_34 = arith.constant dense<0.000000e+00> : vector<8x32xf32>
    %66 = tpu.matmul %64, %65, %cst_34 {dimension_numbers = #tpu.dot_dimension_numbers<[1], [0], [0], [1], [0, 0, 1, 1], [], []>} : vector<8x64xbf16>, vector<64x32xbf16>, vector<8x32xf32> -> vector<8x32xf32>
    %c0_35 = arith.constant 0 : index
    %c0_36 = arith.constant 0 : index
    %67 = vector.load %arg14[%c0_35, %c0_36] : memref<1x32xf32, #tpu.memory_space<vmem>>, vector<1x32xf32>
    %68 = vector.broadcast %67 : vector<1x32xf32> to vector<8x32xf32>
    %69 = arith.addf %66, %68 : vector<8x32xf32>
    %70 = vector.shape_cast %69 : vector<8x32xf32> to vector<1x8x32xf32>
    %c0_37 = arith.constant 0 : index
    %c0_38 = arith.constant 0 : index
    %c0_39 = arith.constant 0 : index
    %71 = vector.load %arg15[%c0_37, %c0_38, %c0_39] : memref<1x8x32xf32, #tpu.memory_space<vmem>>, vector<1x8x32xf32>
    tpu.vector_store %arg15[%c0_37, %c0_38, %c0_39], %70 {strides = array<i32>} : memref<1x8x32xf32, #tpu.memory_space<vmem>>, vector<1x8x32xf32>,
    return
  }
  func.func @transform_0(%arg0: i32) -> (i32, i32, i32) {
    %c0_i32 = arith.constant 0 : i32
    %c0_i32_0 = arith.constant 0 : i32
    %c0_i32_1 = arith.constant 0 : i32
    return %arg0, %c0_i32, %c0_i32_0 : i32, i32, i32
  }
  func.func @transform_1(%arg0: i32) -> (i32, i32) {
    %c0_i32 = arith.constant 0 : i32
    %c0_i32_0 = arith.constant 0 : i32
    %c0_i32_1 = arith.constant 0 : i32
    return %c0_i32, %c0_i32_0 : i32, i32
  }
  func.func @transform_2(%arg0: i32) -> (i32, i32) {
    %c0_i32 = arith.constant 0 : i32
    %c0_i32_0 = arith.constant 0 : i32
    %c0_i32_1 = arith.constant 0 : i32
    return %c0_i32, %c0_i32_0 : i32, i32
  }
  func.func @transform_3(%arg0: i32) -> (i32, i32) {
    %c0_i32 = arith.constant 0 : i32
    %c0_i32_0 = arith.constant 0 : i32
    %c0_i32_1 = arith.constant 0 : i32
    return %c0_i32, %c0_i32_0 : i32, i32
  }
  func.func @transform_4(%arg0: i32) -> (i32, i32) {
    %c0_i32 = arith.constant 0 : i32
    %c0_i32_0 = arith.constant 0 : i32
    %c0_i32_1 = arith.constant 0 : i32
    return %c0_i32, %c0_i32_0 : i32, i32
  }
  func.func @transform_5(%arg0: i32) -> (i32, i32) {
    %c0_i32 = arith.constant 0 : i32
    %c0_i32_0 = arith.constant 0 : i32
    %c0_i32_1 = arith.constant 0 : i32
    return %c0_i32, %c0_i32_0 : i32, i32
  }
  func.func @transform_6(%arg0: i32) -> (i32, i32) {
    %c0_i32 = arith.constant 0 : i32
    %c0_i32_0 = arith.constant 0 : i32
    %c0_i32_1 = arith.constant 0 : i32
    return %c0_i32, %c0_i32_0 : i32, i32
  }
  func.func @transform_7(%arg0: i32) -> (i32, i32) {
    %c0_i32 = arith.constant 0 : i32
    %c0_i32_0 = arith.constant 0 : i32
    %c0_i32_1 = arith.constant 0 : i32
    return %c0_i32, %c0_i32_0 : i32, i32
  }
  func.func @transform_8(%arg0: i32) -> (i32, i32) {
    %c0_i32 = arith.constant 0 : i32
    %c0_i32_0 = arith.constant 0 : i32
    %c0_i32_1 = arith.constant 0 : i32
    return %c0_i32, %c0_i32_0 : i32, i32
  }
  func.func @transform_9(%arg0: i32) -> (i32, i32) {
    %c0_i32 = arith.constant 0 : i32
    %c0_i32_0 = arith.constant 0 : i32
    %c0_i32_1 = arith.constant 0 : i32
    return %c0_i32, %c0_i32_0 : i32, i32
  }
  func.func @transform_10(%arg0: i32) -> (i32, i32) {
    %c0_i32 = arith.constant 0 : i32
    %c0_i32_0 = arith.constant 0 : i32
    %c0_i32_1 = arith.constant 0 : i32
    return %c0_i32, %c0_i32_0 : i32, i32
  }
  func.func @transform_11(%arg0: i32) -> i32 {
    %c0_i32 = arith.constant 0 : i32
    %c0_i32_0 = arith.constant 0 : i32
    return %c0_i32 : i32
  }
  func.func @transform_12(%arg0: i32) -> (i32, i32) {
    %c0_i32 = arith.constant 0 : i32
    %c0_i32_0 = arith.constant 0 : i32
    %c0_i32_1 = arith.constant 0 : i32
    return %c0_i32, %c0_i32_0 : i32, i32
  }
  func.func @transform_13(%arg0: i32) -> (i32, i32) {
    %c0_i32 = arith.constant 0 : i32
    %c0_i32_0 = arith.constant 0 : i32
    %c0_i32_1 = arith.constant 0 : i32
    return %c0_i32, %c0_i32_0 : i32, i32
  }
  func.func @transform_14(%arg0: i32) -> (i32, i32, i32) {
    %c0_i32 = arith.constant 0 : i32
    %c0_i32_0 = arith.constant 0 : i32
    %c0_i32_1 = arith.constant 0 : i32
    return %arg0, %c0_i32, %c0_i32_0 : i32, i32, i32
  }
}

</mosaic_0001>

<bundles_post_ra>
// kernel: tpu_custom_call.1
= control target key start
LH: loop header
LB: loop body
LE: loop exit
PB: predicated region body
PF: predicated region fallthrough
CT: control target
= control target key end

     0   :  { %s3902_s0 = inlined_call_operand.hbm [shape: f32[2,8,32], index: 0, kind: input, shape index: {}]   ;;  %s3903_s1 = inlined_call_operand.hbm [shape: bf16[32,32], index: 1, kind: input, shape index: {}]   ;;  %s3904_s2 = inlined_call_operand.hbm [shape: f32[1,32], index: 2, kind: input, shape index: {}]   ;;  %s3905_s3 = inlined_call_operand.hbm [shape: bf16[32,32], index: 3, kind: input, shape index: {}]   ;;  %s3906_s4 = inlined_call_operand.hbm [shape: f32[1,32], index: 4, kind: input, shape index: {}]   ;;  %s3907_s5 = inlined_call_operand.hbm [shape: bf16[32,32], index: 5, kind: input, shape index: {}]   ;;  %s3908_s6 = inlined_call_operand.hbm [shape: f32[1,32], index: 6, kind: input, shape index: {}]   ;;  %s3909_s7 = inlined_call_operand.hbm [shape: bf16[32,32], index: 7, kind: input, shape index: {}]   ;;  %s3910_s8 = inlined_call_operand.hbm [shape: f32[1,32], index: 8, kind: input, shape index: {}]   ;;  %s3911_s9 = inlined_call_operand.hbm [shape: bf16[32,64], index: 9, kind: input, shape index: {}]   ;;  %s3912_s10 = inlined_call_operand.hbm [shape: f32[1,64], index: 10, kind: input, shape index: {}]   ;;  %s3913_s11 = inlined_call_operand.<no memory space> [shape: f32[1], index: 11, kind: input, shape index: {}]   ;;  %s3914_s12 = inlined_call_operand.hbm [shape: bf16[64,32], index: 12, kind: input, shape index: {}]   ;;  %s3915_s13 = inlined_call_operand.hbm [shape: f32[1,32], index: 13, kind: input, shape index: {}]   ;;  %s3916_s14 = inlined_call_operand.hbm [shape: f32[2,8,32], index: 14, kind: output, shape index: {}]  }
   0x1   :  { %3926 = sst [smem:[#allocation36_spill]] %s3902_s0 }
   0x2   :  { %3927 = sst [smem:[#allocation37_spill]] %s3903_s1 }
   0x3   :  { %3928 = sst [smem:[#allocation38_spill]] %s3904_s2 }
   0x4   :  { %3929 = sst [smem:[#allocation39_spill]] %s3916_s14 }
   0x5   :  { %19 = sst [smem:[#allocation2]] %s3913_s11 }
   0x6   :  { %20 = vsyncpa [#allocation4], 0 }
   0x7   :  { %22 = vsyncpa [#allocation4 + $0x1], 0 }
   0x8   :  { %23 = vsyncpa [#allocation7], 0 }
   0x9   :  { %24 = vsyncpa [#allocation10], 0 }
   0xa   :  { %25 = vsyncpa [#allocation13], 0 }
   0xb   :  { %26 = vsyncpa [#allocation16], 0 }
   0xc   :  { %27 = vsyncpa [#allocation19], 0 }
   0xd   :  { %28 = vsyncpa [#allocation22], 0 }
   0xe   :  { %29 = vsyncpa [#allocation5], 0 }
   0xf   :  { %31 = vsyncpa [#allocation5 + $0x1], 0  ;;  %s3270_s15 = smov 0   ;;  %s3272_s16 = smov 0  }
  0x10   :  { %s3274_s17 = smov 0   ;;  %s3276_s18 = smov 0  }
  0x11 LB: > { %3930 = sst [smem:[#allocation33_spill]] %s3152_s15  ;;  %s3166_s11 = smov [#allocation6]   ;;  %s3164_s18 = sphi %s3276_s18, %s3970_s18   ;;  %s3160_s17 = sphi %s3274_s17, %s3969_s17   ;;  %s3156_s16 = sphi %s3272_s16, %s3968_s16   ;;  %s3152_s15 = sphi %s3270_s15, %s3967_s15  }
  0x12   : > { %s379_s19 = sshll.u32 %s3166_s11, 4  ;;  %s3291_s20 = sadd.s32 4294967295, %s3164_s18   ;;  %s3296_s19 = int_to_ptr.vmem [resolvable:$true] %s379_s19 }
  0x13   : > { %3931 = sst [smem:[#allocation34_spill]] %s3291_s20  ;;  %p2286_p0 = scmp.ge.s32.totalorder %s3164_s18, 1 }
  0x14   : > { %p3923_p1 = scmp.eq.s32.totalorder %s3291_s20, 0  ;;  %p367_p2 = scmp.lt.s32.totalorder %s3164_s18, 3 }
  0x15   : > { %s3167_s22 = smov [#allocation9]   ;;  %s3168_s25 = smov [#allocation12]  }
  0x16   : > { %p3298_p3 = pnand %p2286_p0, %p367_p2  ;;  %s403_s23 = sshll.u32 %s3167_s22, 4  ;;  %s3311_s23 = int_to_ptr.vmem [resolvable:$true] %s403_s23 }
  0x17   : > { %s427_s26 = sshll.u32 %s3168_s25, 4  ;;  %s3935_s1 = sld [smem:[#allocation37_spill]]  ;;  %s3313_s26 = int_to_ptr.vmem [resolvable:$true] %s427_s26 }
  0x18   : > { %s3932_s21 = scalar_select %p3298_p3, 1, 0 }
  0x19   : > { %p2551_p5 = pneg %p3298_p3 }
  0x1a   : > { %3933 = sst [smem:[#allocation35_spill]] %s3932_s21 }
  0x1b   : > { %p3307_p6 = pnand %p2551_p5, %p3923_p1 }
  0x1d   : > { %s2708_s29 = scalar_lea.hbm %s3935_s1, 256  ;;  %p3323_p8 = pneg %p3307_p6 }
  0x1e   : > { %p2709_p7 = scmp.ne.s32.totalorder %s3935_s1, %s2708_s29  ;;  %p2715_p11 = scmp.lt.u32.totalorder %s2708_s29, %s3935_s1 }
  0x20   : > { %p2711_p9 = pnand %p3323_p8, %p2709_p7 }
  0x22   : > { %p2712_p10 = pneg %p2711_p9 }
  0x24   : > { %p2717_p12 = pnand %p2715_p11, %p2712_p10 }
  0x26   : > { %2720 = shalt.err (!%p2717_p12)
}
  0x27   : > { %s2721_s27 = scalar_lea.vmem %s3296_s19, 256  ;;  %p2729_p5 = scmp.lt.s32.totalorder %s3296_s19, %s3296_s19 }
  0x28   : > { %p2722_p13 = scmp.ne.s32.totalorder %s3296_s19, %s2721_s27  ;;  %p2730_p4 = scmp.lt.s32.totalorder %s2721_s27, %s2721_s27 }
  0x2a   : > { %p2724_p0 = pnand %p2722_p13, %p3323_p8  ;;  %p2731_p7 = por %p2730_p4, %p2729_p5 }
  0x2c   : > { %p2725_p2 = pneg %p2724_p0 }
  0x2e   : > { %p2732_p9 = pnand %p2731_p7, %p2725_p2 }
  0x30   : > { %2735 = shalt.err (!%p2732_p9)
}
  0x31   : > { %s3169_s28 = smov 64   ;;  %s3170_s14 = smov 4  }
  0x32   : > { %2554 = dma.hbm_to_vmem [thread:$0]  (!%p3307_p6), %s3935_s1, 256, %s3296_s19, [#allocation7], %s3169_s28, %s3169_s28, %s3170_s14  }
  0x33   : > { %s2736_s27 = scalar_lea.hbm %s3905_s3, 256 }
  0x34   : > { %p2737_p4 = scmp.ne.s32.totalorder %s3905_s3, %s2736_s27  ;;  %p2743_p12 = scmp.lt.u32.totalorder %s2736_s27, %s3905_s3 }
  0x36   : > { %p2739_p10 = pnand %p2737_p4, %p3323_p8 }
  0x38   : > { %p2740_p11 = pneg %p2739_p10 }
  0x3a   : > { %p2745_p13 = pnand %p2743_p12, %p2740_p11 }
  0x3c   : > { %2748 = shalt.err (!%p2745_p13)
}
  0x3d   : > { %s2749_s19 = scalar_lea.vmem %s3311_s23, 256  ;;  %p2757_p7 = scmp.lt.s32.totalorder %s3311_s23, %s3311_s23 }
  0x3e   : > { %p2750_p0 = scmp.ne.s32.totalorder %s3311_s23, %s2749_s19  ;;  %p2758_p9 = scmp.lt.s32.totalorder %s2749_s19, %s2749_s19 }
  0x40   : > { %p2752_p2 = pnand %p2750_p0, %p3323_p8  ;;  %p2759_p4 = por %p2758_p9, %p2757_p7 }
  0x42   : > { %p2753_p5 = pneg %p2752_p2 }
  0x44   : > { %p2760_p10 = pnand %p2759_p4, %p2753_p5 }
  0x46   : > { %2763 = shalt.err (!%p2760_p10)
}
  0x47   : > { %2560 = dma.hbm_to_vmem [thread:$0]  (!%p3307_p6), %s3905_s3, 256, %s3311_s23, [#allocation10], %s3169_s28, %s3169_s28, %s3170_s14  }
  0x48   : > { %s2764_s29 = scalar_lea.hbm %s3907_s5, 256 }
  0x49   : > { %p2765_p11 = scmp.ne.s32.totalorder %s3907_s5, %s2764_s29  ;;  %p2771_p0 = scmp.lt.u32.totalorder %s2764_s29, %s3907_s5 }
  0x4b   : > { %p2767_p12 = pnand %p2765_p11, %p3323_p8 }
  0x4d   : > { %p2768_p13 = pneg %p2767_p12 }
  0x4f   : > { %p2773_p2 = pnand %p2771_p0, %p2768_p13 }
  0x51   : > { %2776 = shalt.err (!%p2773_p2)
}
  0x52   : > { %s2777_s23 = scalar_lea.vmem %s3313_s26, 256  ;;  %p2785_p4 = scmp.lt.s32.totalorder %s3313_s26, %s3313_s26 }
  0x53   : > { %p2778_p5 = scmp.ne.s32.totalorder %s3313_s26, %s2777_s23  ;;  %p2786_p10 = scmp.lt.s32.totalorder %s2777_s23, %s2777_s23 }
  0x55   : > { %p2780_p7 = pnand %p2778_p5, %p3323_p8  ;;  %p2787_p11 = por %p2786_p10, %p2785_p4 }
  0x57   : > { %p2781_p9 = pneg %p2780_p7 }
  0x59   : > { %p2788_p12 = pnand %p2787_p11, %p2781_p9 }
  0x5b   : > { %2791 = shalt.err (!%p2788_p12)
}
  0x5c   : > { %2566 = dma.hbm_to_vmem [thread:$0]  (!%p3307_p6), %s3907_s5, 256, %s3313_s26, [#allocation13], %s3169_s28, %s3169_s28, %s3170_s14  }
  0x5d   : > { %s3171_s15 = smov [#allocation15]   ;;  %s3172_s21 = smov [#allocation18]  }
  0x5e   : > { %s451_s20 = sshll.u32 %s3171_s15, 4  ;;  %s475_s29 = sshll.u32 %s3172_s21, 4  ;;  %s452_s20 = int_to_ptr.vmem [resolvable:$true] %s451_s20  ;;  %s476_s29 = int_to_ptr.vmem [resolvable:$true] %s475_s29 }
  0x5f   : > { %s2792_s25 = scalar_lea.hbm %s3909_s7, 256 }
  0x60   : > { %p2793_p13 = scmp.ne.s32.totalorder %s3909_s7, %s2792_s25  ;;  %p2799_p5 = scmp.lt.u32.totalorder %s2792_s25, %s3909_s7 }
  0x62   : > { %p2795_p0 = pnand %p2793_p13, %p3323_p8 }
  0x64   : > { %p2796_p2 = pneg %p2795_p0 }
  0x66   : > { %p2801_p7 = pnand %p2799_p5, %p2796_p2 }
  0x68   : > { %2804 = shalt.err (!%p2801_p7)
}
  0x69   : > { %s2805_s26 = scalar_lea.vmem %s452_s20, 256  ;;  %p2813_p11 = scmp.lt.s32.totalorder %s452_s20, %s452_s20 }
  0x6a   : > { %p2806_p9 = scmp.ne.s32.totalorder %s452_s20, %s2805_s26  ;;  %p2814_p12 = scmp.lt.s32.totalorder %s2805_s26, %s2805_s26 }
  0x6c   : > { %p2808_p4 = pnand %p2806_p9, %p3323_p8  ;;  %p2815_p1 = por %p2814_p12, %p2813_p11 }
  0x6e   : > { %p2809_p10 = pneg %p2808_p4 }
  0x70   : > { %p2816_p3 = pnand %p2815_p1, %p2809_p10 }
  0x72   : > { %2819 = shalt.err (!%p2816_p3)
}
  0x73   : > { %2572 = dma.hbm_to_vmem [thread:$0]  (!%p3307_p6), %s3909_s7, 256, %s452_s20, [#allocation16], %s3169_s28, %s3169_s28, %s3170_s14  }
  0x74   : > { %s2820_s30 = scalar_lea.hbm %s3911_s9, 256 }
  0x75   : > { %p2821_p1 = scmp.ne.s32.totalorder %s3911_s9, %s2820_s30  ;;  %p2827_p0 = scmp.lt.u32.totalorder %s2820_s30, %s3911_s9 }
  0x77   : > { %p2823_p3 = pnand %p2821_p1, %p3323_p8 }
  0x79   : > { %p2824_p13 = pneg %p2823_p3 }
  0x7b   : > { %p2829_p2 = pnand %p2827_p0, %p2824_p13 }
  0x7d   : > { %2832 = shalt.err (!%p2829_p2)
}
  0x7e   : > { %s2833_s19 = scalar_lea.vmem %s476_s29, 256  ;;  %p2841_p4 = scmp.lt.s32.totalorder %s476_s29, %s476_s29 }
  0x7f   : > { %p2834_p5 = scmp.ne.s32.totalorder %s476_s29, %s2833_s19  ;;  %p2842_p10 = scmp.lt.s32.totalorder %s2833_s19, %s2833_s19 }
  0x81   : > { %p2836_p7 = pnand %p2834_p5, %p3323_p8  ;;  %p2843_p11 = por %p2842_p10, %p2841_p4 }
  0x83   : > { %p2837_p9 = pneg %p2836_p7 }
  0x85   : > { %p2844_p12 = pnand %p2843_p11, %p2837_p9 }
  0x87   : > { %2847 = shalt.err (!%p2844_p12)
}
  0x88   : > { %2578 = dma.hbm_to_vmem [thread:$0]  (!%p3307_p6), %s3911_s9, 256, %s476_s29, [#allocation19], %s3169_s28, %s3169_s28, %s3170_s14  }
  0x89   : > { %s3173_s1 = smov [#allocation21]   ;;  %s3174_s15 = smov [#allocation8]  }
  0x8a   : > { %s502_s0 = sshll.u32 %s3173_s1, 4  ;;  %s393_s21 = sshll.u32 %s3174_s15, 4  ;;  %s503_s0 = int_to_ptr.vmem [resolvable:$true] %s502_s0  ;;  %s394_s21 = int_to_ptr.vmem [resolvable:$true] %s393_s21 }
  0x8b   : > { %s2848_s25 = scalar_lea.hbm %s3914_s12, 512 }
  0x8c   : > { %p2849_p1 = scmp.ne.s32.totalorder %s3914_s12, %s2848_s25  ;;  %p2855_p0 = scmp.lt.u32.totalorder %s2848_s25, %s3914_s12 }
  0x8e   : > { %p2851_p3 = pnand %p2849_p1, %p3323_p8 }
  0x90   : > { %p2852_p13 = pneg %p2851_p3 }
  0x92   : > { %p2857_p2 = pnand %p2855_p0, %p2852_p13 }
  0x94   : > { %2860 = shalt.err (!%p2857_p2)
}
  0x95   : > { %s2861_s29 = scalar_lea.vmem %s503_s0, 512  ;;  %p2869_p4 = scmp.lt.s32.totalorder %s503_s0, %s503_s0 }
  0x96   : > { %p2862_p5 = scmp.ne.s32.totalorder %s503_s0, %s2861_s29  ;;  %p2870_p10 = scmp.lt.s32.totalorder %s2861_s29, %s2861_s29 }
  0x98   : > { %p2864_p7 = pnand %p2862_p5, %p3323_p8  ;;  %p2871_p11 = por %p2870_p10, %p2869_p4 }
  0x9a   : > { %p2865_p9 = pneg %p2864_p7 }
  0x9c   : > { %p2872_p12 = pnand %p2871_p11, %p2865_p9 }
  0x9e   : > { %2875 = shalt.err (!%p2872_p12)
}
  0x9f   : > { %2584 = dma.hbm_to_vmem [thread:$0]  (!%p3307_p6), %s3914_s12, 512, %s503_s0, [#allocation22], %s3169_s28, %s3169_s28, %s3170_s14  }
  0xa0   : > { %s3937_s2 = sld [smem:[#allocation38_spill]] }
  0xa6   : > { %s2876_s11 = scalar_lea.hbm %s3937_s2, 16 }
  0xa7   : > { %p2877_p1 = scmp.ne.s32.totalorder %s3937_s2, %s2876_s11  ;;  %p2883_p0 = scmp.lt.u32.totalorder %s2876_s11, %s3937_s2 }
  0xa9   : > { %p2879_p3 = pnand %p2877_p1, %p3323_p8 }
  0xab   : > { %p2880_p13 = pneg %p2879_p3 }
  0xad   : > { %p2885_p2 = pnand %p2883_p0, %p2880_p13 }
  0xaf   : > { %2888 = shalt.err (!%p2885_p2)
}
  0xb0   : > { %s2889_s20 = scalar_lea.vmem %s394_s21, 16  ;;  %s2896_s28 = scalar_lea.vmem %s394_s21, 32 }
  0xb1   : > { %p2890_p5 = scmp.ne.s32.totalorder %s394_s21, %s2889_s20  ;;  %p2897_p4 = scmp.lt.s32.totalorder %s394_s21, %s394_s21 }
  0xb2   : > { %p2898_p10 = scmp.lt.s32.totalorder %s2896_s28, %s2889_s20 }
  0xb3   : > { %p2892_p7 = pnand %p2890_p5, %p3323_p8 }
  0xb4   : > { %p2899_p11 = por %p2898_p10, %p2897_p4 }
  0xb5   : > { %p2893_p9 = pneg %p2892_p7 }
  0xb7   : > { %p2900_p12 = pnand %p2899_p11, %p2893_p9 }
  0xb9   : > { %2903 = shalt.err (!%p2900_p12)
}
  0xba   : > { %2557 = dma.hbm_to_vmem [thread:$0]  (!%p3307_p6), %s3937_s2, 16, %s394_s21, [#allocation7]  }
  0xbb   : > { %s3175_s29 = smov [#allocation11]   ;;  %s3176_s1 = smov [#allocation14]  }
  0xbc   : > { %s417_s26 = sshll.u32 %s3175_s29, 4  ;;  %s441_s15 = sshll.u32 %s3176_s1, 4  ;;  %s418_s26 = int_to_ptr.vmem [resolvable:$true] %s417_s26  ;;  %s442_s15 = int_to_ptr.vmem [resolvable:$true] %s441_s15 }
  0xbd   : > { %s2904_s25 = scalar_lea.hbm %s3906_s4, 16 }
  0xbe   : > { %p2905_p1 = scmp.ne.s32.totalorder %s3906_s4, %s2904_s25  ;;  %p2911_p0 = scmp.lt.u32.totalorder %s2904_s25, %s3906_s4 }
  0xc0   : > { %p2907_p3 = pnand %p2905_p1, %p3323_p8 }
  0xc2   : > { %p2908_p13 = pneg %p2907_p3 }
  0xc4   : > { %p2913_p2 = pnand %p2911_p0, %p2908_p13 }
  0xc6   : > { %2916 = shalt.err (!%p2913_p2)
}
  0xc7   : > { %s2917_s21 = scalar_lea.vmem %s418_s26, 16  ;;  %s2924_s28 = scalar_lea.vmem %s418_s26, 32 }
  0xc8   : > { %p2918_p5 = scmp.ne.s32.totalorder %s418_s26, %s2917_s21  ;;  %p2925_p4 = scmp.lt.s32.totalorder %s418_s26, %s418_s26 }
  0xc9   : > { %p2926_p10 = scmp.lt.s32.totalorder %s2924_s28, %s2917_s21 }
  0xca   : > { %p2920_p7 = pnand %p2918_p5, %p3323_p8 }
  0xcb   : > { %p2927_p11 = por %p2926_p10, %p2925_p4 }
  0xcc   : > { %p2921_p9 = pneg %p2920_p7 }
  0xce   : > { %p2928_p12 = pnand %p2927_p11, %p2921_p9 }
  0xd0   : > { %2931 = shalt.err (!%p2928_p12)
}
  0xd1   : > { %2563 = dma.hbm_to_vmem [thread:$0]  (!%p3307_p6), %s3906_s4, 16, %s418_s26, [#allocation10]  }
  0xd2   : > { %s2932_s30 = scalar_lea.hbm %s3908_s6, 16 }
  0xd3   : > { %p2933_p1 = scmp.ne.s32.totalorder %s3908_s6, %s2932_s30  ;;  %p2939_p0 = scmp.lt.u32.totalorder %s2932_s30, %s3908_s6 }
  0xd5   : > { %p2935_p3 = pnand %p2933_p1, %p3323_p8 }
  0xd7   : > { %p2936_p13 = pneg %p2935_p3 }
  0xd9   : > { %p2941_p2 = pnand %p2939_p0, %p2936_p13 }
  0xdb   : > { %2944 = shalt.err (!%p2941_p2)
}
  0xdc   : > { %s2945_s19 = scalar_lea.vmem %s442_s15, 16  ;;  %s2952_s26 = scalar_lea.vmem %s442_s15, 32 }
  0xdd   : > { %p2946_p5 = scmp.ne.s32.totalorder %s442_s15, %s2945_s19  ;;  %p2953_p4 = scmp.lt.s32.totalorder %s442_s15, %s442_s15 }
  0xde   : > { %p2954_p10 = scmp.lt.s32.totalorder %s2952_s26, %s2945_s19 }
  0xdf   : > { %p2948_p7 = pnand %p2946_p5, %p3323_p8 }
  0xe0   : > { %p2955_p11 = por %p2954_p10, %p2953_p4 }
  0xe1   : > { %p2949_p9 = pneg %p2948_p7 }
  0xe3   : > { %p2956_p12 = pnand %p2955_p11, %p2949_p9 }
  0xe5   : > { %2959 = shalt.err (!%p2956_p12)
}
  0xe6   : > { %2569 = dma.hbm_to_vmem [thread:$0]  (!%p3307_p6), %s3908_s6, 16, %s442_s15, [#allocation13]  }
  0xe7   : > { %s3177_s28 = smov [#allocation17]   ;;  %s3178_s0 = smov [#allocation20]  }
  0xe8   : > { %s465_s14 = sshll.u32 %s3177_s28, 4  ;;  %s489_s29 = sshll.u32 %s3178_s0, 4  ;;  %s466_s14 = int_to_ptr.vmem [resolvable:$true] %s465_s14  ;;  %s490_s29 = int_to_ptr.vmem [resolvable:$true] %s489_s29 }
  0xe9   : > { %s2960_s11 = scalar_lea.hbm %s3910_s8, 16 }
  0xea   : > { %p2961_p1 = scmp.ne.s32.totalorder %s3910_s8, %s2960_s11  ;;  %p2967_p0 = scmp.lt.u32.totalorder %s2960_s11, %s3910_s8 }
  0xec   : > { %p2963_p3 = pnand %p2961_p1, %p3323_p8 }
  0xee   : > { %p2964_p13 = pneg %p2963_p3 }
  0xf0   : > { %p2969_p2 = pnand %p2967_p0, %p2964_p13 }
  0xf2   : > { %2972 = shalt.err (!%p2969_p2)
}
  0xf3   : > { %s2973_s15 = scalar_lea.vmem %s466_s14, 16  ;;  %s2980_s26 = scalar_lea.vmem %s466_s14, 32 }
  0xf4   : > { %p2974_p5 = scmp.ne.s32.totalorder %s466_s14, %s2973_s15  ;;  %p2981_p4 = scmp.lt.s32.totalorder %s466_s14, %s466_s14 }
  0xf5   : > { %p2982_p10 = scmp.lt.s32.totalorder %s2980_s26, %s2973_s15 }
  0xf6   : > { %p2976_p7 = pnand %p2974_p5, %p3323_p8 }
  0xf7   : > { %p2983_p11 = por %p2982_p10, %p2981_p4 }
  0xf8   : > { %p2977_p9 = pneg %p2976_p7 }
  0xfa   : > { %p2984_p12 = pnand %p2983_p11, %p2977_p9 }
  0xfc   : > { %2987 = shalt.err (!%p2984_p12)
}
  0xfd   : > { %2575 = dma.hbm_to_vmem [thread:$0]  (!%p3307_p6), %s3910_s8, 16, %s466_s14, [#allocation16]  }
  0xfe   : > { %s2988_s1 = scalar_lea.hbm %s3912_s10, 16 }
  0xff   : > { %p2989_p1 = scmp.ne.s32.totalorder %s3912_s10, %s2988_s1  ;;  %p2995_p0 = scmp.lt.u32.totalorder %s2988_s1, %s3912_s10 }
 0x101   : > { %p2991_p3 = pnand %p2989_p1, %p3323_p8 }
 0x103   : > { %p2992_p13 = pneg %p2991_p3 }
 0x105   : > { %p2997_p2 = pnand %p2995_p0, %p2992_p13 }
 0x107   : > { %3000 = shalt.err (!%p2997_p2)
}
 0x108   : > { %s3001_s23 = scalar_lea.vmem %s490_s29, 16  ;;  %s3008_s14 = scalar_lea.vmem %s490_s29, 32 }
 0x109   : > { %p3002_p5 = scmp.ne.s32.totalorder %s490_s29, %s3001_s23  ;;  %p3009_p4 = scmp.lt.s32.totalorder %s490_s29, %s490_s29 }
 0x10a   : > { %p3010_p10 = scmp.lt.s32.totalorder %s3008_s14, %s3001_s23 }
 0x10b   : > { %p3004_p7 = pnand %p3002_p5, %p3323_p8 }
 0x10c   : > { %p3011_p11 = por %p3010_p10, %p3009_p4 }
 0x10d   : > { %p3005_p9 = pneg %p3004_p7 }
 0x10f   : > { %p3012_p12 = pnand %p3011_p11, %p3005_p9 }
 0x111   : > { %3015 = shalt.err (!%p3012_p12)
}
 0x112   : > { %2581 = dma.hbm_to_vmem [thread:$0]  (!%p3307_p6), %s3912_s10, 16, %s490_s29, [#allocation19]  }
 0x113   : > { %s3179_s26 = smov [#allocation23]   ;;  %s3016_s0 = scalar_lea.hbm %s3915_s13, 16 }
 0x114   : > { %s516_s20 = sshll.u32 %s3179_s26, 4  ;;  %p3017_p1 = scmp.ne.s32.totalorder %s3915_s13, %s3016_s0  ;;  %s517_s20 = int_to_ptr.vmem [resolvable:$true] %s516_s20 }
 0x115   : > { %p3023_p0 = scmp.lt.u32.totalorder %s3016_s0, %s3915_s13 }
 0x116   : > { %p3019_p3 = pnand %p3017_p1, %p3323_p8 }
 0x118   : > { %p3020_p13 = pneg %p3019_p3 }
 0x11a   : > { %p3025_p2 = pnand %p3023_p0, %p3020_p13 }
 0x11c   : > { %3028 = shalt.err (!%p3025_p2)
}
 0x11d   : > { %s3029_s29 = scalar_lea.vmem %s517_s20, 16  ;;  %s3036_s27 = scalar_lea.vmem %s517_s20, 32 }
 0x11e   : > { %p3030_p5 = scmp.ne.s32.totalorder %s517_s20, %s3029_s29  ;;  %p3037_p4 = scmp.lt.s32.totalorder %s517_s20, %s517_s20 }
 0x11f   : > { %p3038_p10 = scmp.lt.s32.totalorder %s3036_s27, %s3029_s29 }
 0x120   : > { %p3032_p7 = pnand %p3030_p5, %p3323_p8 }
 0x121   : > { %p3039_p11 = por %p3038_p10, %p3037_p4 }
 0x122   : > { %p3033_p9 = pneg %p3032_p7 }
 0x124   : > { %p3040_p12 = pnand %p3039_p11, %p3033_p9 }
 0x126   : > { %3043 = shalt.err (!%p3040_p12)
}
 0x127   : > { %s3938_s22 = sld [smem:[#allocation33_spill]]  ;;  %s3939_s19 = sld [smem:[#allocation34_spill]] }
 0x128   : > { %2587 = dma.hbm_to_vmem [thread:$0]  (!%p3307_p6), %s3915_s13, 16, %s517_s20, [#allocation22]  }
 0x129   : > { %s2285_s15 = sadd.s32 4294967294, %s3164_s18   ;;  %s3572_s24 = sadd.s32 1, %s3164_s18  }
 0x12a   : > { %s41_s26 = ssub.s32 %s3164_s18, %s3572_s24  ;;  %s44_s21 = sadd.s32 1, %s3160_s17 }
 0x12b   : > { %p42_p8 = scmp.eq.s32.totalorder %s41_s26, 0  ;;  %p51_p1 = scmp.ne.s32.totalorder %s3160_s17, %s3156_s16 }
 0x12c   : > { %p52_p3 = scmp.eq.s32.totalorder %s3164_s18, 0  ;;  %p360_p7 = scmp.eq.s32.totalorder %s2285_s15, 1 }
 0x12d   : > { %p57_p13 = scmp.ne.s32.totalorder %s3156_s16, %s3938_s22  ;;  %p3941_p2 = scmp.eq.s32.totalorder %s3939_s19, 0 }
 0x12e   : > { %s3583_s28 = scalar_select %p42_p8, %s3160_s17, %s44_s21  }
 0x12f   : > { %p3585_p0 = por %p52_p3, %p51_p1  ;;  %p3591_p6 = por %p3941_p2, %p57_p13 }
 0x130   : > { %p354_p5 = scmp.eq.s32.totalorder %s3939_s19, 1  ;;  %p2608_p9 = scmp.lt.s32.totalorder %s3164_s18, 2 }
 0x131   : > { %s527_s1 = sand.u32 1, %s3160_s17   ;;  %p3602_p10 = por %p360_p7, %p57_p13 }
 0x132   : > { %p3598_p4 = por %p354_p5, %p51_p1  ;;  %s2300_s25 = sshll.u32 %s527_s1, 3 }
 0x133   : > { %s3944_s11 = scalar_select %p3602_p10, 1, 0 }
 0x134   : > { %s3943_s30 = scalar_select %p3598_p4, 1, 0 }
 0x135   : > { %s2301_s29 = sshll.u32 %s3164_s18, 7  ;;  %s3945_s14 = sld [smem:[#allocation36_spill]] }
 0x136   : > { %s531_s19 = scalar_lea.vmem [#allocation3], %s2300_s25  ;;  %p3616_p11 = pnand %p2608_p9, %p3585_p0 }
 0x137   : > { %s538_s15 = sshll.u32 %s531_s19, 4  ;;  %s528_s21 = scalar_lea.sflag [#allocation4], %s527_s1  ;;  %s3612_s15 = int_to_ptr.vmem [resolvable:$true] %s538_s15 }
 0x138   : > { %p3046_p8 = pneg %p3616_p11 }
 0x13b   : > { %s3610_s22 = scalar_lea.hbm %s3945_s14, %s2301_s29  ;;  %s3049_s27 = scalar_lea.hbm %s3945_s14, 256 }
 0x13c   : > { %s3044_s2 = scalar_lea.hbm %s3610_s22, 128  ;;  %p3050_p13 = scmp.lt.u32.totalorder %s3610_s22, %s3945_s14 }
 0x13d   : > { %p3045_p12 = scmp.ne.s32.totalorder %s3610_s22, %s3044_s2  ;;  %p3051_p0 = scmp.lt.u32.totalorder %s3049_s27, %s3044_s2 }
 0x13e   : > { %p3053_p5 = scmp.lt.u32.totalorder %s3044_s2, %s3610_s22 }
 0x13f   : > { %p3047_p1 = pnand %p3046_p8, %p3045_p12  ;;  %p3052_p2 = por %p3051_p0, %p3050_p13 }
 0x141   : > { %p3048_p3 = pneg %p3047_p1  ;;  %p3054_p7 = por %p3053_p5, %p3052_p2 }
 0x143   : > { %p3055_p9 = pnand %p3054_p7, %p3048_p3 }
 0x145   : > { %3058 = shalt.err (!%p3055_p9)
}
 0x146   : > { %s3059_s1 = scalar_lea.vmem %s3612_s15, 128  ;;  %s3180_s19 = smov [#allocation3]  }
 0x147   : > { %p3060_p12 = scmp.ne.s32.totalorder %s3612_s15, %s3059_s1  ;;  %s3064_s25 = sshll.u32 %s3180_s19, 4  ;;  %s3065_s25 = int_to_ptr.vmem [resolvable:$false] %s3064_s25 }
 0x148   : > { %s3066_s29 = scalar_lea.vmem %s3065_s25, 256  ;;  %p3067_p4 = scmp.lt.s32.totalorder %s3612_s15, %s3065_s25 }
 0x149   : > { %p3062_p1 = pnand %p3060_p12, %p3046_p8  ;;  %p3068_p13 = scmp.lt.s32.totalorder %s3066_s29, %s3059_s1 }
 0x14b   : > { %p3063_p10 = pneg %p3062_p1  ;;  %p3069_p0 = por %p3068_p13, %p3067_p4 }
 0x14d   : > { %p3070_p2 = pnand %p3069_p0, %p3063_p10 }
 0x14f   : > { %3073 = shalt.err (!%p3070_p2)
}
 0x150   : > { %2591 = dma.hbm_to_vmem [thread:$0]  (!%p3616_p11), %s3610_s22, 128, %s3612_s15, %s528_s21  }
 0x151   : > { %s3947_s2 = sld [smem:[#allocation35_spill]] }
 0x157   : > { %p3948_p3 = scmp.ne.s32.totalorder %s3947_s2, 0 }
 0x158   : > { %s3648_s27 = sand.u32 (!%p3948_p3), 1, %s3156_s16  }
 0x159   : > { %547 = sbr.rel (%p3948_p3) target bundleno = 2192 (0x890), region = 76  ;;  %s2303_s0 = sshll.u32 (!%p3948_p3), %s3648_s27, 3 }
 0x15a   : > { %s550_s23 = scalar_lea.sflag (!%p3948_p3), [#allocation4], %s3648_s27  ;;  %s553_s1 = scalar_lea.vmem (!%p3948_p3), [#allocation3], %s2303_s0 }
 0x160   : > { %3119 = dma.done.wait (%p3591_p6), %s550_s23, 128  }
 0x161   : > { %3121 = vsyncadd (%p3591_p6), %s550_s23, 4294967168  ;;  %s3949_s22 = sld [smem:[#allocation34_spill]] }
 0x167   : > { %p3950_p4 = scmp.eq.s32.totalorder %s3949_s22, 0 }
 0x169   : > { %3123 = dma.done.wait (%p3950_p4), [#allocation7], 272   ;;  %p3951_p10 = pmov %p3950_p4 }
 0x16a   : > { %p3952_p11 = pmov %p3950_p4 }
 0x16b   : > { %3125 = vsyncadd (%p3951_p10), [#allocation7], 4294967024 }
 0x16c   : > { %3127 = dma.done.wait (%p3952_p11), [#allocation10], 272   ;;  %p3953_p8 = pmov %p3950_p4 }
 0x16d   : > { %p3954_p5 = pmov %p3950_p4 }
 0x16e   : > { %3129 = vsyncadd (%p3953_p8), [#allocation10], 4294967024 }
 0x16f   : > { %3131 = dma.done.wait (%p3954_p5), [#allocation13], 272   ;;  %p3955_p7 = pmov %p3950_p4 }
 0x170   : > { %p3956_p6 = pmov %p3950_p4 }
 0x171   : > { %3133 = vsyncadd (%p3955_p7), [#allocation13], 4294967024 }
 0x172   : > { %3135 = dma.done.wait (%p3956_p6), [#allocation16], 272   ;;  %p3957_p9 = pmov %p3950_p4 }
 0x173   : > { %p3958_p12 = pmov %p3950_p4 }
 0x174   : > { %3137 = vsyncadd (%p3957_p9), [#allocation16], 4294967024 }
 0x175   : > { %3139 = dma.done.wait (%p3958_p12), [#allocation19], 272   ;;  %p3959_p1 = pmov %p3950_p4 }
 0x177   : > { %3141 = vsyncadd (%p3959_p1), [#allocation19], 4294967024  ;;  %p3960_p13 = pmov %p3959_p1 }
 0x178   : > { %p3961_p0 = pmov %p3959_p1 }
 0x179   : > { %3143 = dma.done.wait (%p3960_p13), [#allocation22], 528  }
 0x17a   : > { %3145 = vsyncadd (%p3961_p0), [#allocation22], 4294966768  ;;  %v3181_v0 = vmov 0.0   ;;  %vm3182_vm0 = vmmov 0   ;;  %v2678_v1 = vld [vmem:[#allocation9] sm:$0xff]   ;;  %v2679_v2 = vld [vmem:[#allocation6] sm:$0xff]   ;;  %v857_v29 = vlaneseq }
 0x17b   : > { %2407 = vmatprep.subr.bf16.mxu1 %v3181_v0  ;;  %2399 = vmatprep.subr.bf16.mxu0 %v3181_v0  ;;  %v2680_v3 = vld [vmem:[#allocation9 + $0x8] sm:$0xff]   ;;  %vm672_vm1 = vcmask 261120   ;;  %v2681_v5 = vld [vmem:[#allocation6 + $0x8] sm:$0xff]   ;;  %v2321_v9 = vld [vmem:[#allocation11] ss:$0 sm:$0xff]  ;;  %s3183_s20 = smov 104  }
 0x17c   : > { %2411 = vmatprep.mubr.msk.bf16.mxu1 %vm3182_vm0, %v3181_v0  ;;  %2403 = vmatprep.mubr.msk.bf16.mxu0 %vm3182_vm0, %v3181_v0  ;;  %v647_v4 = vld [vmem:[%s553_s1] sm:$0xff]  ;;  %v2682_v7 = vld [vmem:[#allocation12] sm:$0xff]   ;;  %s3184_s15 = smov 120   ;;  %s3185_s26 = smov 112   ;;  %v3186_v27 = vmov 1983009808  }
 0x17d   : > { %2408 = vmatpush3.bf16.msra.mxu1 %v2678_v1  ;;  %2400 = vmatpush3.bf16.msra.mxu0 %v2679_v2  ;;  %v648_v6 = vpack.c.bf16 %v647_v4, %v647_v4  ;;  %v2683_v8 = vld [vmem:[#allocation12 + $0x8] sm:$0xff]   ;;  %v2325_v21 = vld [vmem:[#allocation14] ss:$0 sm:$0xff]  ;;  %v855_v28 = vunpack.c.l.s4 %v3186_v27  ;;  %v3187_v30 = vmov 1934713408   ;;  %v858_v33 = vshrl.u32 %v857_v29, 7 }
 0x17e   : > { %2409 = vmatprep.subr.bf16.mxu1 %v3181_v0  ;;  %2401 = vmatprep.subr.bf16.mxu0 %v3181_v0  ;;  %v2317_v11 = vld [vmem:[#allocation8] ss:$0 sm:$0xff]  ;;  %v887_v31 = vunpack.c.l.s4 %v3187_v30  ;;  %vm1292_vm2 = vcmask 64512   ;;  %vm1520_vm3 = vcmask 1043456   ;;  %s3188_s21 = smov 16   ;;  %s3189_s19 = smov 8  }
 0x17f   : > { %v856_v32 = vunpack.c.0.s8 %v855_v28  ;;  %s3190_s25 = smov 24   ;;  %vm1859_vm4 = vcmask 130048   ;;  %vm1861_vm5 = vcmask 195584   ;;  %s1997_s29 = sld [smem:[#allocation2]]  ;;  %vm2042_vm7 = vcmask 523264  }
 0x180   : > { %v888_v36 = vunpack.c.0.s8 %v887_v31  ;;  %s2360_s2 = sshll.u32 %s3949_s22, 7  ;;  %s645_s23 = scalar_lea.vmem [#allocation24], %s2303_s0 }
 0x181   : > { %2410 = vmatpush3.bf16.msra.mxu1 %v2680_v3  ;;  %2402 = vmatpush3.bf16.msra.mxu0 %v2681_v5  ;;  %v3710_v37 = vsub.s32 %v856_v32, %v858_v33  ;;  %s2101_s1 = sshll.u32 %s645_s23, 4  ;;  %s2088_s22 = scalar_lea.sflag [#allocation5], %s3648_s27  ;;  %s3859_s1 = int_to_ptr.vmem [resolvable:$true] %s2101_s1 }
 0x182   : > { %2423 = vmatprep.subr.bf16.mxu1 %v3181_v0  ;;  %2415 = vmatprep.subr.bf16.mxu0 %v3181_v0  ;;  %v3712_v44 = vsub.s32 %v888_v36, %v858_v33  ;;  %s3074_s0 = scalar_lea.vmem %s3859_s1, 128  ;;  %p3963_p3 = scmp.ne.s32.totalorder %s3943_s30, 0 }
 0x183   : > { %p3075_p2 = scmp.ne.s32.totalorder %s3859_s1, %s3074_s0 }
 0x184   : > { %2412 = vmatmul.mubr.msk.bf16.vlgmr.msra.gmra.mrb[0].mxu1 %vm672_vm1, %v648_v6  ;;  %2404 = vmatmul.mubr.msk.bf16.vlgmr.msra.gmra.mrb[0].mxu0 %vm672_vm1, %v648_v6 }
 0x185   : > { %2425 = vmatprep.mubr.msk.bf16.mxu1 %vm3182_vm0, %v3181_v0  ;;  %2419 = vmatprep.mubr.msk.bf16.mxu0 %vm3182_vm0, %v3181_v0  ;;  %p3076_p4 = pnand %p3075_p2, %p3963_p3 }
 0x186   : > { %2416 = vmatpush3.bf16.msra.mxu0 %v2682_v7 }
 0x187   : > { %2417 = vmatprep.subr.bf16.mxu0 %v3181_v0  ;;  %p3077_p10 = pneg %p3076_p4 }
 0x18a   : > { %2418 = vmatpush3.bf16.msra.mxu0 %v2683_v8 }
 0x18b   : > { %2429 = vmatprep.subr.bf16.mxu0 %v3181_v0 }
 0x18d   : > { %2420 = vmatmul.mubr.msk.bf16.vlgmr.msra.gmra.mrb[4].mxu0 %vm672_vm1, %v648_v6 }
 0x18e   : > { %2431 = vmatprep.mubr.msk.bf16.mxu0 %vm3182_vm0, %v3181_v0 }
 0x257   : > { %v773_v10 = vpop.f32.mrb[0].mxu1  ;;  %v710_v14 = vpop.f32.mrb[0].mxu0 }
 0x258   : > { %v774_v12 = vadd.f32 %v2321_v9, %v773_v10  ;;  %v2413_v13 = vpop.f32.mrb[1].mxu1  ;;  %v2405_v16 = vpop.f32.mrb[1].mxu0  ;;  %v711_v18 = vadd.f32 %v2317_v11, %v710_v14 }
 0x259   : > { %v776_v15 = vpop.f32.mrb[2].mxu1  ;;  %v713_v19 = vpop.f32.mrb[2].mxu0 }
 0x25a   : > { %999 = vrot.lane.b32.xlu1 %v774_v12, %s3183_s20  ;;  %993 = vrot.lane.b32.xlu0 %v774_v12, %s3184_s15  ;;  %v2414_v17 = vpop.f32.mrb[3].mxu1  ;;  %v2406_v20 = vpop.f32.mrb[3].mxu0 }
 0x25e   : > { %996 = vrot.lane.b32.xlu0 %v774_v12, %s3185_s26  ;;  %843 = vrot.lane.b32.xlu1 %v711_v18, %s3184_s15 }
 0x260   : > { %v836_v22 = vpop.f32.mrb[4].mxu0 }
 0x261   : > { %v3707_v23 = vadd.f32 %v2325_v21, %v836_v22  ;;  %v2421_v24 = vpop.f32.mrb[5].mxu0 }
 0x262   : > { %846 = vrot.lane.b32.xlu0 %v711_v18, %s3185_s26  ;;  %849 = vrot.lane.b32.xlu1 %v711_v18, %s3183_s20  ;;  %v839_v25 = vpop.f32.mrb[6].mxu0 }
 0x263   : > { %v2422_v26 = vpop.f32.mrb[7].mxu0 }
 0x266   : > { %1143 = vrot.lane.b32.xlu0 %v3707_v23, %s3184_s15 }
 0x2cc   : > { %v1000_v34 = vpop.permute.xlu1 %999  ;;  %v994_v35 = vpop.permute.xlu0 %993 }
 0x2cd   : > { %v1018_v38 = vcombine.low %v994_v35, %v1000_v34  ;;  %v1019_v39 = vcombine.high %v994_v35, %v1000_v34 }
 0x2cf   : > { %v1026_v45 = vrot.slane %v1018_v38, %v3710_v37  ;;  %v1033_v46 = vrot.slane %v1019_v39, %v3710_v37 }
 0x2d0   : > { %v997_v40 = vpop.permute.xlu0 %996  ;;  %v844_v41 = vpop.permute.xlu1 %843 }
 0x2d1   : > { %v1002_v42 = vcombine.low %v774_v12, %v997_v40  ;;  %v1003_v43 = vcombine.high %v774_v12, %v997_v40 }
 0x2d3   : > { %v1010_v47 = vrot.slane %v1002_v42, %v3710_v37  ;;  %v1017_v48 = vrot.slane %v1003_v43, %v3710_v37 }
 0x2d4   : > { %v847_v49 = vpop.permute.xlu0 %846  ;;  %v850_v50 = vpop.permute.xlu1 %849 }
 0x2d5   : > { %v1034_v51 = vcombine.low %v1010_v47, %v1026_v45  ;;  %v1035_v52 = vcombine.high %v1010_v47, %v1026_v45  ;;  %v1050_v53 = vcombine.low %v1017_v48, %v1033_v46  ;;  %v1051_v54 = vcombine.high %v1017_v48, %v1033_v46 }
 0x2d6   : > { %v852_v55 = vcombine.low %v711_v18, %v847_v49  ;;  %v853_v56 = vcombine.high %v711_v18, %v847_v49  ;;  %v868_v57 = vcombine.low %v844_v41, %v850_v50  ;;  %v869_v58 = vcombine.high %v844_v41, %v850_v50 }
 0x2d7   : > { %v1042_v59 = vrot.slane %v1034_v51, %v3712_v44  ;;  %v1049_v60 = vrot.slane %v1035_v52, %v3712_v44  ;;  %v1058_v61 = vrot.slane %v1050_v53, %v3712_v44  ;;  %v1065_v62 = vrot.slane %v1051_v54, %v3712_v44 }
 0x2d8   : > { %v860_v63 = vrot.slane %v852_v55, %v3710_v37  ;;  %v867_v1 = vrot.slane %v853_v56, %v3710_v37  ;;  %v876_v2 = vrot.slane %v868_v57, %v3710_v37  ;;  %v883_v3 = vrot.slane %v869_v58, %v3710_v37 }
 0x2d9   : > { %v1070_v4 = vcombine.low %v1042_v59, %v1049_v60  ;;  %v2331_v5 = vcombine.high %v1042_v59, %v1049_v60  ;;  %v1086_v6 = vcombine.low %v1058_v61, %v1065_v62  ;;  %v2332_v7 = vcombine.high %v1058_v61, %v1065_v62 }
 0x2da   : > { %v884_v8 = vcombine.low %v860_v63, %v876_v2  ;;  %v885_v9 = vcombine.high %v860_v63, %v876_v2  ;;  %v900_v10 = vcombine.low %v867_v1, %v883_v3  ;;  %v901_v11 = vcombine.high %v867_v1, %v883_v3 }
 0x2db   : > { %v1077_v12 = vrot.slane %v1070_v4, %v3710_v37  ;;  %v1085_v13 = vrot.slane %v2331_v5, %v3710_v37  ;;  %v1093_v14 = vrot.slane %v1086_v6, %v3710_v37  ;;  %v1101_v15 = vrot.slane %v2332_v7, %v3710_v37 }
 0x2dc   : > { %v892_v16 = vrot.slane %v884_v8, %v3712_v44  ;;  %v899_v17 = vrot.slane %v885_v9, %v3712_v44  ;;  %v908_v18 = vrot.slane %v900_v10, %v3712_v44  ;;  %v915_v19 = vrot.slane %v901_v11, %v3712_v44 }
 0x2dd   : > { %v1102_v20 = vcombine.low %v1077_v12, %v1085_v13  ;;  %v1118_v21 = vcombine.low %v1093_v14, %v1101_v15  ;;  %v1103_v22 = vcombine.high %v1077_v12, %v1085_v13  ;;  %v1119_v24 = vcombine.high %v1093_v14, %v1101_v15 }
 0x2de   : > { %v920_v25 = vcombine.low %v892_v16, %v899_v17  ;;  %v2329_v26 = vcombine.high %v892_v16, %v899_v17  ;;  %v936_v27 = vcombine.low %v908_v18, %v915_v19  ;;  %v2330_v28 = vcombine.high %v908_v18, %v915_v19 }
 0x2df   : > { %v1110_v29 = vrot.slane %v1102_v20, %v3712_v44  ;;  %v1126_v30 = vrot.slane %v1118_v21, %v3712_v44  ;;  %v1117_v38 = vrot.slane %v1103_v22, %v3712_v44  ;;  %v1133_v39 = vrot.slane %v1119_v24, %v3712_v44 }
 0x2e0   : > { %v927_v31 = vrot.slane %v920_v25, %v3710_v37  ;;  %v935_v32 = vrot.slane %v2329_v26, %v3710_v37  ;;  %v943_v33 = vrot.slane %v936_v27, %v3710_v37  ;;  %v951_v34 = vrot.slane %v2330_v28, %v3710_v37  ;;  %v1144_v25 = vpop.permute.xlu0 %1143 }
 0x2e1   : > { %v1134_v35 = vcombine.low %v1110_v29, %v1126_v30  ;;  %v1135_v36 = vcombine.high %v1110_v29, %v1126_v30  ;;  %v1136_v49 = vcombine.low %v1117_v38, %v1133_v39  ;;  %v1137_v50 = vcombine.high %v1117_v38, %v1133_v39 }
 0x2e2   : > { %v952_v40 = vcombine.low %v927_v31, %v935_v32  ;;  %v968_v41 = vcombine.low %v943_v33, %v951_v34  ;;  %v953_v51 = vcombine.high %v927_v31, %v935_v32  ;;  %v969_v52 = vcombine.high %v943_v33, %v951_v34 }
 0x2e3   : > { %v1138_v42 = vpack.c.bf16 %v1134_v35, %v1134_v35  ;;  %v1139_v43 = vpack.c.bf16 %v1135_v36, %v1135_v36  ;;  %v1140_v55 = vpack.c.bf16 %v1136_v49, %v1136_v49  ;;  %v1141_v56 = vpack.c.bf16 %v1137_v50, %v1137_v50 }
 0x2e4   : > { %v960_v45 = vrot.slane %v952_v40, %v3712_v44  ;;  %v976_v46 = vrot.slane %v968_v41, %v3712_v44  ;;  %v967_v59 = vrot.slane %v953_v51, %v3712_v44  ;;  %v983_v60 = vrot.slane %v969_v52, %v3712_v44 }
 0x2e5   : > { %v1297_v47 = vsel %vm1292_vm2, %v1138_v42, 0  ;;  %v1343_v48 = vsel %vm1292_vm2, %v1139_v43, 0  ;;  %v1389_v61 = vsel %vm1292_vm2, %v1140_v55, 0  ;;  %v1435_v62 = vsel %vm1292_vm2, %v1141_v56, 0 }
 0x2e6   : > { %2424 = vmatpush3.bf16.xpose.msra.mxu1 %v1297_v47  ;;  %2430 = vmatpush3.bf16.xpose.msra.mxu0 %v1343_v48  ;;  %v984_v53 = vcombine.low %v960_v45, %v976_v46  ;;  %v985_v54 = vcombine.high %v960_v45, %v976_v46  ;;  %v986_v63 = vcombine.low %v967_v59, %v983_v60 }
 0x2e7   : > { %2435 = vmatprep.subr.bf16.mxu1 %v3181_v0  ;;  %2441 = vmatprep.subr.bf16.mxu0 %v3181_v0  ;;  %v987_v1 = vcombine.high %v967_v59, %v983_v60 }
 0x2e8   : > { %v988_v57 = vpack.c.bf16 %v984_v53, %v984_v53  ;;  %v989_v58 = vpack.c.bf16 %v985_v54, %v985_v54  ;;  %v990_v2 = vpack.c.bf16 %v986_v63, %v986_v63 }
 0x2e9   : > { %v991_v3 = vpack.c.bf16 %v987_v1, %v987_v1 }
 0x2ed   : > { %2426 = vmatmul.mubr.msk.bf16.vlgmr.msra.gmra.mrb[4].mxu1 %vm1292_vm2, %v988_v57  ;;  %2432 = vmatmul.mubr.msk.bf16.vlgmr.msra.gmra.mrb[8].mxu0 %vm1292_vm2, %v989_v58 }
 0x2ee   : > { %2436 = vmatpush3.bf16.xpose.msra.mxu1 %v1389_v61  ;;  %2442 = vmatpush3.bf16.xpose.msra.mxu0 %v1435_v62 }
 0x2ef   : > { %2437 = vmatprep.mubr.msk.bf16.mxu1 %vm3182_vm0, %v3181_v0  ;;  %2443 = vmatprep.mubr.msk.bf16.mxu0 %vm3182_vm0, %v3181_v0 }
 0x2f0   : > { %2447 = vmatprep.subr.bf16.mxu1 %v3181_v0  ;;  %2453 = vmatprep.subr.bf16.mxu0 %v3181_v0 }
 0x2f5   : > { %2438 = vmatmul.mubr.msk.bf16.vlgmr.msra.gmra.mrb[8].mxu1 %vm1292_vm2, %v990_v2  ;;  %2444 = vmatmul.mubr.msk.bf16.vlgmr.msra.gmra.mrb[12].mxu0 %vm1292_vm2, %v991_v3 }
 0x2f6   : > { %2449 = vmatprep.mubr.msk.bf16.mxu1 %vm3182_vm0, %v3181_v0  ;;  %2455 = vmatprep.mubr.msk.bf16.mxu0 %vm3182_vm0, %v3181_v0 }
 0x3c0   : > { %v1333_v4 = vpop.f32.mrb[4].mxu1  ;;  %v1379_v5 = vpop.f32.mrb[8].mxu0 }
 0x3c1   : > { %v2427_v6 = vpop.f32.mrb[5].mxu1  ;;  %v2433_v7 = vpop.f32.mrb[9].mxu0  ;;  %v1477_v8 = vsel %vm1292_vm2, %v1333_v4, -inf  ;;  %v1480_v9 = vsel %vm1292_vm2, %v1379_v5, -inf }
 0x3c2   : > { %v1336_v10 = vpop.f32.mrb[6].mxu1  ;;  %1478 = vmax.xlane.f32.xlu0 %v1477_v8  ;;  %1481 = vmax.xlane.f32.xlu1 %v1480_v9  ;;  %v1382_v11 = vpop.f32.mrb[10].mxu0 }
 0x3c3   : > { %v2428_v12 = vpop.f32.mrb[7].mxu1  ;;  %v2434_v13 = vpop.f32.mrb[11].mxu0 }
 0x3c8   : > { %v3768_v14 = vpop.f32.mrb[8].mxu1  ;;  %v3770_v15 = vpop.f32.mrb[12].mxu0 }
 0x3c9   : > { %v2439_v16 = vpop.f32.mrb[9].mxu1  ;;  %v2445_v17 = vpop.f32.mrb[13].mxu0  ;;  %v1483_v22 = vsel %vm1292_vm2, %v3768_v14, -inf  ;;  %v1486_v24 = vsel %vm1292_vm2, %v3770_v15, -inf }
 0x3ca   : > { %v1428_v18 = vpop.f32.mrb[10].mxu1  ;;  %v1474_v19 = vpop.f32.mrb[14].mxu0 }
 0x3cb   : > { %v2440_v20 = vpop.f32.mrb[11].mxu1  ;;  %v2446_v21 = vpop.f32.mrb[15].mxu0 }
 0x3d3   : > { %1146 = vrot.lane.b32.xlu1 %v3707_v23, %s3185_s26  ;;  %s3962_s26 = sld [smem:[#allocation39_spill]] }
 0x3d8   : > { %1149 = vrot.lane.b32.xlu0 %v3707_v23, %s3183_s20 }
 0x3f7   : > { %1484 = vmax.xlane.f32.xlu1 %v1483_v22  ;;  %1487 = vmax.xlane.f32.xlu0 %v1486_v24 }
 0x44f   : > { %v1479_v26 = vpop.xlane.xlu0 %1478  ;;  %v1482_v27 = vpop.xlane.xlu1 %1481 }
 0x450   : > { %v1489_v28 = vsub.f32 %v1333_v4, %v1479_v26  ;;  %v1490_v29 = vsub.f32 %v1379_v5, %v1482_v27 }
 0x452   : > { %v1493_v30 = vmul.f32 1.442695, %v1489_v28  ;;  %v1495_v31 = vmul.f32 1.442695, %v1490_v29 }
 0x453   : > { %v1150_v32 = vpop.permute.xlu0 %1149  ;;  %v1147_v33 = vpop.permute.xlu1 %1146 }
 0x454   : > { %2692 = vpow2.f32 %v1493_v30  ;;  %v1168_v34 = vcombine.low %v1144_v25, %v1150_v32  ;;  %v1169_v35 = vcombine.high %v1144_v25, %v1150_v32  ;;  %v1152_v36 = vcombine.low %v3707_v23, %v1147_v33 }
 0x455   : > { %2694 = vpow2.f32 %v1495_v31  ;;  %v1153_v38 = vcombine.high %v3707_v23, %v1147_v33 }
 0x456   : > { %v1176_v39 = vrot.slane %v1168_v34, %v3710_v37  ;;  %v1183_v40 = vrot.slane %v1169_v35, %v3710_v37  ;;  %v1160_v41 = vrot.slane %v1152_v36, %v3710_v37 }
 0x457   : > { %v1167_v42 = vrot.slane %v1153_v38, %v3710_v37 }
 0x458   : > { %v1184_v43 = vcombine.low %v1160_v41, %v1176_v39  ;;  %v1185_v45 = vcombine.high %v1160_v41, %v1176_v39 }
 0x459   : > { %v1200_v46 = vcombine.low %v1167_v42, %v1183_v40  ;;  %v1201_v47 = vcombine.high %v1167_v42, %v1183_v40 }
 0x45a   : > { %v1192_v48 = vrot.slane %v1184_v43, %v3712_v44  ;;  %v1199_v49 = vrot.slane %v1185_v45, %v3712_v44 }
 0x45b   : > { %v1208_v50 = vrot.slane %v1200_v46, %v3712_v44  ;;  %v1215_v23 = vrot.slane %v1201_v47, %v3712_v44 }
 0x45c   : > { %v1220_v51 = vcombine.low %v1192_v48, %v1199_v49  ;;  %v2333_v52 = vcombine.high %v1192_v48, %v1199_v49 }
 0x45d   : > { %v1236_v53 = vcombine.low %v1208_v50, %v1215_v23  ;;  %v2334_v54 = vcombine.high %v1208_v50, %v1215_v23 }
 0x45e   : > { %v2693_v55 = vpop.eup %2692  ;;  %v1227_v56 = vrot.slane %v1220_v51, %v3710_v37  ;;  %v1235_v57 = vrot.slane %v2333_v52, %v3710_v37 }
 0x45f   : > { %v2695_v58 = vpop.eup %2694  ;;  %v1243_v59 = vrot.slane %v1236_v53, %v3710_v37  ;;  %v1251_v60 = vrot.slane %v2334_v54, %v3710_v37  ;;  %v1501_v61 = vsel %vm1292_vm2, %v2693_v55, 0.0  ;;  %v1513_v20 = vpack.c.bf16 %v2693_v55, %v2693_v55 }
 0x460   : > { %v1504_v62 = vsel %vm1292_vm2, %v2695_v58, 0.0  ;;  %1502 = vadd.xlane.f32.xlu0 %v1501_v61  ;;  %v1252_v63 = vcombine.low %v1227_v56, %v1235_v57  ;;  %v1253_v1 = vcombine.high %v1227_v56, %v1235_v57  ;;  %v1514_v21 = vpack.c.bf16 %v2695_v58, %v2695_v58 }
 0x461   : > { %1505 = vadd.xlane.f32.xlu1 %v1504_v62  ;;  %v1268_v2 = vcombine.low %v1243_v59, %v1251_v60  ;;  %v1269_v3 = vcombine.high %v1243_v59, %v1251_v60 }
 0x462   : > { %v1260_v4 = vrot.slane %v1252_v63, %v3712_v44  ;;  %v1267_v5 = vrot.slane %v1253_v1, %v3712_v44 }
 0x463   : > { %v1276_v6 = vrot.slane %v1268_v2, %v3712_v44  ;;  %v1283_v7 = vrot.slane %v1269_v3, %v3712_v44 }
 0x465   : > { %v1284_v8 = vcombine.low %v1260_v4, %v1276_v6  ;;  %v1285_v9 = vcombine.high %v1260_v4, %v1276_v6  ;;  %v1286_v10 = vcombine.low %v1267_v5, %v1283_v7  ;;  %v1287_v11 = vcombine.high %v1267_v5, %v1283_v7 }
 0x467   : > { %v1288_v12 = vpack.c.bf16 %v1284_v8, %v1284_v8  ;;  %v1289_v13 = vpack.c.bf16 %v1285_v9, %v1285_v9  ;;  %v1290_v18 = vpack.c.bf16 %v1286_v10, %v1286_v10  ;;  %v1291_v19 = vpack.c.bf16 %v1287_v11, %v1287_v11 }
 0x469   : > { %v1522_v16 = vsel %vm1520_vm3, %v1288_v12, 0  ;;  %v1568_v17 = vsel %vm1520_vm3, %v1289_v13, 0  ;;  %v1614_v22 = vsel %vm1520_vm3, %v1290_v18, 0  ;;  %v1660_v24 = vsel %vm1520_vm3, %v1291_v19, 0  ;;  %v2684_v13 = vld [vmem:[#allocation15] sm:$0xff]  }
 0x46a   : > { %2448 = vmatpush3.bf16.msra.mxu1 %v1522_v16  ;;  %2454 = vmatpush3.bf16.msra.mxu0 %v1568_v17 }
 0x46b   : > { %2459 = vmatprep.subr.bf16.mxu1 %v3181_v0  ;;  %2465 = vmatprep.subr.bf16.mxu0 %v3181_v0 }
 0x46d   : > { %2450 = vmatmul.mubr.msk.bf16.vlgmr.msra.gmra.mrb[12].mxu1 %vm1292_vm2, %v1513_v20  ;;  %2456 = vmatmul.mubr.msk.bf16.vlgmr.msra.gmra.mrb[16].mxu0 %vm1292_vm2, %v1514_v21 }
 0x46e   : > { %2460 = vmatpush3.bf16.msra.mxu1 %v1614_v22  ;;  %2466 = vmatpush3.bf16.msra.mxu0 %v1660_v24 }
 0x46f   : > { %2461 = vmatprep.mubr.msk.bf16.mxu1 %vm3182_vm0, %v3181_v0  ;;  %2467 = vmatprep.mubr.msk.bf16.mxu0 %vm3182_vm0, %v3181_v0 }
 0x470   : > { %2471 = vmatprep.subr.bf16.mxu1 %v3181_v0  ;;  %2479 = vmatprep.subr.bf16.mxu0 %v3181_v0 }
 0x484   : > { %v1485_v25 = vpop.xlane.xlu1 %1484  ;;  %v1488_v26 = vpop.xlane.xlu0 %1487 }
 0x485   : > { %v1491_v27 = vsub.f32 %v3768_v14, %v1485_v25  ;;  %v1492_v28 = vsub.f32 %v3770_v15, %v1488_v26  ;;  %v2685_v25 = vld [vmem:[#allocation15 + $0x8] sm:$0xff]  }
 0x487   : > { %v1497_v29 = vmul.f32 1.442695, %v1491_v27  ;;  %v1499_v30 = vmul.f32 1.442695, %v1492_v28 }
 0x489   : > { %2696 = vpow2.f32 %v1497_v29 }
 0x48a   : > { %2698 = vpow2.f32 %v1499_v30 }
 0x493   : > { %v2697_v31 = vpop.eup %2696 }
 0x494   : > { %v2699_v32 = vpop.eup %2698  ;;  %v1507_v33 = vsel %vm1292_vm2, %v2697_v31, 0.0  ;;  %v1515_v34 = vpack.c.bf16 %v2697_v31, %v2697_v31 }
 0x495   : > { %1508 = vadd.xlane.f32.xlu0 %v1507_v33  ;;  %v1510_v35 = vsel %vm1292_vm2, %v2699_v32, 0.0  ;;  %v1516_v36 = vpack.c.bf16 %v2699_v32, %v2699_v32 }
 0x496   : > { %1511 = vadd.xlane.f32.xlu1 %v1510_v35  ;;  %2462 = vmatmul.mubr.msk.bf16.vlgmr.msra.gmra.mrb[16].mxu1 %vm1292_vm2, %v1515_v34  ;;  %v2686_v34 = vld [vmem:[#allocation18] sm:$0xff]  }
 0x497   : > { %2468 = vmatmul.mubr.msk.bf16.vlgmr.msra.gmra.mrb[20].mxu0 %vm1292_vm2, %v1516_v36  ;;  %2475 = vmatprep.mubr.msk.bf16.mxu1 %vm3182_vm0, %v3181_v0 }
 0x498   : > { %2483 = vmatprep.mubr.msk.bf16.mxu0 %vm3182_vm0, %v3181_v0  ;;  %2472 = vmatpush3.bf16.msra.mxu1 %v2684_v13 }
 0x499   : > { %2473 = vmatprep.subr.bf16.mxu1 %v3181_v0  ;;  %2480 = vmatpush3.bf16.msra.mxu0 %v2686_v34 }
 0x49a   : > { %2481 = vmatprep.subr.bf16.mxu0 %v3181_v0 }
 0x49c   : > { %2474 = vmatpush3.bf16.msra.mxu1 %v2685_v25 }
 0x49d   : > { %2487 = vmatprep.subr.bf16.mxu1 %v3181_v0 }
 0x4ed   : > { %v1503_v45 = vpop.xlane.xlu0 %1502 }
 0x4ee   : > { %v1506_v46 = vpop.xlane.xlu1 %1505  ;;  %2700 = vrcp.f32 %v1503_v45 }
 0x4ef   : > { %2702 = vrcp.f32 %v1506_v46 }
 0x4f8   : > { %v2701_v49 = vpop.eup %2700 }
 0x4f9   : > { %v2703_v50 = vpop.eup %2702 }
 0x522   : > { %v1509_v47 = vpop.xlane.xlu0 %1508 }
 0x523   : > { %v1512_v48 = vpop.xlane.xlu1 %1511  ;;  %2704 = vrcp.f32 %v1509_v47 }
 0x524   : > { %2706 = vrcp.f32 %v1512_v48  ;;  %v2687_v48 = vld [vmem:[#allocation18 + $0x8] sm:$0xff]  }
 0x525   : > { %2482 = vmatpush3.bf16.msra.mxu0 %v2687_v48 }
 0x52d   : > { %v2705_v23 = vpop.eup %2704 }
 0x52e   : > { %v2707_v52 = vpop.eup %2706 }
 0x540   : > { %v1558_v14 = vpop.f32.mrb[12].mxu1  ;;  %v1604_v15 = vpop.f32.mrb[16].mxu0 }
 0x541   : > { %v2451_v38 = vpop.f32.mrb[13].mxu1  ;;  %v2457_v39 = vpop.f32.mrb[17].mxu0  ;;  %v1706_v53 = vmul.f32 %v2701_v49, %v1558_v14  ;;  %v1707_v57 = vmul.f32 %v2703_v50, %v1604_v15  ;;  %v2688_v49 = vld [vmem:[#allocation21] sm:$0xff]   ;;  %v2689_v50 = vld [vmem:[#allocation21 + $0x8] sm:$0xff]  }
 0x542   : > { %v1561_v40 = vpop.f32.mrb[14].mxu1  ;;  %v1607_v41 = vpop.f32.mrb[18].mxu0 }
 0x543   : > { %v2452_v42 = vpop.f32.mrb[15].mxu1  ;;  %v2458_v43 = vpop.f32.mrb[19].mxu0 }
 0x569   : > { %v1650_v51 = vpop.f32.mrb[16].mxu1 }
 0x56a   : > { %v1708_v54 = vmul.f32 %v2705_v23, %v1650_v51  ;;  %v1696_v55 = vpop.f32.mrb[20].mxu0  ;;  %v2463_v56 = vpop.f32.mrb[17].mxu1  ;;  %v2345_v23 = vld [vmem:[#allocation17] ss:$0 sm:$0xff] }
 0x56b   : > { %v1709_v58 = vmul.f32 %v2707_v52, %v1696_v55  ;;  %v2469_v59 = vpop.f32.mrb[21].mxu0  ;;  %v1653_v60 = vpop.f32.mrb[18].mxu1 }
 0x56c   : > { %v1710_v61 = vcombine.low %v1706_v53, %v1708_v54  ;;  %v1711_v62 = vcombine.high %v1706_v53, %v1708_v54  ;;  %v1699_v63 = vpop.f32.mrb[22].mxu0  ;;  %v2464_v1 = vpop.f32.mrb[19].mxu1  ;;  %v2349_v59 = vld [vmem:[#allocation20] ss:$0 sm:$0xff] }
 0x56d   : > { %v1726_v2 = vcombine.low %v1707_v57, %v1709_v58  ;;  %v1727_v3 = vcombine.high %v1707_v57, %v1709_v58  ;;  %v2470_v4 = vpop.f32.mrb[23].mxu0  ;;  %v2690_v57 = vld [vmem:[#allocation21 + $0x10] sm:$0xff]   ;;  %v2691_v58 = vld [vmem:[#allocation21 + $0x18] sm:$0xff]  }
 0x56e   : > { %v1718_v5 = vrot.slane %v1710_v61, %v3710_v37  ;;  %v1725_v6 = vrot.slane %v1711_v62, %v3710_v37  ;;  %v1999_v61 = vstv %s1997_s29 }
 0x56f   : > { %v1734_v7 = vrot.slane %v1726_v2, %v3710_v37  ;;  %v1741_v8 = vrot.slane %v1727_v3, %v3710_v37 }
 0x571   : > { %v1742_v9 = vcombine.low %v1718_v5, %v1734_v7  ;;  %v1743_v10 = vcombine.high %v1718_v5, %v1734_v7  ;;  %v1758_v11 = vcombine.low %v1725_v6, %v1741_v8  ;;  %v1759_v12 = vcombine.high %v1725_v6, %v1741_v8 }
 0x573   : > { %v1750_v16 = vrot.slane %v1742_v9, %v3712_v44  ;;  %v1757_v17 = vrot.slane %v1743_v10, %v3712_v44  ;;  %v1766_v18 = vrot.slane %v1758_v11, %v3712_v44  ;;  %v1773_v19 = vrot.slane %v1759_v12, %v3712_v44 }
 0x575   : > { %v1778_v20 = vcombine.low %v1750_v16, %v1757_v17  ;;  %v2343_v21 = vcombine.high %v1750_v16, %v1757_v17  ;;  %v1794_v22 = vcombine.low %v1766_v18, %v1773_v19  ;;  %v2344_v24 = vcombine.high %v1766_v18, %v1773_v19 }
 0x577   : > { %v1785_v26 = vrot.slane %v1778_v20, %v3710_v37  ;;  %v1793_v27 = vrot.slane %v2343_v21, %v3710_v37  ;;  %v1801_v28 = vrot.slane %v1794_v22, %v3710_v37  ;;  %v1809_v29 = vrot.slane %v2344_v24, %v3710_v37 }
 0x579   : > { %v1811_v30 = vcombine.high %v1785_v26, %v1793_v27  ;;  %v1827_v31 = vcombine.high %v1801_v28, %v1809_v29  ;;  %v1810_v32 = vcombine.low %v1785_v26, %v1793_v27  ;;  %v1826_v33 = vcombine.low %v1801_v28, %v1809_v29 }
 0x57b   : > { %v1825_v35 = vrot.slane %v1811_v30, %v3712_v44  ;;  %v1841_v36 = vrot.slane %v1827_v31, %v3712_v44  ;;  %v1818_v14 = vrot.slane %v1810_v32, %v3712_v44  ;;  %v1834_v15 = vrot.slane %v1826_v33, %v3712_v44 }
 0x57d   : > { %v1844_v37 = vcombine.low %v1825_v35, %v1841_v36  ;;  %v1843_v38 = vcombine.high %v1818_v14, %v1834_v15  ;;  %v1845_v39 = vcombine.high %v1825_v35, %v1841_v36  ;;  %v1842_v40 = vcombine.low %v1818_v14, %v1834_v15 }
 0x57f   : > { %1851 = vrot.lane.b32.xlu1 %v1844_v37, %s3188_s21  ;;  %1847 = vrot.lane.b32.xlu0 %v1843_v38, %s3189_s19  ;;  %s3857_s21 = scalar_lea.hbm %s3962_s26, %s2360_s2  ;;  %s3191_s19 = smov [#allocation24]  }
 0x583   : > { %1855 = vrot.lane.b32.xlu1 %v1845_v39, %s3190_s25  ;;  %s3078_s25 = sshll.u32 %s3191_s19, 4  ;;  %s3079_s25 = int_to_ptr.vmem [resolvable:$false] %s3078_s25 }
 0x584   : > { %s3080_s29 = scalar_lea.vmem %s3079_s25, 256  ;;  %p3081_p11 = scmp.lt.s32.totalorder %s3859_s1, %s3079_s25 }
 0x585   : > { %p3082_p8 = scmp.lt.s32.totalorder %s3080_s29, %s3074_s0 }
 0x587   : > { %p3083_p5 = por %p3082_p8, %p3081_p11 }
 0x589   : > { %p3084_p7 = pnand %p3083_p5, %p3077_p10 }
 0x5f1   : > { %v1852_v41 = vpop.permute.xlu1 %1851  ;;  %v1848_v42 = vpop.permute.xlu0 %1847 }
 0x5f2   : > { %v1858_v43 = vsel %vm1292_vm2, %v1842_v40, %v1848_v42 }
 0x5f3   : > { %v1860_v45 = vsel %vm1859_vm4, %v1858_v43, %v1852_v41 }
 0x5f5   : > { %v1856_v44 = vpop.permute.xlu1 %1855 }
 0x5f6   : > { %v1862_v46 = vsel %vm1861_vm5, %v1860_v45, %v1856_v44 }
 0x5f7   : > { %v1863_v47 = vpack.c.bf16 %v1862_v46, %v1862_v46 }
 0x5f9   : > { %2476 = vmatmul.mubr.msk.bf16.vlgmr.msra.gmra.mrb[20].mxu1 %vm672_vm1, %v1863_v47 }
 0x5fa   : > { %2495 = vmatprep.mubr.msk.bf16.mxu1 %vm3182_vm0, %v3181_v0  ;;  %2488 = vmatpush3.bf16.msra.mxu1 %v2688_v49 }
 0x5fb   : > { %2489 = vmatprep.subr.bf16.mxu1 %v3181_v0 }
 0x5fe   : > { %2490 = vmatpush3.bf16.msra.mxu1 %v2689_v50 }
 0x5ff   : > { %2491 = vmatprep.subr.bf16.mxu1 %v3181_v0 }
 0x602   : > { %2492 = vmatpush3.bf16.msra.mxu1 %v2690_v57 }
 0x603   : > { %2493 = vmatprep.subr.bf16.mxu1 %v3181_v0  ;;  %v2353_v0 = vld [vmem:[#allocation23] ss:$0 sm:$0xff] }
 0x606   : > { %2494 = vmatpush3.bf16.msra.mxu1 %v2691_v58 }
 0x6cc   : > { %v1924_v51 = vpop.f32.mrb[20].mxu1 }
 0x6cd   : > { %v1925_v52 = vadd.f32 %v2345_v23, %v1924_v51  ;;  %v2477_v53 = vpop.f32.mrb[21].mxu1 }
 0x6ce   : > { %v1927_v54 = vpop.f32.mrb[22].mxu1 }
 0x6cf   : > { %v1930_v55 = vpack.c.bf16 %v1925_v52, %v1925_v52  ;;  %v2478_v56 = vpop.f32.mrb[23].mxu1 }
 0x6d1   : > { %2484 = vmatmul.mubr.msk.bf16.vlgmr.msra.gmra.mrb[24].mxu0 %vm672_vm1, %v1930_v55 }
 0x7a4   : > { %v1991_v60 = vpop.f32.mrb[24].mxu0 }
 0x7a5   : > { %v1992_v62 = vadd.f32 %v2349_v59, %v1991_v60  ;;  %v2485_v63 = vpop.f32.mrb[25].mxu0 }
 0x7a6   : > { %v1994_v1 = vpop.f32.mrb[26].mxu0 }
 0x7a7   : > { %vm1998_vm6 = vcmp.ge.f32.partialorder %v1992_v62, 0.0  ;;  %v2000_v2 = vmul.f32 %v1999_v61, %v1992_v62  ;;  %v2486_v3 = vpop.f32.mrb[27].mxu0 }
 0x7a9   : > { %v2001_v4 = vsel %vm1998_vm6, %v1992_v62, %v2000_v2 }
 0x7aa   : > { %v2002_v5 = vpack.c.bf16 %v2001_v4, %v2001_v4 }
 0x7ac   : > { %2496 = vmatmul.mubr.msk.bf16.vlgmr.msra.gmra.mrb[24].mxu1 %vm2042_vm7, %v2002_v5 }
 0x87f   : > { %v2080_v6 = vpop.f32.mrb[24].mxu1 }
 0x880   : > { %v2081_v7 = vadd.f32 %v2353_v0, %v2080_v6  ;;  %v2497_v8 = vpop.f32.mrb[25].mxu1 }
 0x881   : > { %v2083_v9 = vpop.f32.mrb[26].mxu1 }
 0x882   : > { %v2498_v10 = vpop.f32.mrb[27].mxu1  ;;  %2086 = vst.msk [vmem:[%s645_s23] sm:$0xff] %vm672_vm1, %v2081_v7 }
 0x883   : > { %3087 = shalt.err (!%p3084_p7)
}
 0x884   : > { %s3088_s27 = scalar_lea.hbm %s3857_s21, 128  ;;  %s3092_s20 = scalar_lea.hbm %s3962_s26, 256 }
 0x885   : > { %p3089_p6 = scmp.ne.s32.totalorder %s3857_s21, %s3088_s27  ;;  %p3093_p1 = scmp.lt.u32.totalorder %s3857_s21, %s3962_s26 }
 0x886   : > { %p3094_p13 = scmp.lt.u32.totalorder %s3092_s20, %s3088_s27  ;;  %p3096_p2 = scmp.lt.u32.totalorder %s3088_s27, %s3857_s21 }
 0x887   : > { %p3090_p9 = pnand %p3089_p6, %p3963_p3 }
 0x888   : > { %p3095_p0 = por %p3094_p13, %p3093_p1 }
 0x889   : > { %p3091_p12 = pneg %p3090_p9 }
 0x88a   : > { %p3097_p4 = por %p3096_p2, %p3095_p0 }
 0x88c   : > { %p3098_p10 = pnand %p3097_p4, %p3091_p12 }
 0x88e   : > { %3101 = shalt.err (!%p3098_p10)
}
 0x88f   : > { %2549 = dma.vmem_to_hbm [thread:$0]  (%p3963_p3), %s3859_s1, 128, %s3857_s21, %s2088_s22  }
 0x890 PF: > { %s3964_s0 = sld [smem:[#allocation33_spill]]  ;;  %p3965_p11 = scmp.ne.s32.totalorder %s3944_s11, 0 }
 0x891   : > { %p3966_p8 = scmp.ge.s32.totalorder %s3164_s18, 2 }
 0x893   : > { %p2593_p5 = pnand %p3966_p8, %p3965_p11 }
 0x896   : > { %s2113_s25 = sand.u32 1, %s3964_s0  }
 0x897   : > { %s2114_s29 = scalar_lea.sflag [#allocation5], %s2113_s25 }
 0x898   : > { %3147 = dma.done.wait (!%p2593_p5), %s2114_s29, 128  }
 0x899   : > { %3149 = vsyncadd (!%p2593_p5), %s2114_s29, 4294967168  ;;  %p34_p7 = scmp.ge.s32.totalorder %s3572_s24, 4   ;;  %s3967_s15 = smov %s3156_s16 }
 0x89a   : > { %s3968_s16 = smov %s3160_s17  ;;  %s3969_s17 = smov %s3583_s28 }
 0x89b   : > { %s3970_s18 = smov %s3572_s24  ;;  %36 = sbr.rel (!%p34_p7) target bundleno = 17 (0x11), region = 169 }
 0x8a2   :  { %2119 = vsyncpa [#allocation4], 1 }
 0x8a3   :  { %2121 = vsyncpa [#allocation4 + $0x1], 1 }
 0x8a4   :  { %2122 = vsyncpa [#allocation7], 1 }
 0x8a5   :  { %2123 = vsyncpa [#allocation10], 1 }
 0x8a6   :  { %2124 = vsyncpa [#allocation13], 1 }
 0x8a7   :  { %2125 = vsyncpa [#allocation16], 1 }
 0x8a8   :  { %2126 = vsyncpa [#allocation19], 1 }
 0x8a9   :  { %2127 = vsyncpa [#allocation22], 1 }
 0x8aa   :  { %2128 = vsyncpa [#allocation5], 1 }
 0x8ab   :  { %2130 = vsyncpa [#allocation5 + $0x1], 1 }

// kernel: tpu_custom_call.1
= control target key start
LH: loop header
LB: loop body
LE: loop exit
PB: predicated region body
PF: predicated region fallthrough
CT: control target
= control target key end

     0   :  { %s3902_s0 = inlined_call_operand.hbm [shape: f32[2,8,32], index: 0, kind: input, shape index: {}]   ;;  %s3903_s1 = inlined_call_operand.hbm [shape: bf16[32,32], index: 1, kind: input, shape index: {}]   ;;  %s3904_s2 = inlined_call_operand.hbm [shape: f32[1,32], index: 2, kind: input, shape index: {}]   ;;  %s3905_s3 = inlined_call_operand.hbm [shape: bf16[32,32], index: 3, kind: input, shape index: {}]   ;;  %s3906_s4 = inlined_call_operand.hbm [shape: f32[1,32], index: 4, kind: input, shape index: {}]   ;;  %s3907_s5 = inlined_call_operand.hbm [shape: bf16[32,32], index: 5, kind: input, shape index: {}]   ;;  %s3908_s6 = inlined_call_operand.hbm [shape: f32[1,32], index: 6, kind: input, shape index: {}]   ;;  %s3909_s7 = inlined_call_operand.hbm [shape: bf16[32,32], index: 7, kind: input, shape index: {}]   ;;  %s3910_s8 = inlined_call_operand.hbm [shape: f32[1,32], index: 8, kind: input, shape index: {}]   ;;  %s3911_s9 = inlined_call_operand.hbm [shape: bf16[32,64], index: 9, kind: input, shape index: {}]   ;;  %s3912_s10 = inlined_call_operand.hbm [shape: f32[1,64], index: 10, kind: input, shape index: {}]   ;;  %s3913_s11 = inlined_call_operand.<no memory space> [shape: f32[1], index: 11, kind: input, shape index: {}]   ;;  %s3914_s12 = inlined_call_operand.hbm [shape: bf16[64,32], index: 12, kind: input, shape index: {}]   ;;  %s3915_s13 = inlined_call_operand.hbm [shape: f32[1,32], index: 13, kind: input, shape index: {}]   ;;  %s3916_s14 = inlined_call_operand.hbm [shape: f32[2,8,32], index: 14, kind: output, shape index: {}]  }
   0x1   :  { %3926 = sst [smem:[#allocation36_spill]] %s3902_s0 }
   0x2   :  { %3927 = sst [smem:[#allocation37_spill]] %s3903_s1 }
   0x3   :  { %3928 = sst [smem:[#allocation38_spill]] %s3904_s2 }
   0x4   :  { %3929 = sst [smem:[#allocation39_spill]] %s3916_s14 }
   0x5   :  { %19 = sst [smem:[#allocation2]] %s3913_s11 }
   0x6   :  { %20 = vsyncpa [#allocation4], 0 }
   0x7   :  { %22 = vsyncpa [#allocation4 + $0x1], 0 }
   0x8   :  { %23 = vsyncpa [#allocation7], 0 }
   0x9   :  { %24 = vsyncpa [#allocation10], 0 }
   0xa   :  { %25 = vsyncpa [#allocation13], 0 }
   0xb   :  { %26 = vsyncpa [#allocation16], 0 }
   0xc   :  { %27 = vsyncpa [#allocation19], 0 }
   0xd   :  { %28 = vsyncpa [#allocation22], 0 }
   0xe   :  { %29 = vsyncpa [#allocation5], 0 }
   0xf   :  { %31 = vsyncpa [#allocation5 + $0x1], 0  ;;  %s3270_s15 = smov 0   ;;  %s3272_s16 = smov 0  }
  0x10   :  { %s3274_s17 = smov 0   ;;  %s3276_s18 = smov 0  }
  0x11 LB: > { %3930 = sst [smem:[#allocation33_spill]] %s3152_s15  ;;  %s3166_s11 = smov [#allocation6]   ;;  %s3164_s18 = sphi %s3276_s18, %s3970_s18   ;;  %s3160_s17 = sphi %s3274_s17, %s3969_s17   ;;  %s3156_s16 = sphi %s3272_s16, %s3968_s16   ;;  %s3152_s15 = sphi %s3270_s15, %s3967_s15  }
  0x12   : > { %s379_s19 = sshll.u32 %s3166_s11, 4  ;;  %s3291_s20 = sadd.s32 4294967295, %s3164_s18   ;;  %s3296_s19 = int_to_ptr.vmem [resolvable:$true] %s379_s19 }
  0x13   : > { %3931 = sst [smem:[#allocation34_spill]] %s3291_s20  ;;  %p2286_p0 = scmp.ge.s32.totalorder %s3164_s18, 1 }
  0x14   : > { %p3923_p1 = scmp.eq.s32.totalorder %s3291_s20, 0  ;;  %p367_p2 = scmp.lt.s32.totalorder %s3164_s18, 3 }
  0x15   : > { %s3167_s22 = smov [#allocation9]   ;;  %s3168_s25 = smov [#allocation12]  }
  0x16   : > { %p3298_p3 = pnand %p2286_p0, %p367_p2  ;;  %s403_s23 = sshll.u32 %s3167_s22, 4  ;;  %s3311_s23 = int_to_ptr.vmem [resolvable:$true] %s403_s23 }
  0x17   : > { %s427_s26 = sshll.u32 %s3168_s25, 4  ;;  %s3935_s1 = sld [smem:[#allocation37_spill]]  ;;  %s3313_s26 = int_to_ptr.vmem [resolvable:$true] %s427_s26 }
  0x18   : > { %s3932_s21 = scalar_select %p3298_p3, 1, 0 }
  0x19   : > { %p2551_p5 = pneg %p3298_p3 }
  0x1a   : > { %3933 = sst [smem:[#allocation35_spill]] %s3932_s21 }
  0x1b   : > { %p3307_p6 = pnand %p2551_p5, %p3923_p1 }
  0x1d   : > { %s2708_s29 = scalar_lea.hbm %s3935_s1, 256  ;;  %p3323_p8 = pneg %p3307_p6 }
  0x1e   : > { %p2709_p7 = scmp.ne.s32.totalorder %s3935_s1, %s2708_s29  ;;  %p2715_p11 = scmp.lt.u32.totalorder %s2708_s29, %s3935_s1 }
  0x20   : > { %p2711_p9 = pnand %p3323_p8, %p2709_p7 }
  0x22   : > { %p2712_p10 = pneg %p2711_p9 }
  0x24   : > { %p2717_p12 = pnand %p2715_p11, %p2712_p10 }
  0x26   : > { %2720 = shalt.err (!%p2717_p12)
}
  0x27   : > { %s2721_s27 = scalar_lea.vmem %s3296_s19, 256  ;;  %p2729_p5 = scmp.lt.s32.totalorder %s3296_s19, %s3296_s19 }
  0x28   : > { %p2722_p13 = scmp.ne.s32.totalorder %s3296_s19, %s2721_s27  ;;  %p2730_p4 = scmp.lt.s32.totalorder %s2721_s27, %s2721_s27 }
  0x2a   : > { %p2724_p0 = pnand %p2722_p13, %p3323_p8  ;;  %p2731_p7 = por %p2730_p4, %p2729_p5 }
  0x2c   : > { %p2725_p2 = pneg %p2724_p0 }
  0x2e   : > { %p2732_p9 = pnand %p2731_p7, %p2725_p2 }
  0x30   : > { %2735 = shalt.err (!%p2732_p9)
}
  0x31   : > { %s3169_s28 = smov 64   ;;  %s3170_s14 = smov 4  }
  0x32   : > { %2554 = dma.hbm_to_vmem [thread:$0]  (!%p3307_p6), %s3935_s1, 256, %s3296_s19, [#allocation7], %s3169_s28, %s3169_s28, %s3170_s14  }
  0x33   : > { %s2736_s27 = scalar_lea.hbm %s3905_s3, 256 }
  0x34   : > { %p2737_p4 = scmp.ne.s32.totalorder %s3905_s3, %s2736_s27  ;;  %p2743_p12 = scmp.lt.u32.totalorder %s2736_s27, %s3905_s3 }
  0x36   : > { %p2739_p10 = pnand %p2737_p4, %p3323_p8 }
  0x38   : > { %p2740_p11 = pneg %p2739_p10 }
  0x3a   : > { %p2745_p13 = pnand %p2743_p12, %p2740_p11 }
  0x3c   : > { %2748 = shalt.err (!%p2745_p13)
}
  0x3d   : > { %s2749_s19 = scalar_lea.vmem %s3311_s23, 256  ;;  %p2757_p7 = scmp.lt.s32.totalorder %s3311_s23, %s3311_s23 }
  0x3e   : > { %p2750_p0 = scmp.ne.s32.totalorder %s3311_s23, %s2749_s19  ;;  %p2758_p9 = scmp.lt.s32.totalorder %s2749_s19, %s2749_s19 }
  0x40   : > { %p2752_p2 = pnand %p2750_p0, %p3323_p8  ;;  %p2759_p4 = por %p2758_p9, %p2757_p7 }
  0x42   : > { %p2753_p5 = pneg %p2752_p2 }
  0x44   : > { %p2760_p10 = pnand %p2759_p4, %p2753_p5 }
  0x46   : > { %2763 = shalt.err (!%p2760_p10)
}
  0x47   : > { %2560 = dma.hbm_to_vmem [thread:$0]  (!%p3307_p6), %s3905_s3, 256, %s3311_s23, [#allocation10], %s3169_s28, %s3169_s28, %s3170_s14  }
  0x48   : > { %s2764_s29 = scalar_lea.hbm %s3907_s5, 256 }
  0x49   : > { %p2765_p11 = scmp.ne.s32.totalorder %s3907_s5, %s2764_s29  ;;  %p2771_p0 = scmp.lt.u32.totalorder %s2764_s29, %s3907_s5 }
  0x4b   : > { %p2767_p12 = pnand %p2765_p11, %p3323_p8 }
  0x4d   : > { %p2768_p13 = pneg %p2767_p12 }
  0x4f   : > { %p2773_p2 = pnand %p2771_p0, %p2768_p13 }
  0x51   : > { %2776 = shalt.err (!%p2773_p2)
}
  0x52   : > { %s2777_s23 = scalar_lea.vmem %s3313_s26, 256  ;;  %p2785_p4 = scmp.lt.s32.totalorder %s3313_s26, %s3313_s26 }
  0x53   : > { %p2778_p5 = scmp.ne.s32.totalorder %s3313_s26, %s2777_s23  ;;  %p2786_p10 = scmp.lt.s32.totalorder %s2777_s23, %s2777_s23 }
  0x55   : > { %p2780_p7 = pnand %p2778_p5, %p3323_p8  ;;  %p2787_p11 = por %p2786_p10, %p2785_p4 }
  0x57   : > { %p2781_p9 = pneg %p2780_p7 }
  0x59   : > { %p2788_p12 = pnand %p2787_p11, %p2781_p9 }
  0x5b   : > { %2791 = shalt.err (!%p2788_p12)
}
  0x5c   : > { %2566 = dma.hbm_to_vmem [thread:$0]  (!%p3307_p6), %s3907_s5, 256, %s3313_s26, [#allocation13], %s3169_s28, %s3169_s28, %s3170_s14  }
  0x5d   : > { %s3171_s15 = smov [#allocation15]   ;;  %s3172_s21 = smov [#allocation18]  }
  0x5e   : > { %s451_s20 = sshll.u32 %s3171_s15, 4  ;;  %s475_s29 = sshll.u32 %s3172_s21, 4  ;;  %s452_s20 = int_to_ptr.vmem [resolvable:$true] %s451_s20  ;;  %s476_s29 = int_to_ptr.vmem [resolvable:$true] %s475_s29 }
  0x5f   : > { %s2792_s25 = scalar_lea.hbm %s3909_s7, 256 }
  0x60   : > { %p2793_p13 = scmp.ne.s32.totalorder %s3909_s7, %s2792_s25  ;;  %p2799_p5 = scmp.lt.u32.totalorder %s2792_s25, %s3909_s7 }
  0x62   : > { %p2795_p0 = pnand %p2793_p13, %p3323_p8 }
  0x64   : > { %p2796_p2 = pneg %p2795_p0 }
  0x66   : > { %p2801_p7 = pnand %p2799_p5, %p2796_p2 }
  0x68   : > { %2804 = shalt.err (!%p2801_p7)
}
  0x69   : > { %s2805_s26 = scalar_lea.vmem %s452_s20, 256  ;;  %p2813_p11 = scmp.lt.s32.totalorder %s452_s20, %s452_s20 }
  0x6a   : > { %p2806_p9 = scmp.ne.s32.totalorder %s452_s20, %s2805_s26  ;;  %p2814_p12 = scmp.lt.s32.totalorder %s2805_s26, %s2805_s26 }
  0x6c   : > { %p2808_p4 = pnand %p2806_p9, %p3323_p8  ;;  %p2815_p1 = por %p2814_p12, %p2813_p11 }
  0x6e   : > { %p2809_p10 = pneg %p2808_p4 }
  0x70   : > { %p2816_p3 = pnand %p2815_p1, %p2809_p10 }
  0x72   : > { %2819 = shalt.err (!%p2816_p3)
}
  0x73   : > { %2572 = dma.hbm_to_vmem [thread:$0]  (!%p3307_p6), %s3909_s7, 256, %s452_s20, [#allocation16], %s3169_s28, %s3169_s28, %s3170_s14  }
  0x74   : > { %s2820_s30 = scalar_lea.hbm %s3911_s9, 256 }
  0x75   : > { %p2821_p1 = scmp.ne.s32.totalorder %s3911_s9, %s2820_s30  ;;  %p2827_p0 = scmp.lt.u32.totalorder %s2820_s30, %s3911_s9 }
  0x77   : > { %p2823_p3 = pnand %p2821_p1, %p3323_p8 }
  0x79   : > { %p2824_p13 = pneg %p2823_p3 }
  0x7b   : > { %p2829_p2 = pnand %p2827_p0, %p2824_p13 }
  0x7d   : > { %2832 = shalt.err (!%p2829_p2)
}
  0x7e   : > { %s2833_s19 = scalar_lea.vmem %s476_s29, 256  ;;  %p2841_p4 = scmp.lt.s32.totalorder %s476_s29, %s476_s29 }
  0x7f   : > { %p2834_p5 = scmp.ne.s32.totalorder %s476_s29, %s2833_s19  ;;  %p2842_p10 = scmp.lt.s32.totalorder %s2833_s19, %s2833_s19 }
  0x81   : > { %p2836_p7 = pnand %p2834_p5, %p3323_p8  ;;  %p2843_p11 = por %p2842_p10, %p2841_p4 }
  0x83   : > { %p2837_p9 = pneg %p2836_p7 }
  0x85   : > { %p2844_p12 = pnand %p2843_p11, %p2837_p9 }
  0x87   : > { %2847 = shalt.err (!%p2844_p12)
}
  0x88   : > { %2578 = dma.hbm_to_vmem [thread:$0]  (!%p3307_p6), %s3911_s9, 256, %s476_s29, [#allocation19], %s3169_s28, %s3169_s28, %s3170_s14  }
  0x89   : > { %s3173_s1 = smov [#allocation21]   ;;  %s3174_s15 = smov [#allocation8]  }
  0x8a   : > { %s502_s0 = sshll.u32 %s3173_s1, 4  ;;  %s393_s21 = sshll.u32 %s3174_s15, 4  ;;  %s503_s0 = int_to_ptr.vmem [resolvable:$true] %s502_s0  ;;  %s394_s21 = int_to_ptr.vmem [resolvable:$true] %s393_s21 }
  0x8b   : > { %s2848_s25 = scalar_lea.hbm %s3914_s12, 512 }
  0x8c   : > { %p2849_p1 = scmp.ne.s32.totalorder %s3914_s12, %s2848_s25  ;;  %p2855_p0 = scmp.lt.u32.totalorder %s2848_s25, %s3914_s12 }
  0x8e   : > { %p2851_p3 = pnand %p2849_p1, %p3323_p8 }
  0x90   : > { %p2852_p13 = pneg %p2851_p3 }
  0x92   : > { %p2857_p2 = pnand %p2855_p0, %p2852_p13 }
  0x94   : > { %2860 = shalt.err (!%p2857_p2)
}
  0x95   : > { %s2861_s29 = scalar_lea.vmem %s503_s0, 512  ;;  %p2869_p4 = scmp.lt.s32.totalorder %s503_s0, %s503_s0 }
  0x96   : > { %p2862_p5 = scmp.ne.s32.totalorder %s503_s0, %s2861_s29  ;;  %p2870_p10 = scmp.lt.s32.totalorder %s2861_s29, %s2861_s29 }
  0x98   : > { %p2864_p7 = pnand %p2862_p5, %p3323_p8  ;;  %p2871_p11 = por %p2870_p10, %p2869_p4 }
  0x9a   : > { %p2865_p9 = pneg %p2864_p7 }
  0x9c   : > { %p2872_p12 = pnand %p2871_p11, %p2865_p9 }
  0x9e   : > { %2875 = shalt.err (!%p2872_p12)
}
  0x9f   : > { %2584 = dma.hbm_to_vmem [thread:$0]  (!%p3307_p6), %s3914_s12, 512, %s503_s0, [#allocation22], %s3169_s28, %s3169_s28, %s3170_s14  }
  0xa0   : > { %s3937_s2 = sld [smem:[#allocation38_spill]] }
  0xa6   : > { %s2876_s11 = scalar_lea.hbm %s3937_s2, 16 }
  0xa7   : > { %p2877_p1 = scmp.ne.s32.totalorder %s3937_s2, %s2876_s11  ;;  %p2883_p0 = scmp.lt.u32.totalorder %s2876_s11, %s3937_s2 }
  0xa9   : > { %p2879_p3 = pnand %p2877_p1, %p3323_p8 }
  0xab   : > { %p2880_p13 = pneg %p2879_p3 }
  0xad   : > { %p2885_p2 = pnand %p2883_p0, %p2880_p13 }
  0xaf   : > { %2888 = shalt.err (!%p2885_p2)
}
  0xb0   : > { %s2889_s20 = scalar_lea.vmem %s394_s21, 16  ;;  %s2896_s28 = scalar_lea.vmem %s394_s21, 32 }
  0xb1   : > { %p2890_p5 = scmp.ne.s32.totalorder %s394_s21, %s2889_s20  ;;  %p2897_p4 = scmp.lt.s32.totalorder %s394_s21, %s394_s21 }
  0xb2   : > { %p2898_p10 = scmp.lt.s32.totalorder %s2896_s28, %s2889_s20 }
  0xb3   : > { %p2892_p7 = pnand %p2890_p5, %p3323_p8 }
  0xb4   : > { %p2899_p11 = por %p2898_p10, %p2897_p4 }
  0xb5   : > { %p2893_p9 = pneg %p2892_p7 }
  0xb7   : > { %p2900_p12 = pnand %p2899_p11, %p2893_p9 }
  0xb9   : > { %2903 = shalt.err (!%p2900_p12)
}
  0xba   : > { %2557 = dma.hbm_to_vmem [thread:$0]  (!%p3307_p6), %s3937_s2, 16, %s394_s21, [#allocation7]  }
  0xbb   : > { %s3175_s29 = smov [#allocation11]   ;;  %s3176_s1 = smov [#allocation14]  }
  0xbc   : > { %s417_s26 = sshll.u32 %s3175_s29, 4  ;;  %s441_s15 = sshll.u32 %s3176_s1, 4  ;;  %s418_s26 = int_to_ptr.vmem [resolvable:$true] %s417_s26  ;;  %s442_s15 = int_to_ptr.vmem [resolvable:$true] %s441_s15 }
  0xbd   : > { %s2904_s25 = scalar_lea.hbm %s3906_s4, 16 }
  0xbe   : > { %p2905_p1 = scmp.ne.s32.totalorder %s3906_s4, %s2904_s25  ;;  %p2911_p0 = scmp.lt.u32.totalorder %s2904_s25, %s3906_s4 }
  0xc0   : > { %p2907_p3 = pnand %p2905_p1, %p3323_p8 }
  0xc2   : > { %p2908_p13 = pneg %p2907_p3 }
  0xc4   : > { %p2913_p2 = pnand %p2911_p0, %p2908_p13 }
  0xc6   : > { %2916 = shalt.err (!%p2913_p2)
}
  0xc7   : > { %s2917_s21 = scalar_lea.vmem %s418_s26, 16  ;;  %s2924_s28 = scalar_lea.vmem %s418_s26, 32 }
  0xc8   : > { %p2918_p5 = scmp.ne.s32.totalorder %s418_s26, %s2917_s21  ;;  %p2925_p4 = scmp.lt.s32.totalorder %s418_s26, %s418_s26 }
  0xc9   : > { %p2926_p10 = scmp.lt.s32.totalorder %s2924_s28, %s2917_s21 }
  0xca   : > { %p2920_p7 = pnand %p2918_p5, %p3323_p8 }
  0xcb   : > { %p2927_p11 = por %p2926_p10, %p2925_p4 }
  0xcc   : > { %p2921_p9 = pneg %p2920_p7 }
  0xce   : > { %p2928_p12 = pnand %p2927_p11, %p2921_p9 }
  0xd0   : > { %2931 = shalt.err (!%p2928_p12)
}
  0xd1   : > { %2563 = dma.hbm_to_vmem [thread:$0]  (!%p3307_p6), %s3906_s4, 16, %s418_s26, [#allocation10]  }
  0xd2   : > { %s2932_s30 = scalar_lea.hbm %s3908_s6, 16 }
  0xd3   : > { %p2933_p1 = scmp.ne.s32.totalorder %s3908_s6, %s2932_s30  ;;  %p2939_p0 = scmp.lt.u32.totalorder %s2932_s30, %s3908_s6 }
  0xd5   : > { %p2935_p3 = pnand %p2933_p1, %p3323_p8 }
  0xd7   : > { %p2936_p13 = pneg %p2935_p3 }
  0xd9   : > { %p2941_p2 = pnand %p2939_p0, %p2936_p13 }
  0xdb   : > { %2944 = shalt.err (!%p2941_p2)
}
  0xdc   : > { %s2945_s19 = scalar_lea.vmem %s442_s15, 16  ;;  %s2952_s26 = scalar_lea.vmem %s442_s15, 32 }
  0xdd   : > { %p2946_p5 = scmp.ne.s32.totalorder %s442_s15, %s2945_s19  ;;  %p2953_p4 = scmp.lt.s32.totalorder %s442_s15, %s442_s15 }
  0xde   : > { %p2954_p10 = scmp.lt.s32.totalorder %s2952_s26, %s2945_s19 }
  0xdf   : > { %p2948_p7 = pnand %p2946_p5, %p3323_p8 }
  0xe0   : > { %p2955_p11 = por %p2954_p10, %p2953_p4 }
  0xe1   : > { %p2949_p9 = pneg %p2948_p7 }
  0xe3   : > { %p2956_p12 = pnand %p2955_p11, %p2949_p9 }
  0xe5   : > { %2959 = shalt.err (!%p2956_p12)
}
  0xe6   : > { %2569 = dma.hbm_to_vmem [thread:$0]  (!%p3307_p6), %s3908_s6, 16, %s442_s15, [#allocation13]  }
  0xe7   : > { %s3177_s28 = smov [#allocation17]   ;;  %s3178_s0 = smov [#allocation20]  }
  0xe8   : > { %s465_s14 = sshll.u32 %s3177_s28, 4  ;;  %s489_s29 = sshll.u32 %s3178_s0, 4  ;;  %s466_s14 = int_to_ptr.vmem [resolvable:$true] %s465_s14  ;;  %s490_s29 = int_to_ptr.vmem [resolvable:$true] %s489_s29 }
  0xe9   : > { %s2960_s11 = scalar_lea.hbm %s3910_s8, 16 }
  0xea   : > { %p2961_p1 = scmp.ne.s32.totalorder %s3910_s8, %s2960_s11  ;;  %p2967_p0 = scmp.lt.u32.totalorder %s2960_s11, %s3910_s8 }
  0xec   : > { %p2963_p3 = pnand %p2961_p1, %p3323_p8 }
  0xee   : > { %p2964_p13 = pneg %p2963_p3 }
  0xf0   : > { %p2969_p2 = pnand %p2967_p0, %p2964_p13 }
  0xf2   : > { %2972 = shalt.err (!%p2969_p2)
}
  0xf3   : > { %s2973_s15 = scalar_lea.vmem %s466_s14, 16  ;;  %s2980_s26 = scalar_lea.vmem %s466_s14, 32 }
  0xf4   : > { %p2974_p5 = scmp.ne.s32.totalorder %s466_s14, %s2973_s15  ;;  %p2981_p4 = scmp.lt.s32.totalorder %s466_s14, %s466_s14 }
  0xf5   : > { %p2982_p10 = scmp.lt.s32.totalorder %s2980_s26, %s2973_s15 }
  0xf6   : > { %p2976_p7 = pnand %p2974_p5, %p3323_p8 }
  0xf7   : > { %p2983_p11 = por %p2982_p10, %p2981_p4 }
  0xf8   : > { %p2977_p9 = pneg %p2976_p7 }
  0xfa   : > { %p2984_p12 = pnand %p2983_p11, %p2977_p9 }
  0xfc   : > { %2987 = shalt.err (!%p2984_p12)
}
  0xfd   : > { %2575 = dma.hbm_to_vmem [thread:$0]  (!%p3307_p6), %s3910_s8, 16, %s466_s14, [#allocation16]  }
  0xfe   : > { %s2988_s1 = scalar_lea.hbm %s3912_s10, 16 }
  0xff   : > { %p2989_p1 = scmp.ne.s32.totalorder %s3912_s10, %s2988_s1  ;;  %p2995_p0 = scmp.lt.u32.totalorder %s2988_s1, %s3912_s10 }
 0x101   : > { %p2991_p3 = pnand %p2989_p1, %p3323_p8 }
 0x103   : > { %p2992_p13 = pneg %p2991_p3 }
 0x105   : > { %p2997_p2 = pnand %p2995_p0, %p2992_p13 }
 0x107   : > { %3000 = shalt.err (!%p2997_p2)
}
 0x108   : > { %s3001_s23 = scalar_lea.vmem %s490_s29, 16  ;;  %s3008_s14 = scalar_lea.vmem %s490_s29, 32 }
 0x109   : > { %p3002_p5 = scmp.ne.s32.totalorder %s490_s29, %s3001_s23  ;;  %p3009_p4 = scmp.lt.s32.totalorder %s490_s29, %s490_s29 }
 0x10a   : > { %p3010_p10 = scmp.lt.s32.totalorder %s3008_s14, %s3001_s23 }
 0x10b   : > { %p3004_p7 = pnand %p3002_p5, %p3323_p8 }
 0x10c   : > { %p3011_p11 = por %p3010_p10, %p3009_p4 }
 0x10d   : > { %p3005_p9 = pneg %p3004_p7 }
 0x10f   : > { %p3012_p12 = pnand %p3011_p11, %p3005_p9 }
 0x111   : > { %3015 = shalt.err (!%p3012_p12)
}
 0x112   : > { %2581 = dma.hbm_to_vmem [thread:$0]  (!%p3307_p6), %s3912_s10, 16, %s490_s29, [#allocation19]  }
 0x113   : > { %s3179_s26 = smov [#allocation23]   ;;  %s3016_s0 = scalar_lea.hbm %s3915_s13, 16 }
 0x114   : > { %s516_s20 = sshll.u32 %s3179_s26, 4  ;;  %p3017_p1 = scmp.ne.s32.totalorder %s3915_s13, %s3016_s0  ;;  %s517_s20 = int_to_ptr.vmem [resolvable:$true] %s516_s20 }
 0x115   : > { %p3023_p0 = scmp.lt.u32.totalorder %s3016_s0, %s3915_s13 }
 0x116   : > { %p3019_p3 = pnand %p3017_p1, %p3323_p8 }
 0x118   : > { %p3020_p13 = pneg %p3019_p3 }
 0x11a   : > { %p3025_p2 = pnand %p3023_p0, %p3020_p13 }
 0x11c   : > { %3028 = shalt.err (!%p3025_p2)
}
 0x11d   : > { %s3029_s29 = scalar_lea.vmem %s517_s20, 16  ;;  %s3036_s27 = scalar_lea.vmem %s517_s20, 32 }
 0x11e   : > { %p3030_p5 = scmp.ne.s32.totalorder %s517_s20, %s3029_s29  ;;  %p3037_p4 = scmp.lt.s32.totalorder %s517_s20, %s517_s20 }
 0x11f   : > { %p3038_p10 = scmp.lt.s32.totalorder %s3036_s27, %s3029_s29 }
 0x120   : > { %p3032_p7 = pnand %p3030_p5, %p3323_p8 }
 0x121   : > { %p3039_p11 = por %p3038_p10, %p3037_p4 }
 0x122   : > { %p3033_p9 = pneg %p3032_p7 }
 0x124   : > { %p3040_p12 = pnand %p3039_p11, %p3033_p9 }
 0x126   : > { %3043 = shalt.err (!%p3040_p12)
}
 0x127   : > { %s3938_s22 = sld [smem:[#allocation33_spill]]  ;;  %s3939_s19 = sld [smem:[#allocation34_spill]] }
 0x128   : > { %2587 = dma.hbm_to_vmem [thread:$0]  (!%p3307_p6), %s3915_s13, 16, %s517_s20, [#allocation22]  }
 0x129   : > { %s2285_s15 = sadd.s32 4294967294, %s3164_s18   ;;  %s3572_s24 = sadd.s32 1, %s3164_s18  }
 0x12a   : > { %s41_s26 = ssub.s32 %s3164_s18, %s3572_s24  ;;  %s44_s21 = sadd.s32 1, %s3160_s17 }
 0x12b   : > { %p42_p8 = scmp.eq.s32.totalorder %s41_s26, 0  ;;  %p51_p1 = scmp.ne.s32.totalorder %s3160_s17, %s3156_s16 }
 0x12c   : > { %p52_p3 = scmp.eq.s32.totalorder %s3164_s18, 0  ;;  %p360_p7 = scmp.eq.s32.totalorder %s2285_s15, 1 }
 0x12d   : > { %p57_p13 = scmp.ne.s32.totalorder %s3156_s16, %s3938_s22  ;;  %p3941_p2 = scmp.eq.s32.totalorder %s3939_s19, 0 }
 0x12e   : > { %s3583_s28 = scalar_select %p42_p8, %s3160_s17, %s44_s21  }
 0x12f   : > { %p3585_p0 = por %p52_p3, %p51_p1  ;;  %p3591_p6 = por %p3941_p2, %p57_p13 }
 0x130   : > { %p354_p5 = scmp.eq.s32.totalorder %s3939_s19, 1  ;;  %p2608_p9 = scmp.lt.s32.totalorder %s3164_s18, 2 }
 0x131   : > { %s527_s1 = sand.u32 1, %s3160_s17   ;;  %p3602_p10 = por %p360_p7, %p57_p13 }
 0x132   : > { %p3598_p4 = por %p354_p5, %p51_p1  ;;  %s2300_s25 = sshll.u32 %s527_s1, 3 }
 0x133   : > { %s3944_s11 = scalar_select %p3602_p10, 1, 0 }
 0x134   : > { %s3943_s30 = scalar_select %p3598_p4, 1, 0 }
 0x135   : > { %s2301_s29 = sshll.u32 %s3164_s18, 7  ;;  %s3945_s14 = sld [smem:[#allocation36_spill]] }
 0x136   : > { %s531_s19 = scalar_lea.vmem [#allocation3], %s2300_s25  ;;  %p3616_p11 = pnand %p2608_p9, %p3585_p0 }
 0x137   : > { %s538_s15 = sshll.u32 %s531_s19, 4  ;;  %s528_s21 = scalar_lea.sflag [#allocation4], %s527_s1  ;;  %s3612_s15 = int_to_ptr.vmem [resolvable:$true] %s538_s15 }
 0x138   : > { %p3046_p8 = pneg %p3616_p11 }
 0x13b   : > { %s3610_s22 = scalar_lea.hbm %s3945_s14, %s2301_s29  ;;  %s3049_s27 = scalar_lea.hbm %s3945_s14, 256 }
 0x13c   : > { %s3044_s2 = scalar_lea.hbm %s3610_s22, 128  ;;  %p3050_p13 = scmp.lt.u32.totalorder %s3610_s22, %s3945_s14 }
 0x13d   : > { %p3045_p12 = scmp.ne.s32.totalorder %s3610_s22, %s3044_s2  ;;  %p3051_p0 = scmp.lt.u32.totalorder %s3049_s27, %s3044_s2 }
 0x13e   : > { %p3053_p5 = scmp.lt.u32.totalorder %s3044_s2, %s3610_s22 }
 0x13f   : > { %p3047_p1 = pnand %p3046_p8, %p3045_p12  ;;  %p3052_p2 = por %p3051_p0, %p3050_p13 }
 0x141   : > { %p3048_p3 = pneg %p3047_p1  ;;  %p3054_p7 = por %p3053_p5, %p3052_p2 }
 0x143   : > { %p3055_p9 = pnand %p3054_p7, %p3048_p3 }
 0x145   : > { %3058 = shalt.err (!%p3055_p9)
}
 0x146   : > { %s3059_s1 = scalar_lea.vmem %s3612_s15, 128  ;;  %s3180_s19 = smov [#allocation3]  }
 0x147   : > { %p3060_p12 = scmp.ne.s32.totalorder %s3612_s15, %s3059_s1  ;;  %s3064_s25 = sshll.u32 %s3180_s19, 4  ;;  %s3065_s25 = int_to_ptr.vmem [resolvable:$false] %s3064_s25 }
 0x148   : > { %s3066_s29 = scalar_lea.vmem %s3065_s25, 256  ;;  %p3067_p4 = scmp.lt.s32.totalorder %s3612_s15, %s3065_s25 }
 0x149   : > { %p3062_p1 = pnand %p3060_p12, %p3046_p8  ;;  %p3068_p13 = scmp.lt.s32.totalorder %s3066_s29, %s3059_s1 }
 0x14b   : > { %p3063_p10 = pneg %p3062_p1  ;;  %p3069_p0 = por %p3068_p13, %p3067_p4 }
 0x14d   : > { %p3070_p2 = pnand %p3069_p0, %p3063_p10 }
 0x14f   : > { %3073 = shalt.err (!%p3070_p2)
}
 0x150   : > { %2591 = dma.hbm_to_vmem [thread:$0]  (!%p3616_p11), %s3610_s22, 128, %s3612_s15, %s528_s21  }
 0x151   : > { %s3947_s2 = sld [smem:[#allocation35_spill]] }
 0x157   : > { %p3948_p3 = scmp.ne.s32.totalorder %s3947_s2, 0 }
 0x158   : > { %s3648_s27 = sand.u32 (!%p3948_p3), 1, %s3156_s16  }
 0x159   : > { %547 = sbr.rel (%p3948_p3) target bundleno = 2192 (0x890), region = 76  ;;  %s2303_s0 = sshll.u32 (!%p3948_p3), %s3648_s27, 3 }
 0x15a   : > { %s550_s23 = scalar_lea.sflag (!%p3948_p3), [#allocation4], %s3648_s27  ;;  %s553_s1 = scalar_lea.vmem (!%p3948_p3), [#allocation3], %s2303_s0 }
 0x160   : > { %3119 = dma.done.wait (%p3591_p6), %s550_s23, 128  }
 0x161   : > { %3121 = vsyncadd (%p3591_p6), %s550_s23, 4294967168  ;;  %s3949_s22 = sld [smem:[#allocation34_spill]] }
 0x167   : > { %p3950_p4 = scmp.eq.s32.totalorder %s3949_s22, 0 }
 0x169   : > { %3123 = dma.done.wait (%p3950_p4), [#allocation7], 272   ;;  %p3951_p10 = pmov %p3950_p4 }
 0x16a   : > { %p3952_p11 = pmov %p3950_p4 }
 0x16b   : > { %3125 = vsyncadd (%p3951_p10), [#allocation7], 4294967024 }
 0x16c   : > { %3127 = dma.done.wait (%p3952_p11), [#allocation10], 272   ;;  %p3953_p8 = pmov %p3950_p4 }
 0x16d   : > { %p3954_p5 = pmov %p3950_p4 }
 0x16e   : > { %3129 = vsyncadd (%p3953_p8), [#allocation10], 4294967024 }
 0x16f   : > { %3131 = dma.done.wait (%p3954_p5), [#allocation13], 272   ;;  %p3955_p7 = pmov %p3950_p4 }
 0x170   : > { %p3956_p6 = pmov %p3950_p4 }
 0x171   : > { %3133 = vsyncadd (%p3955_p7), [#allocation13], 4294967024 }
 0x172   : > { %3135 = dma.done.wait (%p3956_p6), [#allocation16], 272   ;;  %p3957_p9 = pmov %p3950_p4 }
 0x173   : > { %p3958_p12 = pmov %p3950_p4 }
 0x174   : > { %3137 = vsyncadd (%p3957_p9), [#allocation16], 4294967024 }
 0x175   : > { %3139 = dma.done.wait (%p3958_p12), [#allocation19], 272   ;;  %p3959_p1 = pmov %p3950_p4 }
 0x177   : > { %3141 = vsyncadd (%p3959_p1), [#allocation19], 4294967024  ;;  %p3960_p13 = pmov %p3959_p1 }
 0x178   : > { %p3961_p0 = pmov %p3959_p1 }
 0x179   : > { %3143 = dma.done.wait (%p3960_p13), [#allocation22], 528  }
 0x17a   : > { %3145 = vsyncadd (%p3961_p0), [#allocation22], 4294966768  ;;  %v3181_v0 = vmov 0.0   ;;  %vm3182_vm0 = vmmov 0   ;;  %v2678_v1 = vld [vmem:[#allocation9] sm:$0xff]   ;;  %v2679_v2 = vld [vmem:[#allocation6] sm:$0xff]   ;;  %v857_v29 = vlaneseq }
 0x17b   : > { %2407 = vmatprep.subr.bf16.mxu1 %v3181_v0  ;;  %2399 = vmatprep.subr.bf16.mxu0 %v3181_v0  ;;  %v2680_v3 = vld [vmem:[#allocation9 + $0x8] sm:$0xff]   ;;  %vm672_vm1 = vcmask 261120   ;;  %v2681_v5 = vld [vmem:[#allocation6 + $0x8] sm:$0xff]   ;;  %v2321_v9 = vld [vmem:[#allocation11] ss:$0 sm:$0xff]  ;;  %s3183_s20 = smov 104  }
 0x17c   : > { %2411 = vmatprep.mubr.msk.bf16.mxu1 %vm3182_vm0, %v3181_v0  ;;  %2403 = vmatprep.mubr.msk.bf16.mxu0 %vm3182_vm0, %v3181_v0  ;;  %v647_v4 = vld [vmem:[%s553_s1] sm:$0xff]  ;;  %v2682_v7 = vld [vmem:[#allocation12] sm:$0xff]   ;;  %s3184_s15 = smov 120   ;;  %s3185_s26 = smov 112   ;;  %v3186_v27 = vmov 1983009808  }
 0x17d   : > { %2408 = vmatpush3.bf16.msra.mxu1 %v2678_v1  ;;  %2400 = vmatpush3.bf16.msra.mxu0 %v2679_v2  ;;  %v648_v6 = vpack.c.bf16 %v647_v4, %v647_v4  ;;  %v2683_v8 = vld [vmem:[#allocation12 + $0x8] sm:$0xff]   ;;  %v2325_v21 = vld [vmem:[#allocation14] ss:$0 sm:$0xff]  ;;  %v855_v28 = vunpack.c.l.s4 %v3186_v27  ;;  %v3187_v30 = vmov 1934713408   ;;  %v858_v33 = vshrl.u32 %v857_v29, 7 }
 0x17e   : > { %2409 = vmatprep.subr.bf16.mxu1 %v3181_v0  ;;  %2401 = vmatprep.subr.bf16.mxu0 %v3181_v0  ;;  %v2317_v11 = vld [vmem:[#allocation8] ss:$0 sm:$0xff]  ;;  %v887_v31 = vunpack.c.l.s4 %v3187_v30  ;;  %vm1292_vm2 = vcmask 64512   ;;  %vm1520_vm3 = vcmask 1043456   ;;  %s3188_s21 = smov 16   ;;  %s3189_s19 = smov 8  }
 0x17f   : > { %v856_v32 = vunpack.c.0.s8 %v855_v28  ;;  %s3190_s25 = smov 24   ;;  %vm1859_vm4 = vcmask 130048   ;;  %vm1861_vm5 = vcmask 195584   ;;  %s1997_s29 = sld [smem:[#allocation2]]  ;;  %vm2042_vm7 = vcmask 523264  }
 0x180   : > { %v888_v36 = vunpack.c.0.s8 %v887_v31  ;;  %s2360_s2 = sshll.u32 %s3949_s22, 7  ;;  %s645_s23 = scalar_lea.vmem [#allocation24], %s2303_s0 }
 0x181   : > { %2410 = vmatpush3.bf16.msra.mxu1 %v2680_v3  ;;  %2402 = vmatpush3.bf16.msra.mxu0 %v2681_v5  ;;  %v3710_v37 = vsub.s32 %v856_v32, %v858_v33  ;;  %s2101_s1 = sshll.u32 %s645_s23, 4  ;;  %s2088_s22 = scalar_lea.sflag [#allocation5], %s3648_s27  ;;  %s3859_s1 = int_to_ptr.vmem [resolvable:$true] %s2101_s1 }
 0x182   : > { %2423 = vmatprep.subr.bf16.mxu1 %v3181_v0  ;;  %2415 = vmatprep.subr.bf16.mxu0 %v3181_v0  ;;  %v3712_v44 = vsub.s32 %v888_v36, %v858_v33  ;;  %s3074_s0 = scalar_lea.vmem %s3859_s1, 128  ;;  %p3963_p3 = scmp.ne.s32.totalorder %s3943_s30, 0 }
 0x183   : > { %p3075_p2 = scmp.ne.s32.totalorder %s3859_s1, %s3074_s0 }
 0x184   : > { %2412 = vmatmul.mubr.msk.bf16.vlgmr.msra.gmra.mrb[0].mxu1 %vm672_vm1, %v648_v6  ;;  %2404 = vmatmul.mubr.msk.bf16.vlgmr.msra.gmra.mrb[0].mxu0 %vm672_vm1, %v648_v6 }
 0x185   : > { %2425 = vmatprep.mubr.msk.bf16.mxu1 %vm3182_vm0, %v3181_v0  ;;  %2419 = vmatprep.mubr.msk.bf16.mxu0 %vm3182_vm0, %v3181_v0  ;;  %p3076_p4 = pnand %p3075_p2, %p3963_p3 }
 0x186   : > { %2416 = vmatpush3.bf16.msra.mxu0 %v2682_v7 }
 0x187   : > { %2417 = vmatprep.subr.bf16.mxu0 %v3181_v0  ;;  %p3077_p10 = pneg %p3076_p4 }
 0x18a   : > { %2418 = vmatpush3.bf16.msra.mxu0 %v2683_v8 }
 0x18b   : > { %2429 = vmatprep.subr.bf16.mxu0 %v3181_v0 }
 0x18d   : > { %2420 = vmatmul.mubr.msk.bf16.vlgmr.msra.gmra.mrb[4].mxu0 %vm672_vm1, %v648_v6 }
 0x18e   : > { %2431 = vmatprep.mubr.msk.bf16.mxu0 %vm3182_vm0, %v3181_v0 }
 0x257   : > { %v773_v10 = vpop.f32.mrb[0].mxu1  ;;  %v710_v14 = vpop.f32.mrb[0].mxu0 }
 0x258   : > { %v774_v12 = vadd.f32 %v2321_v9, %v773_v10  ;;  %v2413_v13 = vpop.f32.mrb[1].mxu1  ;;  %v2405_v16 = vpop.f32.mrb[1].mxu0  ;;  %v711_v18 = vadd.f32 %v2317_v11, %v710_v14 }
 0x259   : > { %v776_v15 = vpop.f32.mrb[2].mxu1  ;;  %v713_v19 = vpop.f32.mrb[2].mxu0 }
 0x25a   : > { %999 = vrot.lane.b32.xlu1 %v774_v12, %s3183_s20  ;;  %993 = vrot.lane.b32.xlu0 %v774_v12, %s3184_s15  ;;  %v2414_v17 = vpop.f32.mrb[3].mxu1  ;;  %v2406_v20 = vpop.f32.mrb[3].mxu0 }
 0x25e   : > { %996 = vrot.lane.b32.xlu0 %v774_v12, %s3185_s26  ;;  %843 = vrot.lane.b32.xlu1 %v711_v18, %s3184_s15 }
 0x260   : > { %v836_v22 = vpop.f32.mrb[4].mxu0 }
 0x261   : > { %v3707_v23 = vadd.f32 %v2325_v21, %v836_v22  ;;  %v2421_v24 = vpop.f32.mrb[5].mxu0 }
 0x262   : > { %846 = vrot.lane.b32.xlu0 %v711_v18, %s3185_s26  ;;  %849 = vrot.lane.b32.xlu1 %v711_v18, %s3183_s20  ;;  %v839_v25 = vpop.f32.mrb[6].mxu0 }
 0x263   : > { %v2422_v26 = vpop.f32.mrb[7].mxu0 }
 0x266   : > { %1143 = vrot.lane.b32.xlu0 %v3707_v23, %s3184_s15 }
 0x2cc   : > { %v1000_v34 = vpop.permute.xlu1 %999  ;;  %v994_v35 = vpop.permute.xlu0 %993 }
 0x2cd   : > { %v1018_v38 = vcombine.low %v994_v35, %v1000_v34  ;;  %v1019_v39 = vcombine.high %v994_v35, %v1000_v34 }
 0x2cf   : > { %v1026_v45 = vrot.slane %v1018_v38, %v3710_v37  ;;  %v1033_v46 = vrot.slane %v1019_v39, %v3710_v37 }
 0x2d0   : > { %v997_v40 = vpop.permute.xlu0 %996  ;;  %v844_v41 = vpop.permute.xlu1 %843 }
 0x2d1   : > { %v1002_v42 = vcombine.low %v774_v12, %v997_v40  ;;  %v1003_v43 = vcombine.high %v774_v12, %v997_v40 }
 0x2d3   : > { %v1010_v47 = vrot.slane %v1002_v42, %v3710_v37  ;;  %v1017_v48 = vrot.slane %v1003_v43, %v3710_v37 }
 0x2d4   : > { %v847_v49 = vpop.permute.xlu0 %846  ;;  %v850_v50 = vpop.permute.xlu1 %849 }
 0x2d5   : > { %v1034_v51 = vcombine.low %v1010_v47, %v1026_v45  ;;  %v1035_v52 = vcombine.high %v1010_v47, %v1026_v45  ;;  %v1050_v53 = vcombine.low %v1017_v48, %v1033_v46  ;;  %v1051_v54 = vcombine.high %v1017_v48, %v1033_v46 }
 0x2d6   : > { %v852_v55 = vcombine.low %v711_v18, %v847_v49  ;;  %v853_v56 = vcombine.high %v711_v18, %v847_v49  ;;  %v868_v57 = vcombine.low %v844_v41, %v850_v50  ;;  %v869_v58 = vcombine.high %v844_v41, %v850_v50 }
 0x2d7   : > { %v1042_v59 = vrot.slane %v1034_v51, %v3712_v44  ;;  %v1049_v60 = vrot.slane %v1035_v52, %v3712_v44  ;;  %v1058_v61 = vrot.slane %v1050_v53, %v3712_v44  ;;  %v1065_v62 = vrot.slane %v1051_v54, %v3712_v44 }
 0x2d8   : > { %v860_v63 = vrot.slane %v852_v55, %v3710_v37  ;;  %v867_v1 = vrot.slane %v853_v56, %v3710_v37  ;;  %v876_v2 = vrot.slane %v868_v57, %v3710_v37  ;;  %v883_v3 = vrot.slane %v869_v58, %v3710_v37 }
 0x2d9   : > { %v1070_v4 = vcombine.low %v1042_v59, %v1049_v60  ;;  %v2331_v5 = vcombine.high %v1042_v59, %v1049_v60  ;;  %v1086_v6 = vcombine.low %v1058_v61, %v1065_v62  ;;  %v2332_v7 = vcombine.high %v1058_v61, %v1065_v62 }
 0x2da   : > { %v884_v8 = vcombine.low %v860_v63, %v876_v2  ;;  %v885_v9 = vcombine.high %v860_v63, %v876_v2  ;;  %v900_v10 = vcombine.low %v867_v1, %v883_v3  ;;  %v901_v11 = vcombine.high %v867_v1, %v883_v3 }
 0x2db   : > { %v1077_v12 = vrot.slane %v1070_v4, %v3710_v37  ;;  %v1085_v13 = vrot.slane %v2331_v5, %v3710_v37  ;;  %v1093_v14 = vrot.slane %v1086_v6, %v3710_v37  ;;  %v1101_v15 = vrot.slane %v2332_v7, %v3710_v37 }
 0x2dc   : > { %v892_v16 = vrot.slane %v884_v8, %v3712_v44  ;;  %v899_v17 = vrot.slane %v885_v9, %v3712_v44  ;;  %v908_v18 = vrot.slane %v900_v10, %v3712_v44  ;;  %v915_v19 = vrot.slane %v901_v11, %v3712_v44 }
 0x2dd   : > { %v1102_v20 = vcombine.low %v1077_v12, %v1085_v13  ;;  %v1118_v21 = vcombine.low %v1093_v14, %v1101_v15  ;;  %v1103_v22 = vcombine.high %v1077_v12, %v1085_v13  ;;  %v1119_v24 = vcombine.high %v1093_v14, %v1101_v15 }
 0x2de   : > { %v920_v25 = vcombine.low %v892_v16, %v899_v17  ;;  %v2329_v26 = vcombine.high %v892_v16, %v899_v17  ;;  %v936_v27 = vcombine.low %v908_v18, %v915_v19  ;;  %v2330_v28 = vcombine.high %v908_v18, %v915_v19 }
 0x2df   : > { %v1110_v29 = vrot.slane %v1102_v20, %v3712_v44  ;;  %v1126_v30 = vrot.slane %v1118_v21, %v3712_v44  ;;  %v1117_v38 = vrot.slane %v1103_v22, %v3712_v44  ;;  %v1133_v39 = vrot.slane %v1119_v24, %v3712_v44 }
 0x2e0   : > { %v927_v31 = vrot.slane %v920_v25, %v3710_v37  ;;  %v935_v32 = vrot.slane %v2329_v26, %v3710_v37  ;;  %v943_v33 = vrot.slane %v936_v27, %v3710_v37  ;;  %v951_v34 = vrot.slane %v2330_v28, %v3710_v37  ;;  %v1144_v25 = vpop.permute.xlu0 %1143 }
 0x2e1   : > { %v1134_v35 = vcombine.low %v1110_v29, %v1126_v30  ;;  %v1135_v36 = vcombine.high %v1110_v29, %v1126_v30  ;;  %v1136_v49 = vcombine.low %v1117_v38, %v1133_v39  ;;  %v1137_v50 = vcombine.high %v1117_v38, %v1133_v39 }
 0x2e2   : > { %v952_v40 = vcombine.low %v927_v31, %v935_v32  ;;  %v968_v41 = vcombine.low %v943_v33, %v951_v34  ;;  %v953_v51 = vcombine.high %v927_v31, %v935_v32  ;;  %v969_v52 = vcombine.high %v943_v33, %v951_v34 }
 0x2e3   : > { %v1138_v42 = vpack.c.bf16 %v1134_v35, %v1134_v35  ;;  %v1139_v43 = vpack.c.bf16 %v1135_v36, %v1135_v36  ;;  %v1140_v55 = vpack.c.bf16 %v1136_v49, %v1136_v49  ;;  %v1141_v56 = vpack.c.bf16 %v1137_v50, %v1137_v50 }
 0x2e4   : > { %v960_v45 = vrot.slane %v952_v40, %v3712_v44  ;;  %v976_v46 = vrot.slane %v968_v41, %v3712_v44  ;;  %v967_v59 = vrot.slane %v953_v51, %v3712_v44  ;;  %v983_v60 = vrot.slane %v969_v52, %v3712_v44 }
 0x2e5   : > { %v1297_v47 = vsel %vm1292_vm2, %v1138_v42, 0  ;;  %v1343_v48 = vsel %vm1292_vm2, %v1139_v43, 0  ;;  %v1389_v61 = vsel %vm1292_vm2, %v1140_v55, 0  ;;  %v1435_v62 = vsel %vm1292_vm2, %v1141_v56, 0 }
 0x2e6   : > { %2424 = vmatpush3.bf16.xpose.msra.mxu1 %v1297_v47  ;;  %2430 = vmatpush3.bf16.xpose.msra.mxu0 %v1343_v48  ;;  %v984_v53 = vcombine.low %v960_v45, %v976_v46  ;;  %v985_v54 = vcombine.high %v960_v45, %v976_v46  ;;  %v986_v63 = vcombine.low %v967_v59, %v983_v60 }
 0x2e7   : > { %2435 = vmatprep.subr.bf16.mxu1 %v3181_v0  ;;  %2441 = vmatprep.subr.bf16.mxu0 %v3181_v0  ;;  %v987_v1 = vcombine.high %v967_v59, %v983_v60 }
 0x2e8   : > { %v988_v57 = vpack.c.bf16 %v984_v53, %v984_v53  ;;  %v989_v58 = vpack.c.bf16 %v985_v54, %v985_v54  ;;  %v990_v2 = vpack.c.bf16 %v986_v63, %v986_v63 }
 0x2e9   : > { %v991_v3 = vpack.c.bf16 %v987_v1, %v987_v1 }
 0x2ed   : > { %2426 = vmatmul.mubr.msk.bf16.vlgmr.msra.gmra.mrb[4].mxu1 %vm1292_vm2, %v988_v57  ;;  %2432 = vmatmul.mubr.msk.bf16.vlgmr.msra.gmra.mrb[8].mxu0 %vm1292_vm2, %v989_v58 }
 0x2ee   : > { %2436 = vmatpush3.bf16.xpose.msra.mxu1 %v1389_v61  ;;  %2442 = vmatpush3.bf16.xpose.msra.mxu0 %v1435_v62 }
 0x2ef   : > { %2437 = vmatprep.mubr.msk.bf16.mxu1 %vm3182_vm0, %v3181_v0  ;;  %2443 = vmatprep.mubr.msk.bf16.mxu0 %vm3182_vm0, %v3181_v0 }
 0x2f0   : > { %2447 = vmatprep.subr.bf16.mxu1 %v3181_v0  ;;  %2453 = vmatprep.subr.bf16.mxu0 %v3181_v0 }
 0x2f5   : > { %2438 = vmatmul.mubr.msk.bf16.vlgmr.msra.gmra.mrb[8].mxu1 %vm1292_vm2, %v990_v2  ;;  %2444 = vmatmul.mubr.msk.bf16.vlgmr.msra.gmra.mrb[12].mxu0 %vm1292_vm2, %v991_v3 }
 0x2f6   : > { %2449 = vmatprep.mubr.msk.bf16.mxu1 %vm3182_vm0, %v3181_v0  ;;  %2455 = vmatprep.mubr.msk.bf16.mxu0 %vm3182_vm0, %v3181_v0 }
 0x3c0   : > { %v1333_v4 = vpop.f32.mrb[4].mxu1  ;;  %v1379_v5 = vpop.f32.mrb[8].mxu0 }
 0x3c1   : > { %v2427_v6 = vpop.f32.mrb[5].mxu1  ;;  %v2433_v7 = vpop.f32.mrb[9].mxu0  ;;  %v1477_v8 = vsel %vm1292_vm2, %v1333_v4, -inf  ;;  %v1480_v9 = vsel %vm1292_vm2, %v1379_v5, -inf }
 0x3c2   : > { %v1336_v10 = vpop.f32.mrb[6].mxu1  ;;  %1478 = vmax.xlane.f32.xlu0 %v1477_v8  ;;  %1481 = vmax.xlane.f32.xlu1 %v1480_v9  ;;  %v1382_v11 = vpop.f32.mrb[10].mxu0 }
 0x3c3   : > { %v2428_v12 = vpop.f32.mrb[7].mxu1  ;;  %v2434_v13 = vpop.f32.mrb[11].mxu0 }
 0x3c8   : > { %v3768_v14 = vpop.f32.mrb[8].mxu1  ;;  %v3770_v15 = vpop.f32.mrb[12].mxu0 }
 0x3c9   : > { %v2439_v16 = vpop.f32.mrb[9].mxu1  ;;  %v2445_v17 = vpop.f32.mrb[13].mxu0  ;;  %v1483_v22 = vsel %vm1292_vm2, %v3768_v14, -inf  ;;  %v1486_v24 = vsel %vm1292_vm2, %v3770_v15, -inf }
 0x3ca   : > { %v1428_v18 = vpop.f32.mrb[10].mxu1  ;;  %v1474_v19 = vpop.f32.mrb[14].mxu0 }
 0x3cb   : > { %v2440_v20 = vpop.f32.mrb[11].mxu1  ;;  %v2446_v21 = vpop.f32.mrb[15].mxu0 }
 0x3d3   : > { %1146 = vrot.lane.b32.xlu1 %v3707_v23, %s3185_s26  ;;  %s3962_s26 = sld [smem:[#allocation39_spill]] }
 0x3d8   : > { %1149 = vrot.lane.b32.xlu0 %v3707_v23, %s3183_s20 }
 0x3f7   : > { %1484 = vmax.xlane.f32.xlu1 %v1483_v22  ;;  %1487 = vmax.xlane.f32.xlu0 %v1486_v24 }
 0x44f   : > { %v1479_v26 = vpop.xlane.xlu0 %1478  ;;  %v1482_v27 = vpop.xlane.xlu1 %1481 }
 0x450   : > { %v1489_v28 = vsub.f32 %v1333_v4, %v1479_v26  ;;  %v1490_v29 = vsub.f32 %v1379_v5, %v1482_v27 }
 0x452   : > { %v1493_v30 = vmul.f32 1.442695, %v1489_v28  ;;  %v1495_v31 = vmul.f32 1.442695, %v1490_v29 }
 0x453   : > { %v1150_v32 = vpop.permute.xlu0 %1149  ;;  %v1147_v33 = vpop.permute.xlu1 %1146 }
 0x454   : > { %2692 = vpow2.f32 %v1493_v30  ;;  %v1168_v34 = vcombine.low %v1144_v25, %v1150_v32  ;;  %v1169_v35 = vcombine.high %v1144_v25, %v1150_v32  ;;  %v1152_v36 = vcombine.low %v3707_v23, %v1147_v33 }
 0x455   : > { %2694 = vpow2.f32 %v1495_v31  ;;  %v1153_v38 = vcombine.high %v3707_v23, %v1147_v33 }
 0x456   : > { %v1176_v39 = vrot.slane %v1168_v34, %v3710_v37  ;;  %v1183_v40 = vrot.slane %v1169_v35, %v3710_v37  ;;  %v1160_v41 = vrot.slane %v1152_v36, %v3710_v37 }
 0x457   : > { %v1167_v42 = vrot.slane %v1153_v38, %v3710_v37 }
 0x458   : > { %v1184_v43 = vcombine.low %v1160_v41, %v1176_v39  ;;  %v1185_v45 = vcombine.high %v1160_v41, %v1176_v39 }
 0x459   : > { %v1200_v46 = vcombine.low %v1167_v42, %v1183_v40  ;;  %v1201_v47 = vcombine.high %v1167_v42, %v1183_v40 }
 0x45a   : > { %v1192_v48 = vrot.slane %v1184_v43, %v3712_v44  ;;  %v1199_v49 = vrot.slane %v1185_v45, %v3712_v44 }
 0x45b   : > { %v1208_v50 = vrot.slane %v1200_v46, %v3712_v44  ;;  %v1215_v23 = vrot.slane %v1201_v47, %v3712_v44 }
 0x45c   : > { %v1220_v51 = vcombine.low %v1192_v48, %v1199_v49  ;;  %v2333_v52 = vcombine.high %v1192_v48, %v1199_v49 }
 0x45d   : > { %v1236_v53 = vcombine.low %v1208_v50, %v1215_v23  ;;  %v2334_v54 = vcombine.high %v1208_v50, %v1215_v23 }
 0x45e   : > { %v2693_v55 = vpop.eup %2692  ;;  %v1227_v56 = vrot.slane %v1220_v51, %v3710_v37  ;;  %v1235_v57 = vrot.slane %v2333_v52, %v3710_v37 }
 0x45f   : > { %v2695_v58 = vpop.eup %2694  ;;  %v1243_v59 = vrot.slane %v1236_v53, %v3710_v37  ;;  %v1251_v60 = vrot.slane %v2334_v54, %v3710_v37  ;;  %v1501_v61 = vsel %vm1292_vm2, %v2693_v55, 0.0  ;;  %v1513_v20 = vpack.c.bf16 %v2693_v55, %v2693_v55 }
 0x460   : > { %v1504_v62 = vsel %vm1292_vm2, %v2695_v58, 0.0  ;;  %1502 = vadd.xlane.f32.xlu0 %v1501_v61  ;;  %v1252_v63 = vcombine.low %v1227_v56, %v1235_v57  ;;  %v1253_v1 = vcombine.high %v1227_v56, %v1235_v57  ;;  %v1514_v21 = vpack.c.bf16 %v2695_v58, %v2695_v58 }
 0x461   : > { %1505 = vadd.xlane.f32.xlu1 %v1504_v62  ;;  %v1268_v2 = vcombine.low %v1243_v59, %v1251_v60  ;;  %v1269_v3 = vcombine.high %v1243_v59, %v1251_v60 }
 0x462   : > { %v1260_v4 = vrot.slane %v1252_v63, %v3712_v44  ;;  %v1267_v5 = vrot.slane %v1253_v1, %v3712_v44 }
 0x463   : > { %v1276_v6 = vrot.slane %v1268_v2, %v3712_v44  ;;  %v1283_v7 = vrot.slane %v1269_v3, %v3712_v44 }
 0x465   : > { %v1284_v8 = vcombine.low %v1260_v4, %v1276_v6  ;;  %v1285_v9 = vcombine.high %v1260_v4, %v1276_v6  ;;  %v1286_v10 = vcombine.low %v1267_v5, %v1283_v7  ;;  %v1287_v11 = vcombine.high %v1267_v5, %v1283_v7 }
 0x467   : > { %v1288_v12 = vpack.c.bf16 %v1284_v8, %v1284_v8  ;;  %v1289_v13 = vpack.c.bf16 %v1285_v9, %v1285_v9  ;;  %v1290_v18 = vpack.c.bf16 %v1286_v10, %v1286_v10  ;;  %v1291_v19 = vpack.c.bf16 %v1287_v11, %v1287_v11 }
 0x469   : > { %v1522_v16 = vsel %vm1520_vm3, %v1288_v12, 0  ;;  %v1568_v17 = vsel %vm1520_vm3, %v1289_v13, 0  ;;  %v1614_v22 = vsel %vm1520_vm3, %v1290_v18, 0  ;;  %v1660_v24 = vsel %vm1520_vm3, %v1291_v19, 0  ;;  %v2684_v13 = vld [vmem:[#allocation15] sm:$0xff]  }
 0x46a   : > { %2448 = vmatpush3.bf16.msra.mxu1 %v1522_v16  ;;  %2454 = vmatpush3.bf16.msra.mxu0 %v1568_v17 }
 0x46b   : > { %2459 = vmatprep.subr.bf16.mxu1 %v3181_v0  ;;  %2465 = vmatprep.subr.bf16.mxu0 %v3181_v0 }
 0x46d   : > { %2450 = vmatmul.mubr.msk.bf16.vlgmr.msra.gmra.mrb[12].mxu1 %vm1292_vm2, %v1513_v20  ;;  %2456 = vmatmul.mubr.msk.bf16.vlgmr.msra.gmra.mrb[16].mxu0 %vm1292_vm2, %v1514_v21 }
 0x46e   : > { %2460 = vmatpush3.bf16.msra.mxu1 %v1614_v22  ;;  %2466 = vmatpush3.bf16.msra.mxu0 %v1660_v24 }
 0x46f   : > { %2461 = vmatprep.mubr.msk.bf16.mxu1 %vm3182_vm0, %v3181_v0  ;;  %2467 = vmatprep.mubr.msk.bf16.mxu0 %vm3182_vm0, %v3181_v0 }
 0x470   : > { %2471 = vmatprep.subr.bf16.mxu1 %v3181_v0  ;;  %2479 = vmatprep.subr.bf16.mxu0 %v3181_v0 }
 0x484   : > { %v1485_v25 = vpop.xlane.xlu1 %1484  ;;  %v1488_v26 = vpop.xlane.xlu0 %1487 }
 0x485   : > { %v1491_v27 = vsub.f32 %v3768_v14, %v1485_v25  ;;  %v1492_v28 = vsub.f32 %v3770_v15, %v1488_v26  ;;  %v2685_v25 = vld [vmem:[#allocation15 + $0x8] sm:$0xff]  }
 0x487   : > { %v1497_v29 = vmul.f32 1.442695, %v1491_v27  ;;  %v1499_v30 = vmul.f32 1.442695, %v1492_v28 }
 0x489   : > { %2696 = vpow2.f32 %v1497_v29 }
 0x48a   : > { %2698 = vpow2.f32 %v1499_v30 }
 0x493   : > { %v2697_v31 = vpop.eup %2696 }
 0x494   : > { %v2699_v32 = vpop.eup %2698  ;;  %v1507_v33 = vsel %vm1292_vm2, %v2697_v31, 0.0  ;;  %v1515_v34 = vpack.c.bf16 %v2697_v31, %v2697_v31 }
 0x495   : > { %1508 = vadd.xlane.f32.xlu0 %v1507_v33  ;;  %v1510_v35 = vsel %vm1292_vm2, %v2699_v32, 0.0  ;;  %v1516_v36 = vpack.c.bf16 %v2699_v32, %v2699_v32 }
 0x496   : > { %1511 = vadd.xlane.f32.xlu1 %v1510_v35  ;;  %2462 = vmatmul.mubr.msk.bf16.vlgmr.msra.gmra.mrb[16].mxu1 %vm1292_vm2, %v1515_v34  ;;  %v2686_v34 = vld [vmem:[#allocation18] sm:$0xff]  }
 0x497   : > { %2468 = vmatmul.mubr.msk.bf16.vlgmr.msra.gmra.mrb[20].mxu0 %vm1292_vm2, %v1516_v36  ;;  %2475 = vmatprep.mubr.msk.bf16.mxu1 %vm3182_vm0, %v3181_v0 }
 0x498   : > { %2483 = vmatprep.mubr.msk.bf16.mxu0 %vm3182_vm0, %v3181_v0  ;;  %2472 = vmatpush3.bf16.msra.mxu1 %v2684_v13 }
 0x499   : > { %2473 = vmatprep.subr.bf16.mxu1 %v3181_v0  ;;  %2480 = vmatpush3.bf16.msra.mxu0 %v2686_v34 }
 0x49a   : > { %2481 = vmatprep.subr.bf16.mxu0 %v3181_v0 }
 0x49c   : > { %2474 = vmatpush3.bf16.msra.mxu1 %v2685_v25 }
 0x49d   : > { %2487 = vmatprep.subr.bf16.mxu1 %v3181_v0 }
 0x4ed   : > { %v1503_v45 = vpop.xlane.xlu0 %1502 }
 0x4ee   : > { %v1506_v46 = vpop.xlane.xlu1 %1505  ;;  %2700 = vrcp.f32 %v1503_v45 }
 0x4ef   : > { %2702 = vrcp.f32 %v1506_v46 }
 0x4f8   : > { %v2701_v49 = vpop.eup %2700 }
 0x4f9   : > { %v2703_v50 = vpop.eup %2702 }
 0x522   : > { %v1509_v47 = vpop.xlane.xlu0 %1508 }
 0x523   : > { %v1512_v48 = vpop.xlane.xlu1 %1511  ;;  %2704 = vrcp.f32 %v1509_v47 }
 0x524   : > { %2706 = vrcp.f32 %v1512_v48  ;;  %v2687_v48 = vld [vmem:[#allocation18 + $0x8] sm:$0xff]  }
 0x525   : > { %2482 = vmatpush3.bf16.msra.mxu0 %v2687_v48 }
 0x52d   : > { %v2705_v23 = vpop.eup %2704 }
 0x52e   : > { %v2707_v52 = vpop.eup %2706 }
 0x540   : > { %v1558_v14 = vpop.f32.mrb[12].mxu1  ;;  %v1604_v15 = vpop.f32.mrb[16].mxu0 }
 0x541   : > { %v2451_v38 = vpop.f32.mrb[13].mxu1  ;;  %v2457_v39 = vpop.f32.mrb[17].mxu0  ;;  %v1706_v53 = vmul.f32 %v2701_v49, %v1558_v14  ;;  %v1707_v57 = vmul.f32 %v2703_v50, %v1604_v15  ;;  %v2688_v49 = vld [vmem:[#allocation21] sm:$0xff]   ;;  %v2689_v50 = vld [vmem:[#allocation21 + $0x8] sm:$0xff]  }
 0x542   : > { %v1561_v40 = vpop.f32.mrb[14].mxu1  ;;  %v1607_v41 = vpop.f32.mrb[18].mxu0 }
 0x543   : > { %v2452_v42 = vpop.f32.mrb[15].mxu1  ;;  %v2458_v43 = vpop.f32.mrb[19].mxu0 }
 0x569   : > { %v1650_v51 = vpop.f32.mrb[16].mxu1 }
 0x56a   : > { %v1708_v54 = vmul.f32 %v2705_v23, %v1650_v51  ;;  %v1696_v55 = vpop.f32.mrb[20].mxu0  ;;  %v2463_v56 = vpop.f32.mrb[17].mxu1  ;;  %v2345_v23 = vld [vmem:[#allocation17] ss:$0 sm:$0xff] }
 0x56b   : > { %v1709_v58 = vmul.f32 %v2707_v52, %v1696_v55  ;;  %v2469_v59 = vpop.f32.mrb[21].mxu0  ;;  %v1653_v60 = vpop.f32.mrb[18].mxu1 }
 0x56c   : > { %v1710_v61 = vcombine.low %v1706_v53, %v1708_v54  ;;  %v1711_v62 = vcombine.high %v1706_v53, %v1708_v54  ;;  %v1699_v63 = vpop.f32.mrb[22].mxu0  ;;  %v2464_v1 = vpop.f32.mrb[19].mxu1  ;;  %v2349_v59 = vld [vmem:[#allocation20] ss:$0 sm:$0xff] }
 0x56d   : > { %v1726_v2 = vcombine.low %v1707_v57, %v1709_v58  ;;  %v1727_v3 = vcombine.high %v1707_v57, %v1709_v58  ;;  %v2470_v4 = vpop.f32.mrb[23].mxu0  ;;  %v2690_v57 = vld [vmem:[#allocation21 + $0x10] sm:$0xff]   ;;  %v2691_v58 = vld [vmem:[#allocation21 + $0x18] sm:$0xff]  }
 0x56e   : > { %v1718_v5 = vrot.slane %v1710_v61, %v3710_v37  ;;  %v1725_v6 = vrot.slane %v1711_v62, %v3710_v37  ;;  %v1999_v61 = vstv %s1997_s29 }
 0x56f   : > { %v1734_v7 = vrot.slane %v1726_v2, %v3710_v37  ;;  %v1741_v8 = vrot.slane %v1727_v3, %v3710_v37 }
 0x571   : > { %v1742_v9 = vcombine.low %v1718_v5, %v1734_v7  ;;  %v1743_v10 = vcombine.high %v1718_v5, %v1734_v7  ;;  %v1758_v11 = vcombine.low %v1725_v6, %v1741_v8  ;;  %v1759_v12 = vcombine.high %v1725_v6, %v1741_v8 }
 0x573   : > { %v1750_v16 = vrot.slane %v1742_v9, %v3712_v44  ;;  %v1757_v17 = vrot.slane %v1743_v10, %v3712_v44  ;;  %v1766_v18 = vrot.slane %v1758_v11, %v3712_v44  ;;  %v1773_v19 = vrot.slane %v1759_v12, %v3712_v44 }
 0x575   : > { %v1778_v20 = vcombine.low %v1750_v16, %v1757_v17  ;;  %v2343_v21 = vcombine.high %v1750_v16, %v1757_v17  ;;  %v1794_v22 = vcombine.low %v1766_v18, %v1773_v19  ;;  %v2344_v24 = vcombine.high %v1766_v18, %v1773_v19 }
 0x577   : > { %v1785_v26 = vrot.slane %v1778_v20, %v3710_v37  ;;  %v1793_v27 = vrot.slane %v2343_v21, %v3710_v37  ;;  %v1801_v28 = vrot.slane %v1794_v22, %v3710_v37  ;;  %v1809_v29 = vrot.slane %v2344_v24, %v3710_v37 }
 0x579   : > { %v1811_v30 = vcombine.high %v1785_v26, %v1793_v27  ;;  %v1827_v31 = vcombine.high %v1801_v28, %v1809_v29  ;;  %v1810_v32 = vcombine.low %v1785_v26, %v1793_v27  ;;  %v1826_v33 = vcombine.low %v1801_v28, %v1809_v29 }
 0x57b   : > { %v1825_v35 = vrot.slane %v1811_v30, %v3712_v44  ;;  %v1841_v36 = vrot.slane %v1827_v31, %v3712_v44  ;;  %v1818_v14 = vrot.slane %v1810_v32, %v3712_v44  ;;  %v1834_v15 = vrot.slane %v1826_v33, %v3712_v44 }
 0x57d   : > { %v1844_v37 = vcombine.low %v1825_v35, %v1841_v36  ;;  %v1843_v38 = vcombine.high %v1818_v14, %v1834_v15  ;;  %v1845_v39 = vcombine.high %v1825_v35, %v1841_v36  ;;  %v1842_v40 = vcombine.low %v1818_v14, %v1834_v15 }
 0x57f   : > { %1851 = vrot.lane.b32.xlu1 %v1844_v37, %s3188_s21  ;;  %1847 = vrot.lane.b32.xlu0 %v1843_v38, %s3189_s19  ;;  %s3857_s21 = scalar_lea.hbm %s3962_s26, %s2360_s2  ;;  %s3191_s19 = smov [#allocation24]  }
 0x583   : > { %1855 = vrot.lane.b32.xlu1 %v1845_v39, %s3190_s25  ;;  %s3078_s25 = sshll.u32 %s3191_s19, 4  ;;  %s3079_s25 = int_to_ptr.vmem [resolvable:$false] %s3078_s25 }
 0x584   : > { %s3080_s29 = scalar_lea.vmem %s3079_s25, 256  ;;  %p3081_p11 = scmp.lt.s32.totalorder %s3859_s1, %s3079_s25 }
 0x585   : > { %p3082_p8 = scmp.lt.s32.totalorder %s3080_s29, %s3074_s0 }
 0x587   : > { %p3083_p5 = por %p3082_p8, %p3081_p11 }
 0x589   : > { %p3084_p7 = pnand %p3083_p5, %p3077_p10 }
 0x5f1   : > { %v1852_v41 = vpop.permute.xlu1 %1851  ;;  %v1848_v42 = vpop.permute.xlu0 %1847 }
 0x5f2   : > { %v1858_v43 = vsel %vm1292_vm2, %v1842_v40, %v1848_v42 }
 0x5f3   : > { %v1860_v45 = vsel %vm1859_vm4, %v1858_v43, %v1852_v41 }
 0x5f5   : > { %v1856_v44 = vpop.permute.xlu1 %1855 }
 0x5f6   : > { %v1862_v46 = vsel %vm1861_vm5, %v1860_v45, %v1856_v44 }
 0x5f7   : > { %v1863_v47 = vpack.c.bf16 %v1862_v46, %v1862_v46 }
 0x5f9   : > { %2476 = vmatmul.mubr.msk.bf16.vlgmr.msra.gmra.mrb[20].mxu1 %vm672_vm1, %v1863_v47 }
 0x5fa   : > { %2495 = vmatprep.mubr.msk.bf16.mxu1 %vm3182_vm0, %v3181_v0  ;;  %2488 = vmatpush3.bf16.msra.mxu1 %v2688_v49 }
 0x5fb   : > { %2489 = vmatprep.subr.bf16.mxu1 %v3181_v0 }
 0x5fe   : > { %2490 = vmatpush3.bf16.msra.mxu1 %v2689_v50 }
 0x5ff   : > { %2491 = vmatprep.subr.bf16.mxu1 %v3181_v0 }
 0x602   : > { %2492 = vmatpush3.bf16.msra.mxu1 %v2690_v57 }
 0x603   : > { %2493 = vmatprep.subr.bf16.mxu1 %v3181_v0  ;;  %v2353_v0 = vld [vmem:[#allocation23] ss:$0 sm:$0xff] }
 0x606   : > { %2494 = vmatpush3.bf16.msra.mxu1 %v2691_v58 }
 0x6cc   : > { %v1924_v51 = vpop.f32.mrb[20].mxu1 }
 0x6cd   : > { %v1925_v52 = vadd.f32 %v2345_v23, %v1924_v51  ;;  %v2477_v53 = vpop.f32.mrb[21].mxu1 }
 0x6ce   : > { %v1927_v54 = vpop.f32.mrb[22].mxu1 }
 0x6cf   : > { %v1930_v55 = vpack.c.bf16 %v1925_v52, %v1925_v52  ;;  %v2478_v56 = vpop.f32.mrb[23].mxu1 }
 0x6d1   : > { %2484 = vmatmul.mubr.msk.bf16.vlgmr.msra.gmra.mrb[24].mxu0 %vm672_vm1, %v1930_v55 }
 0x7a4   : > { %v1991_v60 = vpop.f32.mrb[24].mxu0 }
 0x7a5   : > { %v1992_v62 = vadd.f32 %v2349_v59, %v1991_v60  ;;  %v2485_v63 = vpop.f32.mrb[25].mxu0 }
 0x7a6   : > { %v1994_v1 = vpop.f32.mrb[26].mxu0 }
 0x7a7   : > { %vm1998_vm6 = vcmp.ge.f32.partialorder %v1992_v62, 0.0  ;;  %v2000_v2 = vmul.f32 %v1999_v61, %v1992_v62  ;;  %v2486_v3 = vpop.f32.mrb[27].mxu0 }
 0x7a9   : > { %v2001_v4 = vsel %vm1998_vm6, %v1992_v62, %v2000_v2 }
 0x7aa   : > { %v2002_v5 = vpack.c.bf16 %v2001_v4, %v2001_v4 }
 0x7ac   : > { %2496 = vmatmul.mubr.msk.bf16.vlgmr.msra.gmra.mrb[24].mxu1 %vm2042_vm7, %v2002_v5 }
 0x87f   : > { %v2080_v6 = vpop.f32.mrb[24].mxu1 }
 0x880   : > { %v2081_v7 = vadd.f32 %v2353_v0, %v2080_v6  ;;  %v2497_v8 = vpop.f32.mrb[25].mxu1 }
 0x881   : > { %v2083_v9 = vpop.f32.mrb[26].mxu1 }
 0x882   : > { %v2498_v10 = vpop.f32.mrb[27].mxu1  ;;  %2086 = vst.msk [vmem:[%s645_s23] sm:$0xff] %vm672_vm1, %v2081_v7 }
 0x883   : > { %3087 = shalt.err (!%p3084_p7)
}
 0x884   : > { %s3088_s27 = scalar_lea.hbm %s3857_s21, 128  ;;  %s3092_s20 = scalar_lea.hbm %s3962_s26, 256 }
 0x885   : > { %p3089_p6 = scmp.ne.s32.totalorder %s3857_s21, %s3088_s27  ;;  %p3093_p1 = scmp.lt.u32.totalorder %s3857_s21, %s3962_s26 }
 0x886   : > { %p3094_p13 = scmp.lt.u32.totalorder %s3092_s20, %s3088_s27  ;;  %p3096_p2 = scmp.lt.u32.totalorder %s3088_s27, %s3857_s21 }
 0x887   : > { %p3090_p9 = pnand %p3089_p6, %p3963_p3 }
 0x888   : > { %p3095_p0 = por %p3094_p13, %p3093_p1 }
 0x889   : > { %p3091_p12 = pneg %p3090_p9 }
 0x88a   : > { %p3097_p4 = por %p3096_p2, %p3095_p0 }
 0x88c   : > { %p3098_p10 = pnand %p3097_p4, %p3091_p12 }
 0x88e   : > { %3101 = shalt.err (!%p3098_p10)
}
 0x88f   : > { %2549 = dma.vmem_to_hbm [thread:$0]  (%p3963_p3), %s3859_s1, 128, %s3857_s21, %s2088_s22  }
 0x890 PF: > { %s3964_s0 = sld [smem:[#allocation33_spill]]  ;;  %p3965_p11 = scmp.ne.s32.totalorder %s3944_s11, 0 }
 0x891   : > { %p3966_p8 = scmp.ge.s32.totalorder %s3164_s18, 2 }
 0x893   : > { %p2593_p5 = pnand %p3966_p8, %p3965_p11 }
 0x896   : > { %s2113_s25 = sand.u32 1, %s3964_s0  }
 0x897   : > { %s2114_s29 = scalar_lea.sflag [#allocation5], %s2113_s25 }
 0x898   : > { %3147 = dma.done.wait (!%p2593_p5), %s2114_s29, 128  }
 0x899   : > { %3149 = vsyncadd (!%p2593_p5), %s2114_s29, 4294967168  ;;  %p34_p7 = scmp.ge.s32.totalorder %s3572_s24, 4   ;;  %s3967_s15 = smov %s3156_s16 }
 0x89a   : > { %s3968_s16 = smov %s3160_s17  ;;  %s3969_s17 = smov %s3583_s28 }
 0x89b   : > { %s3970_s18 = smov %s3572_s24  ;;  %36 = sbr.rel (!%p34_p7) target bundleno = 17 (0x11), region = 169 }
 0x8a2   :  { %2119 = vsyncpa [#allocation4], 1 }
 0x8a3   :  { %2121 = vsyncpa [#allocation4 + $0x1], 1 }
 0x8a4   :  { %2122 = vsyncpa [#allocation7], 1 }
 0x8a5   :  { %2123 = vsyncpa [#allocation10], 1 }
 0x8a6   :  { %2124 = vsyncpa [#allocation13], 1 }
 0x8a7   :  { %2125 = vsyncpa [#allocation16], 1 }
 0x8a8   :  { %2126 = vsyncpa [#allocation19], 1 }
 0x8a9   :  { %2127 = vsyncpa [#allocation22], 1 }
 0x8aa   :  { %2128 = vsyncpa [#allocation5], 1 }
 0x8ab   :  { %2130 = vsyncpa [#allocation5 + $0x1], 1 }

</bundles_post_ra>
